<compile_context>
chip_gen: v7x
topology: tpu7x:2x2x1
jax: 0.10.0
libtpu: 0.0.40
codegen_flags: <defaults>
</compile_context>

<pallas_src>
import functools

import jax
import jax.numpy as jnp
from jax import lax
from jax.experimental import pallas as pl
from jax.experimental.pallas import tpu as pltpu

_MIB = 1024 * 1024


def _bottleneck_kernel(x_ref, w1_ref, w2_ref, w3_ref, b1_ref, b2_ref, b3_ref,
                       o_ref, pad_ref, *, H, W_valid, dilation, fuse_kx, kx_bf16):
    """One (batch_block, H, Wp, Cin) block per grid step.

    conv1/conv3 are 1x1 channel matmuls over the flattened pixel axis.
    conv2 builds the kx (column) taps with pltpu.roll + border masks and the
    ky (row) taps as windows of a row-halo VMEM scratch; all slices touch only
    untiled leading dims (Wp is a multiple of 8, so reshapes stay aligned).
    """
    B = x_ref.shape[0]
    Wp = x_ref.shape[2]
    Cin = x_ref.shape[-1]
    P = w1_ref.shape[-1]
    d = dilation
    M = B * H * Wp

    # ---- conv1 (1x1) + folded-bn1 bias + relu ------------------------------
    xb = x_ref[...].reshape(M, Cin).astype(jnp.bfloat16)
    t1 = jnp.dot(xb, w1_ref[...], preferred_element_type=jnp.float32)
    t1 = jnp.maximum(t1 + b1_ref[...], 0.0)                         # (M, P) f32
    if kx_bf16:
        t1 = t1.astype(jnp.bfloat16)

    # ---- conv2 (3x3, stride 1, padding = dilation) + bias + relu -----------
    # Column (kx) taps: roll on the flattened pixel axis + border mask (roll
    # wrap-around, cross-image bleed and the zero-padded extra columns all
    # correspond to source column w+dx outside [0, W_valid) -> masked to 0).
    col = lax.broadcasted_iota(jnp.int32, (B, H, Wp, 1), 2).reshape(M, 1)
    parts = []
    for kx in range(3):
        dx = (kx - 1) * d
        if dx == 0:
            p_kx = t1
        else:
            rolled = pltpu.roll(t1, shift=(-dx) % M, axis=0)        # out[p] = t1[p+dx]
            valid = jnp.logical_and(col + dx >= 0, col + dx < W_valid)
            p_kx = jnp.where(valid, rolled, jnp.zeros_like(rolled))
        parts.append(p_kx.astype(jnp.bfloat16))

    # Row (ky) taps via a row-halo scratch: only the 2*d halo rows are zeroed
    # each step (the interior is fully overwritten), so cross-step / cross-core
    # scratch reuse is safe.  Slices are on untiled leading axes only.
    acc = None
    if fuse_kx:
        # pad_ref: (B, H+2d, Wp, 3P) -- 3 dots with K = 3P (lane-aligned case).
        halo = jnp.zeros((B, d, Wp, 3 * P), pad_ref.dtype)
        pad_ref[:, 0:d, :, :] = halo
        pad_ref[:, H + d:H + 2 * d, :, :] = halo
        pad_ref[:, d:H + d, :, :] = jnp.concatenate(
            parts, axis=-1).reshape(B, H, Wp, 3 * P)
        for ky in range(3):
            win = pad_ref[:, ky * d:ky * d + H, :, :].reshape(M, 3 * P)
            term = jnp.dot(win, w2_ref[ky, :, :],
                           preferred_element_type=jnp.float32)
            acc = term if acc is None else acc + term
    else:
        # pad_ref: (3, B, H+2d, Wp, P) -- kx taps on a leading axis, 9 dots
        # with K = P (avoids a sub-128-lane concat relayout every step).
        halo = jnp.zeros((B, d, Wp, P), pad_ref.dtype)
        for kx in range(3):
            pad_ref[kx, :, 0:d, :, :] = halo
            pad_ref[kx, :, H + d:H + 2 * d, :, :] = halo
            pad_ref[kx, :, d:H + d, :, :] = parts[kx].reshape(B, H, Wp, P)
        for ky in range(3):
            for kx in range(3):
                win = pad_ref[kx, :, ky * d:ky * d + H, :, :].reshape(M, P)
                term = jnp.dot(win, w2_ref[ky, kx, :, :],
                               preferred_element_type=jnp.float32)
                acc = term if acc is None else acc + term
    t2 = jnp.maximum(acc + b2_ref[...], 0.0)                        # (M, P) f32

    # ---- conv3 (1x1) + folded-bn3 bias -------------------------------------
    t3 = jnp.dot(t2.astype(jnp.bfloat16), w3_ref[...],
                 preferred_element_type=jnp.float32) + b3_ref[...]  # (M, Cin)

    # ---- residual add + relu (x re-read here, not live across the convs) ----
    res = x_ref[...].reshape(M, Cin)
    out = jnp.maximum(t3 + res, 0.0)
    o_ref[...] = out.reshape(B, H, Wp, Cin).astype(o_ref.dtype)


def _vmem_capacity_bytes():
    try:
        return int(pltpu.get_tpu_info().vmem_capacity_bytes)
    except Exception:
        return 64 * _MIB   # conservative (v7x-sized) fallback


def _block_footprint_bytes(B, H, Wp, Cin, P, d, *, x_buffers=2, out_buffers=2):
    """Estimated per-step VMEM: pipeline buffers + halo scratch + temporaries."""
    M = B * H * Wp
    xo = (x_buffers + out_buffers) * M * Cin * 4          # f32 x / out blocks
    pad = 3 * B * (H + 2 * d) * Wp * P * 2                # bf16 row-halo scratch
    inter = M * (14 * Cin + 22 * P)                       # f32/bf16 temporaries (generous)
    return xo + pad + inter


def bottleneck_forward_nhwc(x, folded_params, *, dilation=1, batch_block=None,
                            min_grid=2):
    """x: (N, H, W, Cin) f32 NHWC.  folded_params from make_params(). Returns NHWC.

    batch_block=None auto-picks the largest divisor of N that fits the device
    VMEM budget while keeping at least `min_grid` grid steps (use min_grid=1 on
    single-TensorCore v5e/v6e to maximize the block size instead).
    """
    N, H, W, Cin = x.shape
    w1f, w2f, w3f, b1, b2, b3 = folded_params
    P = w1f.shape[1]
    Cout = w3f.shape[1]
    assert Cout == Cin, "identity residual requires inplanes == 4*planes"
    d = dilation

    # Pad W to a multiple of 8 so in-kernel reshapes are layout-free.  Padded
    # columns are zero on input, masked out of valid conv2 taps, and cropped
    # from the output below.
    Wp = ((W + 7) // 8) * 8
    x_pad = x if Wp == W else jnp.pad(x, ((0, 0), (0, 0), (0, Wp - W), (0, 0)))

    # bf16 weights.  kx-fused (K = 3P) packing only when 3P is lane-aligned;
    # otherwise keep the full (ky, kx, P, P) tap layout for the 9-dot path.
    fuse_kx = (3 * P) % 128 == 0
    w1k = w1f.astype(jnp.bfloat16)
    if fuse_kx:
        w2k = jnp.concatenate([w2f[:, 0], w2f[:, 1], w2f[:, 2]],
                              axis=1).astype(jnp.bfloat16)          # (3, 3P, P)
    else:
        w2k = w2f.astype(jnp.bfloat16)                              # (3, 3, P, P)
    w3k = w3f.astype(jnp.bfloat16)
    consts = (w1k, w2k, w3k, b1, b2, b3)
    const_bytes = sum(int(a.size) * a.dtype.itemsize for a in consts)

    # ---- device-aware VMEM budget & batch-block choice ----------------------
    budget = int(0.75 * _vmem_capacity_bytes())
    if batch_block is None:
        fitting = [B for B in range(1, N + 1)
                   if N % B == 0 and const_bytes +
                   _block_footprint_bytes(B, H, Wp, Cin, P, d) <= int(0.8 * budget)]
        preferred = [B for B in fitting if N // B >= min_grid]
        batch_block = max(preferred or fitting or [1])
    assert N % batch_block == 0, "batch_block must divide N"
    B = batch_block

    est = const_bytes + _block_footprint_bytes(B, H, Wp, Cin, P, d)
    vmem_limit = int(min(max(int(1.25 * est), 32 * _MIB), budget))

    kernel_kw = dict(H=H, W_valid=W, dilation=d, fuse_kx=fuse_kx)
    pad_shape = ((B, H + 2 * d, Wp, 3 * P) if fuse_kx
                 else (3, B, H + 2 * d, Wp, P))

    def build(single_buffer_consts, kx_bf16):
        kernel = functools.partial(_bottleneck_kernel, kx_bf16=kx_bf16, **kernel_kw)

        def const_spec(a):
            zeros = (0,) * a.ndim
            if single_buffer_consts:
                return pl.BlockSpec(a.shape, lambda n, _z=zeros: _z,
                                    pipeline_mode=pl.Buffered(1))
            return pl.BlockSpec(a.shape, lambda n, _z=zeros: _z)

        grid_spec = pltpu.PrefetchScalarGridSpec(
            num_scalar_prefetch=0,
            grid=(N // B,),
            in_specs=[pl.BlockSpec((B, H, Wp, Cin), lambda n: (n, 0, 0, 0))]
                     + [const_spec(a) for a in consts],
            out_specs=pl.BlockSpec((B, H, Wp, Cin), lambda n: (n, 0, 0, 0)),
            scratch_shapes=[pltpu.VMEM(pad_shape, jnp.bfloat16)],
        )
        return pl.pallas_call(
            kernel,
            out_shape=jax.ShapeDtypeStruct((N, H, Wp, Cin), x.dtype),
            grid_spec=grid_spec,
            compiler_params=pltpu.CompilerParams(
                dimension_semantics=("parallel",),
                vmem_limit_bytes=vmem_limit),
        )

    try:
        out = jax.block_until_ready(build(True, True)(x_pad, *consts))
    except Exception:
        # Conservative fallback (older jax/libtpu): double-buffered constants
        # and f32 kx rolls -- numerically identical, slightly more VMEM/XLU.
        out = build(False, False)(x_pad, *consts)
    return out if Wp == W else out[:, :, :W, :]


def reference_nhwc(x, folded_params, *, dilation=1):
    """Pure-JAX reference (lax.conv) with bf16-rounded operands + f32 accumulate,
    mirroring the kernel's numerics."""
    w1f, w2f, w3f, b1, b2, b3 = folded_params
    dn = ("NHWC", "HWIO", "NHWC")

    def r(a):
        return a.astype(jnp.bfloat16).astype(jnp.float32)

    def conv(y, w, pad=0, dil=1):
        return lax.conv_general_dilated(r(y), r(w), window_strides=(1, 1),
                                        padding=[(pad, pad), (pad, pad)],
                                        rhs_dilation=(dil, dil),
                                        dimension_numbers=dn)

    t = jnp.maximum(conv(x, w1f[None, None]) + b1[0], 0.0)
    t = jnp.maximum(conv(t, w2f, pad=dilation, dil=dilation) + b2[0], 0.0)
    t = conv(t, w3f[None, None]) + b3[0]
    return jnp.maximum(t + x, 0.0)


def make_params(key, inplanes, planes, eps=1e-5):
    """Deterministic synthetic parameters with eval-mode BN folded: the BN
    scale goes into the conv weights, leaving only per-channel biases."""
    expansion = 4
    cout = planes * expansion
    ks = jax.random.split(key, 15)

    w1 = 0.1 * jax.random.normal(ks[0], (inplanes, planes), jnp.float32)      # (Cin, P)
    w2 = 0.1 * jax.random.normal(ks[1], (3, 3, planes, planes), jnp.float32)  # HWIO
    w3 = 0.1 * jax.random.normal(ks[2], (planes, cout), jnp.float32)          # (P, Cout)

    def bn(k0, k1, k2, k3, c):
        gamma = jax.random.uniform(k0, (c,), jnp.float32, 0.5, 1.5)
        beta = 0.1 * jax.random.normal(k1, (c,), jnp.float32)
        mean = 0.1 * jax.random.normal(k2, (c,), jnp.float32)
        var = jax.random.uniform(k3, (c,), jnp.float32, 0.5, 1.5)
        scale = gamma * lax.rsqrt(var + eps)
        bias = beta - mean * scale
        return scale, bias

    s1, b1 = bn(ks[3], ks[4], ks[5], ks[6], planes)
    s2, b2 = bn(ks[7], ks[8], ks[9], ks[10], planes)
    s3, b3 = bn(ks[11], ks[12], ks[13], ks[14], cout)

    w1f = w1 * s1[None, :]
    w2f = w2 * s2[None, None, None, :]
    w3f = w3 * s3[None, :]
    return (w1f, w2f, w3f, b1[None, :], b2[None, :], b3[None, :])


if __name__ == "__main__":
    # Small shapes consistent with the module: inplanes = 4 * planes so the
    # identity residual (downsample=None, stride=1) is shape-compatible.
    N, planes = 4, 8
    inplanes = 4 * planes

    key = jax.random.PRNGKey(0)
    k_x, k_p = jax.random.split(key)
    params = make_params(k_p, inplanes, planes)

    # (H, W, dilation): the last case has W % 8 != 0 to exercise the W-padding
    # (and cropping) path.
    cases = [(16, 16, 1), (16, 16, 2), (14, 12, 2)]
    for H, W, dil in cases:
        x_nchw = jax.random.normal(jax.random.fold_in(k_x, H * W + dil),
                                   (N, inplanes, H, W), jnp.float32)  # PyTorch layout
        x_nhwc = jnp.transpose(x_nchw, (0, 2, 3, 1))                   # kernel layout

        out = bottleneck_forward_nhwc(x_nhwc, params, dilation=dil)
        out = jax.block_until_ready(out)
        ref = jax.block_until_ready(reference_nhwc(x_nhwc, params, dilation=dil))
        assert out.shape == (N, H, W, inplanes)
        max_err = float(jnp.max(jnp.abs(out - ref)))
        assert jnp.allclose(out, ref, rtol=1e-2, atol=1e-2), \
            f"mismatch vs lax.conv reference (H={H},W={W},dil={dil},max_err={max_err})"

    print("KERNEL_OK")
</pallas_src>

<mosaic_0001>
module attributes {stable_mosaic.version = 11 : i64} {
  func.func @_bottleneck_kernel(%arg0: i32, %arg1: memref<2x16x16x32xf32, #tpu.memory_space<vmem>>, %arg2: memref<32x8xbf16, #tpu.memory_space<vmem>>, %arg3: memref<3x3x8x8xbf16, #tpu.memory_space<vmem>>, %arg4: memref<8x32xbf16, #tpu.memory_space<vmem>>, %arg5: memref<1x8xf32, #tpu.memory_space<vmem>>, %arg6: memref<1x8xf32, #tpu.memory_space<vmem>>, %arg7: memref<1x32xf32, #tpu.memory_space<vmem>>, %arg8: memref<2x16x16x32xf32, #tpu.memory_space<vmem>>, %arg9: memref<3x2x18x16x8xbf16, #tpu.memory_space<vmem>>) attributes {dimension_semantics = [#tpu.dimension_semantics<parallel>], iteration_bounds = array<i64: 2>, scalar_prefetch = 0 : i64, scratch_operands = 1 : i64, tpu.core_type = #tpu.core_type<tc>, window_params = [{transform_indices = @transform_0, window_bounds = array<i64: 2, 16, 16, 32>}, {pipeline_mode = #tpu.pipeline_mode<synchronous>, transform_indices = @transform_1, window_bounds = array<i64: 32, 8>}, {pipeline_mode = #tpu.pipeline_mode<synchronous>, transform_indices = @transform_2, window_bounds = array<i64: 3, 3, 8, 8>}, {pipeline_mode = #tpu.pipeline_mode<synchronous>, transform_indices = @transform_3, window_bounds = array<i64: 8, 32>}, {pipeline_mode = #tpu.pipeline_mode<synchronous>, transform_indices = @transform_4, window_bounds = array<i64: 1, 8>}, {pipeline_mode = #tpu.pipeline_mode<synchronous>, transform_indices = @transform_5, window_bounds = array<i64: 1, 8>}, {pipeline_mode = #tpu.pipeline_mode<synchronous>, transform_indices = @transform_6, window_bounds = array<i64: 1, 32>}, {transform_indices = @transform_7, window_bounds = array<i64: 2, 16, 16, 32>}]} {
    %c0 = arith.constant 0 : index
    %c0_0 = arith.constant 0 : index
    %c0_1 = arith.constant 0 : index
    %c0_2 = arith.constant 0 : index
    %0 = vector.load %arg1[%c0, %c0_0, %c0_1, %c0_2] : memref<2x16x16x32xf32, #tpu.memory_space<vmem>>, vector<2x16x16x32xf32>
    %1 = vector.shape_cast %0 : vector<2x16x16x32xf32> to vector<512x32xf32>
    %2 = arith.truncf %1 : vector<512x32xf32> to vector<512x32xbf16>
    %c0_3 = arith.constant 0 : index
    %c0_4 = arith.constant 0 : index
    %3 = vector.load %arg2[%c0_3, %c0_4] : memref<32x8xbf16, #tpu.memory_space<vmem>>, vector<32x8xbf16>
    %cst = arith.constant dense<0.000000e+00> : vector<512x8xf32>
    %4 = tpu.matmul %2, %3, %cst {dimension_numbers = #tpu.dot_dimension_numbers<[1], [0], [0], [1], [0, 0, 1, 1], [], []>} : vector<512x32xbf16>, vector<32x8xbf16>, vector<512x8xf32> -> vector<512x8xf32>
    %c0_5 = arith.constant 0 : index
    %c0_6 = arith.constant 0 : index
    %5 = vector.load %arg5[%c0_5, %c0_6] : memref<1x8xf32, #tpu.memory_space<vmem>>, vector<1x8xf32>
    %6 = vector.broadcast %5 : vector<1x8xf32> to vector<512x8xf32>
    %7 = arith.addf %4, %6 : vector<512x8xf32>
    %cst_7 = arith.constant 0.000000e+00 : f32
    %8 = vector.broadcast %cst_7 : f32 to vector<512x8xf32>
    %9 = arith.maximumf %7, %8 : vector<512x8xf32>
    %10 = arith.truncf %9 : vector<512x8xf32> to vector<512x8xbf16>
    %11 = tpu.iota {dimensions = array<i32: 2>} : vector<2x16x16x1xi32>
    %12 = vector.shape_cast %11 : vector<2x16x16x1xi32> to vector<512x1xi32>
    %c1_i32 = arith.constant 1 : i32
    %13 = tpu.dynamic_rotate %10 by %c1_i32 dim 0 : vector<512x8xbf16>, i32 -> vector<512x8xbf16>
    %c-1_i32 = arith.constant -1 : i32
    %14 = vector.broadcast %c-1_i32 : i32 to vector<512x1xi32>
    %15 = arith.addi %12, %14 : vector<512x1xi32>
    %c0_i32 = arith.constant 0 : i32
    %16 = vector.broadcast %c0_i32 : i32 to vector<512x1xi32>
    %17 = arith.cmpi sge, %15, %16 : vector<512x1xi32>
    %c-1_i32_8 = arith.constant -1 : i32
    %18 = vector.broadcast %c-1_i32_8 : i32 to vector<512x1xi32>
    %19 = arith.addi %12, %18 : vector<512x1xi32>
    %c16_i32 = arith.constant 16 : i32
    %20 = vector.broadcast %c16_i32 : i32 to vector<512x1xi32>
    %21 = arith.cmpi slt, %19, %20 : vector<512x1xi32>
    %22 = arith.andi %17, %21 : vector<512x1xi1>
    %cst_9 = arith.constant 0.000000e+00 : bf16
    %23 = vector.broadcast %cst_9 : bf16 to vector<512x8xbf16>
    %24 = vector.shape_cast %22 : vector<512x1xi1> to vector<512x1xi1>
    %25 = vector.broadcast %24 : vector<512x1xi1> to vector<512x8xi1>
    %26 = arith.select %25, %13, %23 : vector<512x8xi1>, vector<512x8xbf16>
    %c511_i32 = arith.constant 511 : i32
    %27 = tpu.dynamic_rotate %10 by %c511_i32 dim 0 : vector<512x8xbf16>, i32 -> vector<512x8xbf16>
    %c1_i32_10 = arith.constant 1 : i32
    %28 = vector.broadcast %c1_i32_10 : i32 to vector<512x1xi32>
    %29 = arith.addi %12, %28 : vector<512x1xi32>
    %c0_i32_11 = arith.constant 0 : i32
    %30 = vector.broadcast %c0_i32_11 : i32 to vector<512x1xi32>
    %31 = arith.cmpi sge, %29, %30 : vector<512x1xi32>
    %c1_i32_12 = arith.constant 1 : i32
    %32 = vector.broadcast %c1_i32_12 : i32 to vector<512x1xi32>
    %33 = arith.addi %12, %32 : vector<512x1xi32>
    %c16_i32_13 = arith.constant 16 : i32
    %34 = vector.broadcast %c16_i32_13 : i32 to vector<512x1xi32>
    %35 = arith.cmpi slt, %33, %34 : vector<512x1xi32>
    %36 = arith.andi %31, %35 : vector<512x1xi1>
    %cst_14 = arith.constant 0.000000e+00 : bf16
    %37 = vector.broadcast %cst_14 : bf16 to vector<512x8xbf16>
    %38 = vector.shape_cast %36 : vector<512x1xi1> to vector<512x1xi1>
    %39 = vector.broadcast %38 : vector<512x1xi1> to vector<512x8xi1>
    %40 = arith.select %39, %27, %37 : vector<512x8xi1>, vector<512x8xbf16>
    %cst_15 = arith.constant 0.000000e+00 : bf16
    %41 = vector.broadcast %cst_15 : bf16 to vector<2x1x16x8xbf16>
    %c0_16 = arith.constant 0 : index
    %c0_17 = arith.constant 0 : index
    %c0_18 = arith.constant 0 : index
    %c0_19 = arith.constant 0 : index
    %c0_20 = arith.constant 0 : index
    %42 = vector.load %arg9[%c0_16, %c0_17, %c0_18, %c0_19, %c0_20] : memref<3x2x18x16x8xbf16, #tpu.memory_space<vmem>>, vector<1x2x1x16x8xbf16>
    %43 = vector.shape_cast %42 : vector<1x2x1x16x8xbf16> to vector<2x1x16x8xbf16>
    %44 = vector.shape_cast %41 : vector<2x1x16x8xbf16> to vector<1x2x1x16x8xbf16>
    tpu.vector_store %arg9[%c0_16, %c0_17, %c0_18, %c0_19, %c0_20], %44 {strides = array<i32>} : memref<3x2x18x16x8xbf16, #tpu.memory_space<vmem>>, vector<1x2x1x16x8xbf16>,
    %c0_21 = arith.constant 0 : index
    %c0_22 = arith.constant 0 : index
    %c17 = arith.constant 17 : index
    %c0_23 = arith.constant 0 : index
    %c0_24 = arith.constant 0 : index
    %45 = vector.load %arg9[%c0_21, %c0_22, %c17, %c0_23, %c0_24] : memref<3x2x18x16x8xbf16, #tpu.memory_space<vmem>>, vector<1x2x1x16x8xbf16>
    %46 = vector.shape_cast %45 : vector<1x2x1x16x8xbf16> to vector<2x1x16x8xbf16>
    %47 = vector.shape_cast %41 : vector<2x1x16x8xbf16> to vector<1x2x1x16x8xbf16>
    tpu.vector_store %arg9[%c0_21, %c0_22, %c17, %c0_23, %c0_24], %47 {strides = array<i32>} : memref<3x2x18x16x8xbf16, #tpu.memory_space<vmem>>, vector<1x2x1x16x8xbf16>,
    %48 = vector.shape_cast %26 : vector<512x8xbf16> to vector<2x16x16x8xbf16>
    %c0_25 = arith.constant 0 : index
    %c0_26 = arith.constant 0 : index
    %c1 = arith.constant 1 : index
    %c0_27 = arith.constant 0 : index
    %c0_28 = arith.constant 0 : index
    %49 = vector.load %arg9[%c0_25, %c0_26, %c1, %c0_27, %c0_28] : memref<3x2x18x16x8xbf16, #tpu.memory_space<vmem>>, vector<1x2x16x16x8xbf16>
    %50 = vector.shape_cast %49 : vector<1x2x16x16x8xbf16> to vector<2x16x16x8xbf16>
    %51 = vector.shape_cast %48 : vector<2x16x16x8xbf16> to vector<1x2x16x16x8xbf16>
    tpu.vector_store %arg9[%c0_25, %c0_26, %c1, %c0_27, %c0_28], %51 {strides = array<i32>} : memref<3x2x18x16x8xbf16, #tpu.memory_space<vmem>>, vector<1x2x16x16x8xbf16>,
    %c1_29 = arith.constant 1 : index
    %c0_30 = arith.constant 0 : index
    %c0_31 = arith.constant 0 : index
    %c0_32 = arith.constant 0 : index
    %c0_33 = arith.constant 0 : index
    %52 = vector.load %arg9[%c1_29, %c0_30, %c0_31, %c0_32, %c0_33] : memref<3x2x18x16x8xbf16, #tpu.memory_space<vmem>>, vector<1x2x1x16x8xbf16>
    %53 = vector.shape_cast %52 : vector<1x2x1x16x8xbf16> to vector<2x1x16x8xbf16>
    %54 = vector.shape_cast %41 : vector<2x1x16x8xbf16> to vector<1x2x1x16x8xbf16>
    tpu.vector_store %arg9[%c1_29, %c0_30, %c0_31, %c0_32, %c0_33], %54 {strides = array<i32>} : memref<3x2x18x16x8xbf16, #tpu.memory_space<vmem>>, vector<1x2x1x16x8xbf16>,
    %c1_34 = arith.constant 1 : index
    %c0_35 = arith.constant 0 : index
    %c17_36 = arith.constant 17 : index
    %c0_37 = arith.constant 0 : index
    %c0_38 = arith.constant 0 : index
    %55 = vector.load %arg9[%c1_34, %c0_35, %c17_36, %c0_37, %c0_38] : memref<3x2x18x16x8xbf16, #tpu.memory_space<vmem>>, vector<1x2x1x16x8xbf16>
    %56 = vector.shape_cast %55 : vector<1x2x1x16x8xbf16> to vector<2x1x16x8xbf16>
    %57 = vector.shape_cast %41 : vector<2x1x16x8xbf16> to vector<1x2x1x16x8xbf16>
    tpu.vector_store %arg9[%c1_34, %c0_35, %c17_36, %c0_37, %c0_38], %57 {strides = array<i32>} : memref<3x2x18x16x8xbf16, #tpu.memory_space<vmem>>, vector<1x2x1x16x8xbf16>,
    %58 = vector.shape_cast %10 : vector<512x8xbf16> to vector<2x16x16x8xbf16>
    %c1_39 = arith.constant 1 : index
    %c0_40 = arith.constant 0 : index
    %c1_41 = arith.constant 1 : index
    %c0_42 = arith.constant 0 : index
    %c0_43 = arith.constant 0 : index
    %59 = vector.load %arg9[%c1_39, %c0_40, %c1_41, %c0_42, %c0_43] : memref<3x2x18x16x8xbf16, #tpu.memory_space<vmem>>, vector<1x2x16x16x8xbf16>
    %60 = vector.shape_cast %59 : vector<1x2x16x16x8xbf16> to vector<2x16x16x8xbf16>
    %61 = vector.shape_cast %58 : vector<2x16x16x8xbf16> to vector<1x2x16x16x8xbf16>
    tpu.vector_store %arg9[%c1_39, %c0_40, %c1_41, %c0_42, %c0_43], %61 {strides = array<i32>} : memref<3x2x18x16x8xbf16, #tpu.memory_space<vmem>>, vector<1x2x16x16x8xbf16>,
    %c2 = arith.constant 2 : index
    %c0_44 = arith.constant 0 : index
    %c0_45 = arith.constant 0 : index
    %c0_46 = arith.constant 0 : index
    %c0_47 = arith.constant 0 : index
    %62 = vector.load %arg9[%c2, %c0_44, %c0_45, %c0_46, %c0_47] : memref<3x2x18x16x8xbf16, #tpu.memory_space<vmem>>, vector<1x2x1x16x8xbf16>
    %63 = vector.shape_cast %62 : vector<1x2x1x16x8xbf16> to vector<2x1x16x8xbf16>
    %64 = vector.shape_cast %41 : vector<2x1x16x8xbf16> to vector<1x2x1x16x8xbf16>
    tpu.vector_store %arg9[%c2, %c0_44, %c0_45, %c0_46, %c0_47], %64 {strides = array<i32>} : memref<3x2x18x16x8xbf16, #tpu.memory_space<vmem>>, vector<1x2x1x16x8xbf16>,
    %c2_48 = arith.constant 2 : index
    %c0_49 = arith.constant 0 : index
    %c17_50 = arith.constant 17 : index
    %c0_51 = arith.constant 0 : index
    %c0_52 = arith.constant 0 : index
    %65 = vector.load %arg9[%c2_48, %c0_49, %c17_50, %c0_51, %c0_52] : memref<3x2x18x16x8xbf16, #tpu.memory_space<vmem>>, vector<1x2x1x16x8xbf16>
    %66 = vector.shape_cast %65 : vector<1x2x1x16x8xbf16> to vector<2x1x16x8xbf16>
    %67 = vector.shape_cast %41 : vector<2x1x16x8xbf16> to vector<1x2x1x16x8xbf16>
    tpu.vector_store %arg9[%c2_48, %c0_49, %c17_50, %c0_51, %c0_52], %67 {strides = array<i32>} : memref<3x2x18x16x8xbf16, #tpu.memory_space<vmem>>, vector<1x2x1x16x8xbf16>,
    %68 = vector.shape_cast %40 : vector<512x8xbf16> to vector<2x16x16x8xbf16>
    %c2_53 = arith.constant 2 : index
    %c0_54 = arith.constant 0 : index
    %c1_55 = arith.constant 1 : index
    %c0_56 = arith.constant 0 : index
    %c0_57 = arith.constant 0 : index
    %69 = vector.load %arg9[%c2_53, %c0_54, %c1_55, %c0_56, %c0_57] : memref<3x2x18x16x8xbf16, #tpu.memory_space<vmem>>, vector<1x2x16x16x8xbf16>
    %70 = vector.shape_cast %69 : vector<1x2x16x16x8xbf16> to vector<2x16x16x8xbf16>
    %71 = vector.shape_cast %68 : vector<2x16x16x8xbf16> to vector<1x2x16x16x8xbf16>
    tpu.vector_store %arg9[%c2_53, %c0_54, %c1_55, %c0_56, %c0_57], %71 {strides = array<i32>} : memref<3x2x18x16x8xbf16, #tpu.memory_space<vmem>>, vector<1x2x16x16x8xbf16>,
    %c0_58 = arith.constant 0 : index
    %c0_59 = arith.constant 0 : index
    %c0_60 = arith.constant 0 : index
    %c0_61 = arith.constant 0 : index
    %c0_62 = arith.constant 0 : index
    %72 = vector.load %arg9[%c0_58, %c0_59, %c0_60, %c0_61, %c0_62] : memref<3x2x18x16x8xbf16, #tpu.memory_space<vmem>>, vector<1x2x16x16x8xbf16>
    %73 = vector.shape_cast %72 : vector<1x2x16x16x8xbf16> to vector<2x16x16x8xbf16>
    %74 = vector.shape_cast %73 : vector<2x16x16x8xbf16> to vector<512x8xbf16>
    %c0_63 = arith.constant 0 : index
    %c0_64 = arith.constant 0 : index
    %c0_65 = arith.constant 0 : index
    %c0_66 = arith.constant 0 : index
    %75 = vector.load %arg3[%c0_63, %c0_64, %c0_65, %c0_66] : memref<3x3x8x8xbf16, #tpu.memory_space<vmem>>, vector<1x1x8x8xbf16>
    %76 = vector.shape_cast %75 : vector<1x1x8x8xbf16> to vector<8x8xbf16>
    %cst_67 = arith.constant dense<0.000000e+00> : vector<512x8xf32>
    %77 = tpu.matmul %74, %76, %cst_67 {dimension_numbers = #tpu.dot_dimension_numbers<[1], [0], [0], [1], [0, 0, 1, 1], [], []>} : vector<512x8xbf16>, vector<8x8xbf16>, vector<512x8xf32> -> vector<512x8xf32>
    %c1_68 = arith.constant 1 : index
    %c0_69 = arith.constant 0 : index
    %c0_70 = arith.constant 0 : index
    %c0_71 = arith.constant 0 : index
    %c0_72 = arith.constant 0 : index
    %78 = vector.load %arg9[%c1_68, %c0_69, %c0_70, %c0_71, %c0_72] : memref<3x2x18x16x8xbf16, #tpu.memory_space<vmem>>, vector<1x2x16x16x8xbf16>
    %79 = vector.shape_cast %78 : vector<1x2x16x16x8xbf16> to vector<2x16x16x8xbf16>
    %80 = vector.shape_cast %79 : vector<2x16x16x8xbf16> to vector<512x8xbf16>
    %c0_73 = arith.constant 0 : index
    %c1_74 = arith.constant 1 : index
    %c0_75 = arith.constant 0 : index
    %c0_76 = arith.constant 0 : index
    %81 = vector.load %arg3[%c0_73, %c1_74, %c0_75, %c0_76] : memref<3x3x8x8xbf16, #tpu.memory_space<vmem>>, vector<1x1x8x8xbf16>
    %82 = vector.shape_cast %81 : vector<1x1x8x8xbf16> to vector<8x8xbf16>
    %cst_77 = arith.constant dense<0.000000e+00> : vector<512x8xf32>
    %83 = tpu.matmul %80, %82, %cst_77 {dimension_numbers = #tpu.dot_dimension_numbers<[1], [0], [0], [1], [0, 0, 1, 1], [], []>} : vector<512x8xbf16>, vector<8x8xbf16>, vector<512x8xf32> -> vector<512x8xf32>
    %84 = arith.addf %77, %83 : vector<512x8xf32>
    %c2_78 = arith.constant 2 : index
    %c0_79 = arith.constant 0 : index
    %c0_80 = arith.constant 0 : index
    %c0_81 = arith.constant 0 : index
    %c0_82 = arith.constant 0 : index
    %85 = vector.load %arg9[%c2_78, %c0_79, %c0_80, %c0_81, %c0_82] : memref<3x2x18x16x8xbf16, #tpu.memory_space<vmem>>, vector<1x2x16x16x8xbf16>
    %86 = vector.shape_cast %85 : vector<1x2x16x16x8xbf16> to vector<2x16x16x8xbf16>
    %87 = vector.shape_cast %86 : vector<2x16x16x8xbf16> to vector<512x8xbf16>
    %c0_83 = arith.constant 0 : index
    %c2_84 = arith.constant 2 : index
    %c0_85 = arith.constant 0 : index
    %c0_86 = arith.constant 0 : index
    %88 = vector.load %arg3[%c0_83, %c2_84, %c0_85, %c0_86] : memref<3x3x8x8xbf16, #tpu.memory_space<vmem>>, vector<1x1x8x8xbf16>
    %89 = vector.shape_cast %88 : vector<1x1x8x8xbf16> to vector<8x8xbf16>
    %cst_87 = arith.constant dense<0.000000e+00> : vector<512x8xf32>
    %90 = tpu.matmul %87, %89, %cst_87 {dimension_numbers = #tpu.dot_dimension_numbers<[1], [0], [0], [1], [0, 0, 1, 1], [], []>} : vector<512x8xbf16>, vector<8x8xbf16>, vector<512x8xf32> -> vector<512x8xf32>
    %91 = arith.addf %84, %90 : vector<512x8xf32>
    %c0_88 = arith.constant 0 : index
    %c0_89 = arith.constant 0 : index
    %c1_90 = arith.constant 1 : index
    %c0_91 = arith.constant 0 : index
    %c0_92 = arith.constant 0 : index
    %92 = vector.load %arg9[%c0_88, %c0_89, %c1_90, %c0_91, %c0_92] : memref<3x2x18x16x8xbf16, #tpu.memory_space<vmem>>, vector<1x2x16x16x8xbf16>
    %93 = vector.shape_cast %92 : vector<1x2x16x16x8xbf16> to vector<2x16x16x8xbf16>
    %94 = vector.shape_cast %93 : vector<2x16x16x8xbf16> to vector<512x8xbf16>
    %c1_93 = arith.constant 1 : index
    %c0_94 = arith.constant 0 : index
    %c0_95 = arith.constant 0 : index
    %c0_96 = arith.constant 0 : index
    %95 = vector.load %arg3[%c1_93, %c0_94, %c0_95, %c0_96] : memref<3x3x8x8xbf16, #tpu.memory_space<vmem>>, vector<1x1x8x8xbf16>
    %96 = vector.shape_cast %95 : vector<1x1x8x8xbf16> to vector<8x8xbf16>
    %cst_97 = arith.constant dense<0.000000e+00> : vector<512x8xf32>
    %97 = tpu.matmul %94, %96, %cst_97 {dimension_numbers = #tpu.dot_dimension_numbers<[1], [0], [0], [1], [0, 0, 1, 1], [], []>} : vector<512x8xbf16>, vector<8x8xbf16>, vector<512x8xf32> -> vector<512x8xf32>
    %98 = arith.addf %91, %97 : vector<512x8xf32>
    %c1_98 = arith.constant 1 : index
    %c0_99 = arith.constant 0 : index
    %c1_100 = arith.constant 1 : index
    %c0_101 = arith.constant 0 : index
    %c0_102 = arith.constant 0 : index
    %99 = vector.load %arg9[%c1_98, %c0_99, %c1_100, %c0_101, %c0_102] : memref<3x2x18x16x8xbf16, #tpu.memory_space<vmem>>, vector<1x2x16x16x8xbf16>
    %100 = vector.shape_cast %99 : vector<1x2x16x16x8xbf16> to vector<2x16x16x8xbf16>
    %101 = vector.shape_cast %100 : vector<2x16x16x8xbf16> to vector<512x8xbf16>
    %c1_103 = arith.constant 1 : index
    %c1_104 = arith.constant 1 : index
    %c0_105 = arith.constant 0 : index
    %c0_106 = arith.constant 0 : index
    %102 = vector.load %arg3[%c1_103, %c1_104, %c0_105, %c0_106] : memref<3x3x8x8xbf16, #tpu.memory_space<vmem>>, vector<1x1x8x8xbf16>
    %103 = vector.shape_cast %102 : vector<1x1x8x8xbf16> to vector<8x8xbf16>
    %cst_107 = arith.constant dense<0.000000e+00> : vector<512x8xf32>
    %104 = tpu.matmul %101, %103, %cst_107 {dimension_numbers = #tpu.dot_dimension_numbers<[1], [0], [0], [1], [0, 0, 1, 1], [], []>} : vector<512x8xbf16>, vector<8x8xbf16>, vector<512x8xf32> -> vector<512x8xf32>
    %105 = arith.addf %98, %104 : vector<512x8xf32>
    %c2_108 = arith.constant 2 : index
    %c0_109 = arith.constant 0 : index
    %c1_110 = arith.constant 1 : index
    %c0_111 = arith.constant 0 : index
    %c0_112 = arith.constant 0 : index
    %106 = vector.load %arg9[%c2_108, %c0_109, %c1_110, %c0_111, %c0_112] : memref<3x2x18x16x8xbf16, #tpu.memory_space<vmem>>, vector<1x2x16x16x8xbf16>
    %107 = vector.shape_cast %106 : vector<1x2x16x16x8xbf16> to vector<2x16x16x8xbf16>
    %108 = vector.shape_cast %107 : vector<2x16x16x8xbf16> to vector<512x8xbf16>
    %c1_113 = arith.constant 1 : index
    %c2_114 = arith.constant 2 : index
    %c0_115 = arith.constant 0 : index
    %c0_116 = arith.constant 0 : index
    %109 = vector.load %arg3[%c1_113, %c2_114, %c0_115, %c0_116] : memref<3x3x8x8xbf16, #tpu.memory_space<vmem>>, vector<1x1x8x8xbf16>
    %110 = vector.shape_cast %109 : vector<1x1x8x8xbf16> to vector<8x8xbf16>
    %cst_117 = arith.constant dense<0.000000e+00> : vector<512x8xf32>
    %111 = tpu.matmul %108, %110, %cst_117 {dimension_numbers = #tpu.dot_dimension_numbers<[1], [0], [0], [1], [0, 0, 1, 1], [], []>} : vector<512x8xbf16>, vector<8x8xbf16>, vector<512x8xf32> -> vector<512x8xf32>
    %112 = arith.addf %105, %111 : vector<512x8xf32>
    %c0_118 = arith.constant 0 : index
    %c0_119 = arith.constant 0 : index
    %c2_120 = arith.constant 2 : index
    %c0_121 = arith.constant 0 : index
    %c0_122 = arith.constant 0 : index
    %113 = vector.load %arg9[%c0_118, %c0_119, %c2_120, %c0_121, %c0_122] : memref<3x2x18x16x8xbf16, #tpu.memory_space<vmem>>, vector<1x2x16x16x8xbf16>
    %114 = vector.shape_cast %113 : vector<1x2x16x16x8xbf16> to vector<2x16x16x8xbf16>
    %115 = vector.shape_cast %114 : vector<2x16x16x8xbf16> to vector<512x8xbf16>
    %c2_123 = arith.constant 2 : index
    %c0_124 = arith.constant 0 : index
    %c0_125 = arith.constant 0 : index
    %c0_126 = arith.constant 0 : index
    %116 = vector.load %arg3[%c2_123, %c0_124, %c0_125, %c0_126] : memref<3x3x8x8xbf16, #tpu.memory_space<vmem>>, vector<1x1x8x8xbf16>
    %117 = vector.shape_cast %116 : vector<1x1x8x8xbf16> to vector<8x8xbf16>
    %cst_127 = arith.constant dense<0.000000e+00> : vector<512x8xf32>
    %118 = tpu.matmul %115, %117, %cst_127 {dimension_numbers = #tpu.dot_dimension_numbers<[1], [0], [0], [1], [0, 0, 1, 1], [], []>} : vector<512x8xbf16>, vector<8x8xbf16>, vector<512x8xf32> -> vector<512x8xf32>
    %119 = arith.addf %112, %118 : vector<512x8xf32>
    %c1_128 = arith.constant 1 : index
    %c0_129 = arith.constant 0 : index
    %c2_130 = arith.constant 2 : index
    %c0_131 = arith.constant 0 : index
    %c0_132 = arith.constant 0 : index
    %120 = vector.load %arg9[%c1_128, %c0_129, %c2_130, %c0_131, %c0_132] : memref<3x2x18x16x8xbf16, #tpu.memory_space<vmem>>, vector<1x2x16x16x8xbf16>
    %121 = vector.shape_cast %120 : vector<1x2x16x16x8xbf16> to vector<2x16x16x8xbf16>
    %122 = vector.shape_cast %121 : vector<2x16x16x8xbf16> to vector<512x8xbf16>
    %c2_133 = arith.constant 2 : index
    %c1_134 = arith.constant 1 : index
    %c0_135 = arith.constant 0 : index
    %c0_136 = arith.constant 0 : index
    %123 = vector.load %arg3[%c2_133, %c1_134, %c0_135, %c0_136] : memref<3x3x8x8xbf16, #tpu.memory_space<vmem>>, vector<1x1x8x8xbf16>
    %124 = vector.shape_cast %123 : vector<1x1x8x8xbf16> to vector<8x8xbf16>
    %cst_137 = arith.constant dense<0.000000e+00> : vector<512x8xf32>
    %125 = tpu.matmul %122, %124, %cst_137 {dimension_numbers = #tpu.dot_dimension_numbers<[1], [0], [0], [1], [0, 0, 1, 1], [], []>} : vector<512x8xbf16>, vector<8x8xbf16>, vector<512x8xf32> -> vector<512x8xf32>
    %126 = arith.addf %119, %125 : vector<512x8xf32>
    %c2_138 = arith.constant 2 : index
    %c0_139 = arith.constant 0 : index
    %c2_140 = arith.constant 2 : index
    %c0_141 = arith.constant 0 : index
    %c0_142 = arith.constant 0 : index
    %127 = vector.load %arg9[%c2_138, %c0_139, %c2_140, %c0_141, %c0_142] : memref<3x2x18x16x8xbf16, #tpu.memory_space<vmem>>, vector<1x2x16x16x8xbf16>
    %128 = vector.shape_cast %127 : vector<1x2x16x16x8xbf16> to vector<2x16x16x8xbf16>
    %129 = vector.shape_cast %128 : vector<2x16x16x8xbf16> to vector<512x8xbf16>
    %c2_143 = arith.constant 2 : index
    %c2_144 = arith.constant 2 : index
    %c0_145 = arith.constant 0 : index
    %c0_146 = arith.constant 0 : index
    %130 = vector.load %arg3[%c2_143, %c2_144, %c0_145, %c0_146] : memref<3x3x8x8xbf16, #tpu.memory_space<vmem>>, vector<1x1x8x8xbf16>
    %131 = vector.shape_cast %130 : vector<1x1x8x8xbf16> to vector<8x8xbf16>
    %cst_147 = arith.constant dense<0.000000e+00> : vector<512x8xf32>
    %132 = tpu.matmul %129, %131, %cst_147 {dimension_numbers = #tpu.dot_dimension_numbers<[1], [0], [0], [1], [0, 0, 1, 1], [], []>} : vector<512x8xbf16>, vector<8x8xbf16>, vector<512x8xf32> -> vector<512x8xf32>
    %133 = arith.addf %126, %132 : vector<512x8xf32>
    %c0_148 = arith.constant 0 : index
    %c0_149 = arith.constant 0 : index
    %134 = vector.load %arg6[%c0_148, %c0_149] : memref<1x8xf32, #tpu.memory_space<vmem>>, vector<1x8xf32>
    %135 = vector.broadcast %134 : vector<1x8xf32> to vector<512x8xf32>
    %136 = arith.addf %133, %135 : vector<512x8xf32>
    %cst_150 = arith.constant 0.000000e+00 : f32
    %137 = vector.broadcast %cst_150 : f32 to vector<512x8xf32>
    %138 = arith.maximumf %136, %137 : vector<512x8xf32>
    %139 = arith.truncf %138 : vector<512x8xf32> to vector<512x8xbf16>
    %c0_151 = arith.constant 0 : index
    %c0_152 = arith.constant 0 : index
    %140 = vector.load %arg4[%c0_151, %c0_152] : memref<8x32xbf16, #tpu.memory_space<vmem>>, vector<8x32xbf16>
    %cst_153 = arith.constant dense<0.000000e+00> : vector<512x32xf32>
    %141 = tpu.matmul %139, %140, %cst_153 {dimension_numbers = #tpu.dot_dimension_numbers<[1], [0], [0], [1], [0, 0, 1, 1], [], []>} : vector<512x8xbf16>, vector<8x32xbf16>, vector<512x32xf32> -> vector<512x32xf32>
    %c0_154 = arith.constant 0 : index
    %c0_155 = arith.constant 0 : index
    %142 = vector.load %arg7[%c0_154, %c0_155] : memref<1x32xf32, #tpu.memory_space<vmem>>, vector<1x32xf32>
    %143 = vector.broadcast %142 : vector<1x32xf32> to vector<512x32xf32>
    %144 = arith.addf %141, %143 : vector<512x32xf32>
    %c0_156 = arith.constant 0 : index
    %c0_157 = arith.constant 0 : index
    %c0_158 = arith.constant 0 : index
    %c0_159 = arith.constant 0 : index
    %145 = vector.load %arg1[%c0_156, %c0_157, %c0_158, %c0_159] : memref<2x16x16x32xf32, #tpu.memory_space<vmem>>, vector<2x16x16x32xf32>
    %146 = vector.shape_cast %145 : vector<2x16x16x32xf32> to vector<512x32xf32>
    %147 = arith.addf %144, %146 : vector<512x32xf32>
    %cst_160 = arith.constant 0.000000e+00 : f32
    %148 = vector.broadcast %cst_160 : f32 to vector<512x32xf32>
    %149 = arith.maximumf %147, %148 : vector<512x32xf32>
    %150 = vector.shape_cast %149 : vector<512x32xf32> to vector<2x16x16x32xf32>
    %c0_161 = arith.constant 0 : index
    %c0_162 = arith.constant 0 : index
    %c0_163 = arith.constant 0 : index
    %c0_164 = arith.constant 0 : index
    %151 = vector.load %arg8[%c0_161, %c0_162, %c0_163, %c0_164] : memref<2x16x16x32xf32, #tpu.memory_space<vmem>>, vector<2x16x16x32xf32>
    tpu.vector_store %arg8[%c0_161, %c0_162, %c0_163, %c0_164], %150 {strides = array<i32>} : memref<2x16x16x32xf32, #tpu.memory_space<vmem>>, vector<2x16x16x32xf32>,
    return
  }
  func.func @transform_0(%arg0: i32) -> (i32, i32, i32, i32) {
    %c0_i32 = arith.constant 0 : i32
    %c0_i32_0 = arith.constant 0 : i32
    %c0_i32_1 = arith.constant 0 : i32
    %c0_i32_2 = arith.constant 0 : i32
    return %arg0, %c0_i32, %c0_i32_0, %c0_i32_1 : i32, i32, i32, i32
  }
  func.func @transform_1(%arg0: i32) -> (i32, i32) {
    %c0_i32 = arith.constant 0 : i32
    %c0_i32_0 = arith.constant 0 : i32
    %c0_i32_1 = arith.constant 0 : i32
    return %c0_i32, %c0_i32_0 : i32, i32
  }
  func.func @transform_2(%arg0: i32) -> (i32, i32, i32, i32) {
    %c0_i32 = arith.constant 0 : i32
    %c0_i32_0 = arith.constant 0 : i32
    %c0_i32_1 = arith.constant 0 : i32
    %c0_i32_2 = arith.constant 0 : i32
    %c0_i32_3 = arith.constant 0 : i32
    return %c0_i32, %c0_i32_0, %c0_i32_1, %c0_i32_2 : i32, i32, i32, i32
  }
  func.func @transform_3(%arg0: i32) -> (i32, i32) {
    %c0_i32 = arith.constant 0 : i32
    %c0_i32_0 = arith.constant 0 : i32
    %c0_i32_1 = arith.constant 0 : i32
    return %c0_i32, %c0_i32_0 : i32, i32
  }
  func.func @transform_4(%arg0: i32) -> (i32, i32) {
    %c0_i32 = arith.constant 0 : i32
    %c0_i32_0 = arith.constant 0 : i32
    %c0_i32_1 = arith.constant 0 : i32
    return %c0_i32, %c0_i32_0 : i32, i32
  }
  func.func @transform_5(%arg0: i32) -> (i32, i32) {
    %c0_i32 = arith.constant 0 : i32
    %c0_i32_0 = arith.constant 0 : i32
    %c0_i32_1 = arith.constant 0 : i32
    return %c0_i32, %c0_i32_0 : i32, i32
  }
  func.func @transform_6(%arg0: i32) -> (i32, i32) {
    %c0_i32 = arith.constant 0 : i32
    %c0_i32_0 = arith.constant 0 : i32
    %c0_i32_1 = arith.constant 0 : i32
    return %c0_i32, %c0_i32_0 : i32, i32
  }
  func.func @transform_7(%arg0: i32) -> (i32, i32, i32, i32) {
    %c0_i32 = arith.constant 0 : i32
    %c0_i32_0 = arith.constant 0 : i32
    %c0_i32_1 = arith.constant 0 : i32
    %c0_i32_2 = arith.constant 0 : i32
    return %arg0, %c0_i32, %c0_i32_0, %c0_i32_1 : i32, i32, i32, i32
  }
}

module attributes {stable_mosaic.version = 11 : i64} {
  func.func @_bottleneck_kernel(%arg0: i32, %arg1: memref<2x16x16x32xf32, #tpu.memory_space<vmem>>, %arg2: memref<32x8xbf16, #tpu.memory_space<vmem>>, %arg3: memref<3x3x8x8xbf16, #tpu.memory_space<vmem>>, %arg4: memref<8x32xbf16, #tpu.memory_space<vmem>>, %arg5: memref<1x8xf32, #tpu.memory_space<vmem>>, %arg6: memref<1x8xf32, #tpu.memory_space<vmem>>, %arg7: memref<1x32xf32, #tpu.memory_space<vmem>>, %arg8: memref<2x16x16x32xf32, #tpu.memory_space<vmem>>, %arg9: memref<3x2x18x16x8xbf16, #tpu.memory_space<vmem>>) attributes {dimension_semantics = [#tpu.dimension_semantics<parallel>], iteration_bounds = array<i64: 2>, scalar_prefetch = 0 : i64, scratch_operands = 1 : i64, tpu.core_type = #tpu.core_type<tc>, window_params = [{transform_indices = @transform_0, window_bounds = array<i64: 2, 16, 16, 32>}, {pipeline_mode = #tpu.pipeline_mode<synchronous>, transform_indices = @transform_1, window_bounds = array<i64: 32, 8>}, {pipeline_mode = #tpu.pipeline_mode<synchronous>, transform_indices = @transform_2, window_bounds = array<i64: 3, 3, 8, 8>}, {pipeline_mode = #tpu.pipeline_mode<synchronous>, transform_indices = @transform_3, window_bounds = array<i64: 8, 32>}, {pipeline_mode = #tpu.pipeline_mode<synchronous>, transform_indices = @transform_4, window_bounds = array<i64: 1, 8>}, {pipeline_mode = #tpu.pipeline_mode<synchronous>, transform_indices = @transform_5, window_bounds = array<i64: 1, 8>}, {pipeline_mode = #tpu.pipeline_mode<synchronous>, transform_indices = @transform_6, window_bounds = array<i64: 1, 32>}, {transform_indices = @transform_7, window_bounds = array<i64: 2, 16, 16, 32>}]} {
    %c0 = arith.constant 0 : index
    %c0_0 = arith.constant 0 : index
    %c0_1 = arith.constant 0 : index
    %c0_2 = arith.constant 0 : index
    %0 = vector.load %arg1[%c0, %c0_0, %c0_1, %c0_2] : memref<2x16x16x32xf32, #tpu.memory_space<vmem>>, vector<2x16x16x32xf32>
    %1 = vector.shape_cast %0 : vector<2x16x16x32xf32> to vector<512x32xf32>
    %2 = arith.truncf %1 : vector<512x32xf32> to vector<512x32xbf16>
    %c0_3 = arith.constant 0 : index
    %c0_4 = arith.constant 0 : index
    %3 = vector.load %arg2[%c0_3, %c0_4] : memref<32x8xbf16, #tpu.memory_space<vmem>>, vector<32x8xbf16>
    %cst = arith.constant dense<0.000000e+00> : vector<512x8xf32>
    %4 = tpu.matmul %2, %3, %cst {dimension_numbers = #tpu.dot_dimension_numbers<[1], [0], [0], [1], [0, 0, 1, 1], [], []>} : vector<512x32xbf16>, vector<32x8xbf16>, vector<512x8xf32> -> vector<512x8xf32>
    %c0_5 = arith.constant 0 : index
    %c0_6 = arith.constant 0 : index
    %5 = vector.load %arg5[%c0_5, %c0_6] : memref<1x8xf32, #tpu.memory_space<vmem>>, vector<1x8xf32>
    %6 = vector.broadcast %5 : vector<1x8xf32> to vector<512x8xf32>
    %7 = arith.addf %4, %6 : vector<512x8xf32>
    %cst_7 = arith.constant 0.000000e+00 : f32
    %8 = vector.broadcast %cst_7 : f32 to vector<512x8xf32>
    %9 = arith.maximumf %7, %8 : vector<512x8xf32>
    %10 = tpu.iota {dimensions = array<i32: 2>} : vector<2x16x16x1xi32>
    %11 = vector.shape_cast %10 : vector<2x16x16x1xi32> to vector<512x1xi32>
    %c1_i32 = arith.constant 1 : i32
    %12 = tpu.dynamic_rotate %9 by %c1_i32 dim 0 : vector<512x8xf32>, i32 -> vector<512x8xf32>
    %c-1_i32 = arith.constant -1 : i32
    %13 = vector.broadcast %c-1_i32 : i32 to vector<512x1xi32>
    %14 = arith.addi %11, %13 : vector<512x1xi32>
    %c0_i32 = arith.constant 0 : i32
    %15 = vector.broadcast %c0_i32 : i32 to vector<512x1xi32>
    %16 = arith.cmpi sge, %14, %15 : vector<512x1xi32>
    %c-1_i32_8 = arith.constant -1 : i32
    %17 = vector.broadcast %c-1_i32_8 : i32 to vector<512x1xi32>
    %18 = arith.addi %11, %17 : vector<512x1xi32>
    %c16_i32 = arith.constant 16 : i32
    %19 = vector.broadcast %c16_i32 : i32 to vector<512x1xi32>
    %20 = arith.cmpi slt, %18, %19 : vector<512x1xi32>
    %21 = arith.andi %16, %20 : vector<512x1xi1>
    %cst_9 = arith.constant 0.000000e+00 : f32
    %22 = vector.broadcast %cst_9 : f32 to vector<512x8xf32>
    %23 = vector.shape_cast %21 : vector<512x1xi1> to vector<512x1xi1>
    %24 = vector.broadcast %23 : vector<512x1xi1> to vector<512x8xi1>
    %25 = arith.select %24, %12, %22 : vector<512x8xi1>, vector<512x8xf32>
    %26 = arith.truncf %25 : vector<512x8xf32> to vector<512x8xbf16>
    %27 = arith.truncf %9 : vector<512x8xf32> to vector<512x8xbf16>
    %c511_i32 = arith.constant 511 : i32
    %28 = tpu.dynamic_rotate %9 by %c511_i32 dim 0 : vector<512x8xf32>, i32 -> vector<512x8xf32>
    %c1_i32_10 = arith.constant 1 : i32
    %29 = vector.broadcast %c1_i32_10 : i32 to vector<512x1xi32>
    %30 = arith.addi %11, %29 : vector<512x1xi32>
    %c0_i32_11 = arith.constant 0 : i32
    %31 = vector.broadcast %c0_i32_11 : i32 to vector<512x1xi32>
    %32 = arith.cmpi sge, %30, %31 : vector<512x1xi32>
    %c1_i32_12 = arith.constant 1 : i32
    %33 = vector.broadcast %c1_i32_12 : i32 to vector<512x1xi32>
    %34 = arith.addi %11, %33 : vector<512x1xi32>
    %c16_i32_13 = arith.constant 16 : i32
    %35 = vector.broadcast %c16_i32_13 : i32 to vector<512x1xi32>
    %36 = arith.cmpi slt, %34, %35 : vector<512x1xi32>
    %37 = arith.andi %32, %36 : vector<512x1xi1>
    %cst_14 = arith.constant 0.000000e+00 : f32
    %38 = vector.broadcast %cst_14 : f32 to vector<512x8xf32>
    %39 = vector.shape_cast %37 : vector<512x1xi1> to vector<512x1xi1>
    %40 = vector.broadcast %39 : vector<512x1xi1> to vector<512x8xi1>
    %41 = arith.select %40, %28, %38 : vector<512x8xi1>, vector<512x8xf32>
    %42 = arith.truncf %41 : vector<512x8xf32> to vector<512x8xbf16>
    %cst_15 = arith.constant 0.000000e+00 : bf16
    %43 = vector.broadcast %cst_15 : bf16 to vector<2x1x16x8xbf16>
    %c0_16 = arith.constant 0 : index
    %c0_17 = arith.constant 0 : index
    %c0_18 = arith.constant 0 : index
    %c0_19 = arith.constant 0 : index
    %c0_20 = arith.constant 0 : index
    %44 = vector.load %arg9[%c0_16, %c0_17, %c0_18, %c0_19, %c0_20] : memref<3x2x18x16x8xbf16, #tpu.memory_space<vmem>>, vector<1x2x1x16x8xbf16>
    %45 = vector.shape_cast %44 : vector<1x2x1x16x8xbf16> to vector<2x1x16x8xbf16>
    %46 = vector.shape_cast %43 : vector<2x1x16x8xbf16> to vector<1x2x1x16x8xbf16>
    tpu.vector_store %arg9[%c0_16, %c0_17, %c0_18, %c0_19, %c0_20], %46 {strides = array<i32>} : memref<3x2x18x16x8xbf16, #tpu.memory_space<vmem>>, vector<1x2x1x16x8xbf16>,
    %c0_21 = arith.constant 0 : index
    %c0_22 = arith.constant 0 : index
    %c17 = arith.constant 17 : index
    %c0_23 = arith.constant 0 : index
    %c0_24 = arith.constant 0 : index
    %47 = vector.load %arg9[%c0_21, %c0_22, %c17, %c0_23, %c0_24] : memref<3x2x18x16x8xbf16, #tpu.memory_space<vmem>>, vector<1x2x1x16x8xbf16>
    %48 = vector.shape_cast %47 : vector<1x2x1x16x8xbf16> to vector<2x1x16x8xbf16>
    %49 = vector.shape_cast %43 : vector<2x1x16x8xbf16> to vector<1x2x1x16x8xbf16>
    tpu.vector_store %arg9[%c0_21, %c0_22, %c17, %c0_23, %c0_24], %49 {strides = array<i32>} : memref<3x2x18x16x8xbf16, #tpu.memory_space<vmem>>, vector<1x2x1x16x8xbf16>,
    %50 = vector.shape_cast %26 : vector<512x8xbf16> to vector<2x16x16x8xbf16>
    %c0_25 = arith.constant 0 : index
    %c0_26 = arith.constant 0 : index
    %c1 = arith.constant 1 : index
    %c0_27 = arith.constant 0 : index
    %c0_28 = arith.constant 0 : index
    %51 = vector.load %arg9[%c0_25, %c0_26, %c1, %c0_27, %c0_28] : memref<3x2x18x16x8xbf16, #tpu.memory_space<vmem>>, vector<1x2x16x16x8xbf16>
    %52 = vector.shape_cast %51 : vector<1x2x16x16x8xbf16> to vector<2x16x16x8xbf16>
    %53 = vector.shape_cast %50 : vector<2x16x16x8xbf16> to vector<1x2x16x16x8xbf16>
    tpu.vector_store %arg9[%c0_25, %c0_26, %c1, %c0_27, %c0_28], %53 {strides = array<i32>} : memref<3x2x18x16x8xbf16, #tpu.memory_space<vmem>>, vector<1x2x16x16x8xbf16>,
    %c1_29 = arith.constant 1 : index
    %c0_30 = arith.constant 0 : index
    %c0_31 = arith.constant 0 : index
    %c0_32 = arith.constant 0 : index
    %c0_33 = arith.constant 0 : index
    %54 = vector.load %arg9[%c1_29, %c0_30, %c0_31, %c0_32, %c0_33] : memref<3x2x18x16x8xbf16, #tpu.memory_space<vmem>>, vector<1x2x1x16x8xbf16>
    %55 = vector.shape_cast %54 : vector<1x2x1x16x8xbf16> to vector<2x1x16x8xbf16>
    %56 = vector.shape_cast %43 : vector<2x1x16x8xbf16> to vector<1x2x1x16x8xbf16>
    tpu.vector_store %arg9[%c1_29, %c0_30, %c0_31, %c0_32, %c0_33], %56 {strides = array<i32>} : memref<3x2x18x16x8xbf16, #tpu.memory_space<vmem>>, vector<1x2x1x16x8xbf16>,
    %c1_34 = arith.constant 1 : index
    %c0_35 = arith.constant 0 : index
    %c17_36 = arith.constant 17 : index
    %c0_37 = arith.constant 0 : index
    %c0_38 = arith.constant 0 : index
    %57 = vector.load %arg9[%c1_34, %c0_35, %c17_36, %c0_37, %c0_38] : memref<3x2x18x16x8xbf16, #tpu.memory_space<vmem>>, vector<1x2x1x16x8xbf16>
    %58 = vector.shape_cast %57 : vector<1x2x1x16x8xbf16> to vector<2x1x16x8xbf16>
    %59 = vector.shape_cast %43 : vector<2x1x16x8xbf16> to vector<1x2x1x16x8xbf16>
    tpu.vector_store %arg9[%c1_34, %c0_35, %c17_36, %c0_37, %c0_38], %59 {strides = array<i32>} : memref<3x2x18x16x8xbf16, #tpu.memory_space<vmem>>, vector<1x2x1x16x8xbf16>,
    %60 = vector.shape_cast %27 : vector<512x8xbf16> to vector<2x16x16x8xbf16>
    %c1_39 = arith.constant 1 : index
    %c0_40 = arith.constant 0 : index
    %c1_41 = arith.constant 1 : index
    %c0_42 = arith.constant 0 : index
    %c0_43 = arith.constant 0 : index
    %61 = vector.load %arg9[%c1_39, %c0_40, %c1_41, %c0_42, %c0_43] : memref<3x2x18x16x8xbf16, #tpu.memory_space<vmem>>, vector<1x2x16x16x8xbf16>
    %62 = vector.shape_cast %61 : vector<1x2x16x16x8xbf16> to vector<2x16x16x8xbf16>
    %63 = vector.shape_cast %60 : vector<2x16x16x8xbf16> to vector<1x2x16x16x8xbf16>
    tpu.vector_store %arg9[%c1_39, %c0_40, %c1_41, %c0_42, %c0_43], %63 {strides = array<i32>} : memref<3x2x18x16x8xbf16, #tpu.memory_space<vmem>>, vector<1x2x16x16x8xbf16>,
    %c2 = arith.constant 2 : index
    %c0_44 = arith.constant 0 : index
    %c0_45 = arith.constant 0 : index
    %c0_46 = arith.constant 0 : index
    %c0_47 = arith.constant 0 : index
    %64 = vector.load %arg9[%c2, %c0_44, %c0_45, %c0_46, %c0_47] : memref<3x2x18x16x8xbf16, #tpu.memory_space<vmem>>, vector<1x2x1x16x8xbf16>
    %65 = vector.shape_cast %64 : vector<1x2x1x16x8xbf16> to vector<2x1x16x8xbf16>
    %66 = vector.shape_cast %43 : vector<2x1x16x8xbf16> to vector<1x2x1x16x8xbf16>
    tpu.vector_store %arg9[%c2, %c0_44, %c0_45, %c0_46, %c0_47], %66 {strides = array<i32>} : memref<3x2x18x16x8xbf16, #tpu.memory_space<vmem>>, vector<1x2x1x16x8xbf16>,
    %c2_48 = arith.constant 2 : index
    %c0_49 = arith.constant 0 : index
    %c17_50 = arith.constant 17 : index
    %c0_51 = arith.constant 0 : index
    %c0_52 = arith.constant 0 : index
    %67 = vector.load %arg9[%c2_48, %c0_49, %c17_50, %c0_51, %c0_52] : memref<3x2x18x16x8xbf16, #tpu.memory_space<vmem>>, vector<1x2x1x16x8xbf16>
    %68 = vector.shape_cast %67 : vector<1x2x1x16x8xbf16> to vector<2x1x16x8xbf16>
    %69 = vector.shape_cast %43 : vector<2x1x16x8xbf16> to vector<1x2x1x16x8xbf16>
    tpu.vector_store %arg9[%c2_48, %c0_49, %c17_50, %c0_51, %c0_52], %69 {strides = array<i32>} : memref<3x2x18x16x8xbf16, #tpu.memory_space<vmem>>, vector<1x2x1x16x8xbf16>,
    %70 = vector.shape_cast %42 : vector<512x8xbf16> to vector<2x16x16x8xbf16>
    %c2_53 = arith.constant 2 : index
    %c0_54 = arith.constant 0 : index
    %c1_55 = arith.constant 1 : index
    %c0_56 = arith.constant 0 : index
    %c0_57 = arith.constant 0 : index
    %71 = vector.load %arg9[%c2_53, %c0_54, %c1_55, %c0_56, %c0_57] : memref<3x2x18x16x8xbf16, #tpu.memory_space<vmem>>, vector<1x2x16x16x8xbf16>
    %72 = vector.shape_cast %71 : vector<1x2x16x16x8xbf16> to vector<2x16x16x8xbf16>
    %73 = vector.shape_cast %70 : vector<2x16x16x8xbf16> to vector<1x2x16x16x8xbf16>
    tpu.vector_store %arg9[%c2_53, %c0_54, %c1_55, %c0_56, %c0_57], %73 {strides = array<i32>} : memref<3x2x18x16x8xbf16, #tpu.memory_space<vmem>>, vector<1x2x16x16x8xbf16>,
    %c0_58 = arith.constant 0 : index
    %c0_59 = arith.constant 0 : index
    %c0_60 = arith.constant 0 : index
    %c0_61 = arith.constant 0 : index
    %c0_62 = arith.constant 0 : index
    %74 = vector.load %arg9[%c0_58, %c0_59, %c0_60, %c0_61, %c0_62] : memref<3x2x18x16x8xbf16, #tpu.memory_space<vmem>>, vector<1x2x16x16x8xbf16>
    %75 = vector.shape_cast %74 : vector<1x2x16x16x8xbf16> to vector<2x16x16x8xbf16>
    %76 = vector.shape_cast %75 : vector<2x16x16x8xbf16> to vector<512x8xbf16>
    %c0_63 = arith.constant 0 : index
    %c0_64 = arith.constant 0 : index
    %c0_65 = arith.constant 0 : index
    %c0_66 = arith.constant 0 : index
    %77 = vector.load %arg3[%c0_63, %c0_64, %c0_65, %c0_66] : memref<3x3x8x8xbf16, #tpu.memory_space<vmem>>, vector<1x1x8x8xbf16>
    %78 = vector.shape_cast %77 : vector<1x1x8x8xbf16> to vector<8x8xbf16>
    %cst_67 = arith.constant dense<0.000000e+00> : vector<512x8xf32>
    %79 = tpu.matmul %76, %78, %cst_67 {dimension_numbers = #tpu.dot_dimension_numbers<[1], [0], [0], [1], [0, 0, 1, 1], [], []>} : vector<512x8xbf16>, vector<8x8xbf16>, vector<512x8xf32> -> vector<512x8xf32>
    %c1_68 = arith.constant 1 : index
    %c0_69 = arith.constant 0 : index
    %c0_70 = arith.constant 0 : index
    %c0_71 = arith.constant 0 : index
    %c0_72 = arith.constant 0 : index
    %80 = vector.load %arg9[%c1_68, %c0_69, %c0_70, %c0_71, %c0_72] : memref<3x2x18x16x8xbf16, #tpu.memory_space<vmem>>, vector<1x2x16x16x8xbf16>
    %81 = vector.shape_cast %80 : vector<1x2x16x16x8xbf16> to vector<2x16x16x8xbf16>
    %82 = vector.shape_cast %81 : vector<2x16x16x8xbf16> to vector<512x8xbf16>
    %c0_73 = arith.constant 0 : index
    %c1_74 = arith.constant 1 : index
    %c0_75 = arith.constant 0 : index
    %c0_76 = arith.constant 0 : index
    %83 = vector.load %arg3[%c0_73, %c1_74, %c0_75, %c0_76] : memref<3x3x8x8xbf16, #tpu.memory_space<vmem>>, vector<1x1x8x8xbf16>
    %84 = vector.shape_cast %83 : vector<1x1x8x8xbf16> to vector<8x8xbf16>
    %cst_77 = arith.constant dense<0.000000e+00> : vector<512x8xf32>
    %85 = tpu.matmul %82, %84, %cst_77 {dimension_numbers = #tpu.dot_dimension_numbers<[1], [0], [0], [1], [0, 0, 1, 1], [], []>} : vector<512x8xbf16>, vector<8x8xbf16>, vector<512x8xf32> -> vector<512x8xf32>
    %86 = arith.addf %79, %85 : vector<512x8xf32>
    %c2_78 = arith.constant 2 : index
    %c0_79 = arith.constant 0 : index
    %c0_80 = arith.constant 0 : index
    %c0_81 = arith.constant 0 : index
    %c0_82 = arith.constant 0 : index
    %87 = vector.load %arg9[%c2_78, %c0_79, %c0_80, %c0_81, %c0_82] : memref<3x2x18x16x8xbf16, #tpu.memory_space<vmem>>, vector<1x2x16x16x8xbf16>
    %88 = vector.shape_cast %87 : vector<1x2x16x16x8xbf16> to vector<2x16x16x8xbf16>
    %89 = vector.shape_cast %88 : vector<2x16x16x8xbf16> to vector<512x8xbf16>
    %c0_83 = arith.constant 0 : index
    %c2_84 = arith.constant 2 : index
    %c0_85 = arith.constant 0 : index
    %c0_86 = arith.constant 0 : index
    %90 = vector.load %arg3[%c0_83, %c2_84, %c0_85, %c0_86] : memref<3x3x8x8xbf16, #tpu.memory_space<vmem>>, vector<1x1x8x8xbf16>
    %91 = vector.shape_cast %90 : vector<1x1x8x8xbf16> to vector<8x8xbf16>
    %cst_87 = arith.constant dense<0.000000e+00> : vector<512x8xf32>
    %92 = tpu.matmul %89, %91, %cst_87 {dimension_numbers = #tpu.dot_dimension_numbers<[1], [0], [0], [1], [0, 0, 1, 1], [], []>} : vector<512x8xbf16>, vector<8x8xbf16>, vector<512x8xf32> -> vector<512x8xf32>
    %93 = arith.addf %86, %92 : vector<512x8xf32>
    %c0_88 = arith.constant 0 : index
    %c0_89 = arith.constant 0 : index
    %c1_90 = arith.constant 1 : index
    %c0_91 = arith.constant 0 : index
    %c0_92 = arith.constant 0 : index
    %94 = vector.load %arg9[%c0_88, %c0_89, %c1_90, %c0_91, %c0_92] : memref<3x2x18x16x8xbf16, #tpu.memory_space<vmem>>, vector<1x2x16x16x8xbf16>
    %95 = vector.shape_cast %94 : vector<1x2x16x16x8xbf16> to vector<2x16x16x8xbf16>
    %96 = vector.shape_cast %95 : vector<2x16x16x8xbf16> to vector<512x8xbf16>
    %c1_93 = arith.constant 1 : index
    %c0_94 = arith.constant 0 : index
    %c0_95 = arith.constant 0 : index
    %c0_96 = arith.constant 0 : index
    %97 = vector.load %arg3[%c1_93, %c0_94, %c0_95, %c0_96] : memref<3x3x8x8xbf16, #tpu.memory_space<vmem>>, vector<1x1x8x8xbf16>
    %98 = vector.shape_cast %97 : vector<1x1x8x8xbf16> to vector<8x8xbf16>
    %cst_97 = arith.constant dense<0.000000e+00> : vector<512x8xf32>
    %99 = tpu.matmul %96, %98, %cst_97 {dimension_numbers = #tpu.dot_dimension_numbers<[1], [0], [0], [1], [0, 0, 1, 1], [], []>} : vector<512x8xbf16>, vector<8x8xbf16>, vector<512x8xf32> -> vector<512x8xf32>
    %100 = arith.addf %93, %99 : vector<512x8xf32>
    %c1_98 = arith.constant 1 : index
    %c0_99 = arith.constant 0 : index
    %c1_100 = arith.constant 1 : index
    %c0_101 = arith.constant 0 : index
    %c0_102 = arith.constant 0 : index
    %101 = vector.load %arg9[%c1_98, %c0_99, %c1_100, %c0_101, %c0_102] : memref<3x2x18x16x8xbf16, #tpu.memory_space<vmem>>, vector<1x2x16x16x8xbf16>
    %102 = vector.shape_cast %101 : vector<1x2x16x16x8xbf16> to vector<2x16x16x8xbf16>
    %103 = vector.shape_cast %102 : vector<2x16x16x8xbf16> to vector<512x8xbf16>
    %c1_103 = arith.constant 1 : index
    %c1_104 = arith.constant 1 : index
    %c0_105 = arith.constant 0 : index
    %c0_106 = arith.constant 0 : index
    %104 = vector.load %arg3[%c1_103, %c1_104, %c0_105, %c0_106] : memref<3x3x8x8xbf16, #tpu.memory_space<vmem>>, vector<1x1x8x8xbf16>
    %105 = vector.shape_cast %104 : vector<1x1x8x8xbf16> to vector<8x8xbf16>
    %cst_107 = arith.constant dense<0.000000e+00> : vector<512x8xf32>
    %106 = tpu.matmul %103, %105, %cst_107 {dimension_numbers = #tpu.dot_dimension_numbers<[1], [0], [0], [1], [0, 0, 1, 1], [], []>} : vector<512x8xbf16>, vector<8x8xbf16>, vector<512x8xf32> -> vector<512x8xf32>
    %107 = arith.addf %100, %106 : vector<512x8xf32>
    %c2_108 = arith.constant 2 : index
    %c0_109 = arith.constant 0 : index
    %c1_110 = arith.constant 1 : index
    %c0_111 = arith.constant 0 : index
    %c0_112 = arith.constant 0 : index
    %108 = vector.load %arg9[%c2_108, %c0_109, %c1_110, %c0_111, %c0_112] : memref<3x2x18x16x8xbf16, #tpu.memory_space<vmem>>, vector<1x2x16x16x8xbf16>
    %109 = vector.shape_cast %108 : vector<1x2x16x16x8xbf16> to vector<2x16x16x8xbf16>
    %110 = vector.shape_cast %109 : vector<2x16x16x8xbf16> to vector<512x8xbf16>
    %c1_113 = arith.constant 1 : index
    %c2_114 = arith.constant 2 : index
    %c0_115 = arith.constant 0 : index
    %c0_116 = arith.constant 0 : index
    %111 = vector.load %arg3[%c1_113, %c2_114, %c0_115, %c0_116] : memref<3x3x8x8xbf16, #tpu.memory_space<vmem>>, vector<1x1x8x8xbf16>
    %112 = vector.shape_cast %111 : vector<1x1x8x8xbf16> to vector<8x8xbf16>
    %cst_117 = arith.constant dense<0.000000e+00> : vector<512x8xf32>
    %113 = tpu.matmul %110, %112, %cst_117 {dimension_numbers = #tpu.dot_dimension_numbers<[1], [0], [0], [1], [0, 0, 1, 1], [], []>} : vector<512x8xbf16>, vector<8x8xbf16>, vector<512x8xf32> -> vector<512x8xf32>
    %114 = arith.addf %107, %113 : vector<512x8xf32>
    %c0_118 = arith.constant 0 : index
    %c0_119 = arith.constant 0 : index
    %c2_120 = arith.constant 2 : index
    %c0_121 = arith.constant 0 : index
    %c0_122 = arith.constant 0 : index
    %115 = vector.load %arg9[%c0_118, %c0_119, %c2_120, %c0_121, %c0_122] : memref<3x2x18x16x8xbf16, #tpu.memory_space<vmem>>, vector<1x2x16x16x8xbf16>
    %116 = vector.shape_cast %115 : vector<1x2x16x16x8xbf16> to vector<2x16x16x8xbf16>
    %117 = vector.shape_cast %116 : vector<2x16x16x8xbf16> to vector<512x8xbf16>
    %c2_123 = arith.constant 2 : index
    %c0_124 = arith.constant 0 : index
    %c0_125 = arith.constant 0 : index
    %c0_126 = arith.constant 0 : index
    %118 = vector.load %arg3[%c2_123, %c0_124, %c0_125, %c0_126] : memref<3x3x8x8xbf16, #tpu.memory_space<vmem>>, vector<1x1x8x8xbf16>
    %119 = vector.shape_cast %118 : vector<1x1x8x8xbf16> to vector<8x8xbf16>
    %cst_127 = arith.constant dense<0.000000e+00> : vector<512x8xf32>
    %120 = tpu.matmul %117, %119, %cst_127 {dimension_numbers = #tpu.dot_dimension_numbers<[1], [0], [0], [1], [0, 0, 1, 1], [], []>} : vector<512x8xbf16>, vector<8x8xbf16>, vector<512x8xf32> -> vector<512x8xf32>
    %121 = arith.addf %114, %120 : vector<512x8xf32>
    %c1_128 = arith.constant 1 : index
    %c0_129 = arith.constant 0 : index
    %c2_130 = arith.constant 2 : index
    %c0_131 = arith.constant 0 : index
    %c0_132 = arith.constant 0 : index
    %122 = vector.load %arg9[%c1_128, %c0_129, %c2_130, %c0_131, %c0_132] : memref<3x2x18x16x8xbf16, #tpu.memory_space<vmem>>, vector<1x2x16x16x8xbf16>
    %123 = vector.shape_cast %122 : vector<1x2x16x16x8xbf16> to vector<2x16x16x8xbf16>
    %124 = vector.shape_cast %123 : vector<2x16x16x8xbf16> to vector<512x8xbf16>
    %c2_133 = arith.constant 2 : index
    %c1_134 = arith.constant 1 : index
    %c0_135 = arith.constant 0 : index
    %c0_136 = arith.constant 0 : index
    %125 = vector.load %arg3[%c2_133, %c1_134, %c0_135, %c0_136] : memref<3x3x8x8xbf16, #tpu.memory_space<vmem>>, vector<1x1x8x8xbf16>
    %126 = vector.shape_cast %125 : vector<1x1x8x8xbf16> to vector<8x8xbf16>
    %cst_137 = arith.constant dense<0.000000e+00> : vector<512x8xf32>
    %127 = tpu.matmul %124, %126, %cst_137 {dimension_numbers = #tpu.dot_dimension_numbers<[1], [0], [0], [1], [0, 0, 1, 1], [], []>} : vector<512x8xbf16>, vector<8x8xbf16>, vector<512x8xf32> -> vector<512x8xf32>
    %128 = arith.addf %121, %127 : vector<512x8xf32>
    %c2_138 = arith.constant 2 : index
    %c0_139 = arith.constant 0 : index
    %c2_140 = arith.constant 2 : index
    %c0_141 = arith.constant 0 : index
    %c0_142 = arith.constant 0 : index
    %129 = vector.load %arg9[%c2_138, %c0_139, %c2_140, %c0_141, %c0_142] : memref<3x2x18x16x8xbf16, #tpu.memory_space<vmem>>, vector<1x2x16x16x8xbf16>
    %130 = vector.shape_cast %129 : vector<1x2x16x16x8xbf16> to vector<2x16x16x8xbf16>
    %131 = vector.shape_cast %130 : vector<2x16x16x8xbf16> to vector<512x8xbf16>
    %c2_143 = arith.constant 2 : index
    %c2_144 = arith.constant 2 : index
    %c0_145 = arith.constant 0 : index
    %c0_146 = arith.constant 0 : index
    %132 = vector.load %arg3[%c2_143, %c2_144, %c0_145, %c0_146] : memref<3x3x8x8xbf16, #tpu.memory_space<vmem>>, vector<1x1x8x8xbf16>
    %133 = vector.shape_cast %132 : vector<1x1x8x8xbf16> to vector<8x8xbf16>
    %cst_147 = arith.constant dense<0.000000e+00> : vector<512x8xf32>
    %134 = tpu.matmul %131, %133, %cst_147 {dimension_numbers = #tpu.dot_dimension_numbers<[1], [0], [0], [1], [0, 0, 1, 1], [], []>} : vector<512x8xbf16>, vector<8x8xbf16>, vector<512x8xf32> -> vector<512x8xf32>
    %135 = arith.addf %128, %134 : vector<512x8xf32>
    %c0_148 = arith.constant 0 : index
    %c0_149 = arith.constant 0 : index
    %136 = vector.load %arg6[%c0_148, %c0_149] : memref<1x8xf32, #tpu.memory_space<vmem>>, vector<1x8xf32>
    %137 = vector.broadcast %136 : vector<1x8xf32> to vector<512x8xf32>
    %138 = arith.addf %135, %137 : vector<512x8xf32>
    %cst_150 = arith.constant 0.000000e+00 : f32
    %139 = vector.broadcast %cst_150 : f32 to vector<512x8xf32>
    %140 = arith.maximumf %138, %139 : vector<512x8xf32>
    %141 = arith.truncf %140 : vector<512x8xf32> to vector<512x8xbf16>
    %c0_151 = arith.constant 0 : index
    %c0_152 = arith.constant 0 : index
    %142 = vector.load %arg4[%c0_151, %c0_152] : memref<8x32xbf16, #tpu.memory_space<vmem>>, vector<8x32xbf16>
    %cst_153 = arith.constant dense<0.000000e+00> : vector<512x32xf32>
    %143 = tpu.matmul %141, %142, %cst_153 {dimension_numbers = #tpu.dot_dimension_numbers<[1], [0], [0], [1], [0, 0, 1, 1], [], []>} : vector<512x8xbf16>, vector<8x32xbf16>, vector<512x32xf32> -> vector<512x32xf32>
    %c0_154 = arith.constant 0 : index
    %c0_155 = arith.constant 0 : index
    %144 = vector.load %arg7[%c0_154, %c0_155] : memref<1x32xf32, #tpu.memory_space<vmem>>, vector<1x32xf32>
    %145 = vector.broadcast %144 : vector<1x32xf32> to vector<512x32xf32>
    %146 = arith.addf %143, %145 : vector<512x32xf32>
    %c0_156 = arith.constant 0 : index
    %c0_157 = arith.constant 0 : index
    %c0_158 = arith.constant 0 : index
    %c0_159 = arith.constant 0 : index
    %147 = vector.load %arg1[%c0_156, %c0_157, %c0_158, %c0_159] : memref<2x16x16x32xf32, #tpu.memory_space<vmem>>, vector<2x16x16x32xf32>
    %148 = vector.shape_cast %147 : vector<2x16x16x32xf32> to vector<512x32xf32>
    %149 = arith.addf %146, %148 : vector<512x32xf32>
    %cst_160 = arith.constant 0.000000e+00 : f32
    %150 = vector.broadcast %cst_160 : f32 to vector<512x32xf32>
    %151 = arith.maximumf %149, %150 : vector<512x32xf32>
    %152 = vector.shape_cast %151 : vector<512x32xf32> to vector<2x16x16x32xf32>
    %c0_161 = arith.constant 0 : index
    %c0_162 = arith.constant 0 : index
    %c0_163 = arith.constant 0 : index
    %c0_164 = arith.constant 0 : index
    %153 = vector.load %arg8[%c0_161, %c0_162, %c0_163, %c0_164] : memref<2x16x16x32xf32, #tpu.memory_space<vmem>>, vector<2x16x16x32xf32>
    tpu.vector_store %arg8[%c0_161, %c0_162, %c0_163, %c0_164], %152 {strides = array<i32>} : memref<2x16x16x32xf32, #tpu.memory_space<vmem>>, vector<2x16x16x32xf32>,
    return
  }
  func.func @transform_0(%arg0: i32) -> (i32, i32, i32, i32) {
    %c0_i32 = arith.constant 0 : i32
    %c0_i32_0 = arith.constant 0 : i32
    %c0_i32_1 = arith.constant 0 : i32
    %c0_i32_2 = arith.constant 0 : i32
    return %arg0, %c0_i32, %c0_i32_0, %c0_i32_1 : i32, i32, i32, i32
  }
  func.func @transform_1(%arg0: i32) -> (i32, i32) {
    %c0_i32 = arith.constant 0 : i32
    %c0_i32_0 = arith.constant 0 : i32
    %c0_i32_1 = arith.constant 0 : i32
    return %c0_i32, %c0_i32_0 : i32, i32
  }
  func.func @transform_2(%arg0: i32) -> (i32, i32, i32, i32) {
    %c0_i32 = arith.constant 0 : i32
    %c0_i32_0 = arith.constant 0 : i32
    %c0_i32_1 = arith.constant 0 : i32
    %c0_i32_2 = arith.constant 0 : i32
    %c0_i32_3 = arith.constant 0 : i32
    return %c0_i32, %c0_i32_0, %c0_i32_1, %c0_i32_2 : i32, i32, i32, i32
  }
  func.func @transform_3(%arg0: i32) -> (i32, i32) {
    %c0_i32 = arith.constant 0 : i32
    %c0_i32_0 = arith.constant 0 : i32
    %c0_i32_1 = arith.constant 0 : i32
    return %c0_i32, %c0_i32_0 : i32, i32
  }
  func.func @transform_4(%arg0: i32) -> (i32, i32) {
    %c0_i32 = arith.constant 0 : i32
    %c0_i32_0 = arith.constant 0 : i32
    %c0_i32_1 = arith.constant 0 : i32
    return %c0_i32, %c0_i32_0 : i32, i32
  }
  func.func @transform_5(%arg0: i32) -> (i32, i32) {
    %c0_i32 = arith.constant 0 : i32
    %c0_i32_0 = arith.constant 0 : i32
    %c0_i32_1 = arith.constant 0 : i32
    return %c0_i32, %c0_i32_0 : i32, i32
  }
  func.func @transform_6(%arg0: i32) -> (i32, i32) {
    %c0_i32 = arith.constant 0 : i32
    %c0_i32_0 = arith.constant 0 : i32
    %c0_i32_1 = arith.constant 0 : i32
    return %c0_i32, %c0_i32_0 : i32, i32
  }
  func.func @transform_7(%arg0: i32) -> (i32, i32, i32, i32) {
    %c0_i32 = arith.constant 0 : i32
    %c0_i32_0 = arith.constant 0 : i32
    %c0_i32_1 = arith.constant 0 : i32
    %c0_i32_2 = arith.constant 0 : i32
    return %arg0, %c0_i32, %c0_i32_0, %c0_i32_1 : i32, i32, i32, i32
  }
}

</mosaic_0001>

<bundles_post_ra>
// kernel: tpu_custom_call.1
= control target key start
LH: loop header
LB: loop body
LE: loop exit
PB: predicated region body
PF: predicated region fallthrough
CT: control target
= control target key end

     0   :  { %12 = vsyncpa [#allocation4], 0  ;;  %s11280_s0 = inlined_call_operand.hbm [shape: f32[4,16,16,32], index: 0, kind: input, shape index: {}]   ;;  %s11281_s1 = inlined_call_operand.vmem [shape: bf16[32,8], index: 1, kind: input, shape index: {}]   ;;  %s11282_s2 = inlined_call_operand.hbm [shape: bf16[3,3,8,8], index: 2, kind: input, shape index: {}]   ;;  %s11283_s3 = inlined_call_operand.vmem [shape: bf16[8,32], index: 3, kind: input, shape index: {}]   ;;  %s11284_s4 = inlined_call_operand.vmem [shape: f32[1,8], index: 4, kind: input, shape index: {}]   ;;  %s11285_s5 = inlined_call_operand.vmem [shape: f32[1,8], index: 5, kind: input, shape index: {}]   ;;  %s11286_s6 = inlined_call_operand.vmem [shape: f32[1,32], index: 6, kind: input, shape index: {}]   ;;  %s11287_s7 = inlined_call_operand.hbm [shape: f32[4,16,16,32], index: 7, kind: output, shape index: {}]  }
   0x1   :  { %14 = vsyncpa [#allocation4 + $0x1], 0 }
   0x2   :  { %15 = vsyncpa [#allocation7], 0 }
   0x3   :  { %16 = vsyncpa [#allocation5], 0 }
   0x4   :  { %18 = vsyncpa [#allocation5 + $0x1], 0  ;;  %s8922_s24 = smov 0   ;;  %s8924_s25 = smov 0  }
   0x5   :  { %s8926_s26 = smov 0   ;;  %s8928_s27 = smov 0  }
   0x6 LB: > { %s8943_s28 = sadd.s32 4294967295, %s8870_s27   ;;  %s6677_s29 = sadd.s32 4294967294, %s8870_s27   ;;  %s8870_s27 = sphi %s8928_s27, %s11379_s27   ;;  %s8866_s26 = sphi %s8926_s26, %s11378_s26   ;;  %s8862_s25 = sphi %s8924_s25, %s11377_s25   ;;  %s8858_s24 = sphi %s8922_s24, %s11376_s24  }
   0x7   : > { %p44_p0 = scmp.ne.s32.totalorder %s8862_s25, %s8858_s24  ;;  %p11288_p1 = scmp.eq.s32.totalorder %s8943_s28, 0 }
   0x8   : > { %p200_p3 = scmp.eq.s32.totalorder %s6677_s29, 1  ;;  %p6678_p5 = scmp.ge.s32.totalorder %s8870_s27, 1 }
   0x9   : > { %p8952_p4 = por %p11288_p1, %p44_p0  ;;  %p207_p7 = scmp.lt.s32.totalorder %s8870_s27, 3 }
   0xa   : > { %p8957_p6 = por %p200_p3, %p44_p0  ;;  %s8872_s10 = smov [#allocation6]  }
   0xb   : > { %s11301_s30 = scalar_select %p8952_p4, 1, 0 }
   0xc   : > { %s11302_s8 = scalar_select %p8957_p6, 1, 0 }
   0xd   : > { %p8962_p8 = pnand %p6678_p5, %p207_p7  ;;  %s222_s11 = sshll.u32 %s8872_s10, 4  ;;  %s8966_s11 = int_to_ptr.vmem [resolvable:$true] %s222_s11 }
   0xe   : > { %s8978_s13 = sadd.s32 1, %s8870_s27   ;;  %s31_s14 = sadd.s32 1, %s8866_s26 }
   0xf   : > { %s11303_s9 = scalar_select %p8962_p8, 1, 0 }
  0x10   : > { %p8681_p9 = pneg %p8962_p8  ;;  %s28_s15 = ssub.s32 %s8870_s27, %s8978_s13 }
  0x11   : > { %s8742_s18 = scalar_lea.hbm %s11282_s2, 576 }
  0x12   : > { %p8973_p11 = pnand %p8681_p9, %p11288_p1  ;;  %p8743_p12 = scmp.ne.s32.totalorder %s11282_s2, %s8742_s18 }
  0x13   : > { %p8749_p5 = scmp.lt.u32.totalorder %s8742_s18, %s11282_s2 }
  0x14   : > { %p8744_p13 = pneg %p8973_p11 }
  0x16   : > { %p8745_p0 = pnand %p8744_p13, %p8743_p12 }
  0x18   : > { %p8746_p3 = pneg %p8745_p0 }
  0x1a   : > { %p8751_p7 = pnand %p8749_p5, %p8746_p3 }
  0x1c   : > { %8754 = shalt.err (!%p8751_p7)
}
  0x1d   : > { %s8755_s23 = scalar_lea.vmem %s8966_s11, 576  ;;  %p8763_p2 = scmp.lt.s32.totalorder %s8966_s11, %s8966_s11 }
  0x1e   : > { %p8756_p9 = scmp.ne.s32.totalorder %s8966_s11, %s8755_s23  ;;  %p8764_p6 = scmp.lt.s32.totalorder %s8755_s23, %s8755_s23 }
  0x20   : > { %p8758_p10 = pnand %p8756_p9, %p8744_p13  ;;  %p8765_p4 = por %p8764_p6, %p8763_p2 }
  0x22   : > { %p8759_p1 = pneg %p8758_p10 }
  0x24   : > { %p8766_p8 = pnand %p8765_p4, %p8759_p1 }
  0x26   : > { %8769 = shalt.err (!%p8766_p8)
}
  0x27   : > { %s8873_s29 = smov 64   ;;  %s8874_s10 = smov 4  }
  0x28   : > { %8684 = dma.hbm_to_vmem [thread:$0]  (!%p8973_p11), %s11282_s2, 576, %s8966_s11, [#allocation7], %s8873_s29, %s8873_s29, %s8874_s10  }
  0x29   : > { %p29_p2 = scmp.eq.s32.totalorder %s28_s15, 0  ;;  %p38_p1 = scmp.ne.s32.totalorder %s8866_s26, %s8862_s25 }
  0x2a   : > { %p39_p4 = scmp.eq.s32.totalorder %s8870_s27, 0  ;;  %p8694_p6 = scmp.lt.s32.totalorder %s8870_s27, 2 }
  0x2b   : > { %s9009_s18 = scalar_select %p29_p2, %s8866_s26, %s31_s14  }
  0x2c   : > { %p40_p8 = por %p39_p4, %p38_p1  ;;  %p11305_p10 = scmp.eq.s32.totalorder %s8943_s28, 1 }
  0x2d   : > { %s248_s20 = sand.u32 1, %s8866_s26   ;;  %s7053_s21 = sshll.u32 %s8870_s27, 13 }
  0x2e   : > { %p9013_p12 = por %p11305_p10, %p38_p1  ;;  %s6681_s22 = sshll.u32 %s248_s20, 9 }
  0x2f   : > { %s9022_s16 = scalar_lea.hbm %s11280_s0, %s7053_s21  ;;  %s252_s11 = scalar_lea.vmem [#allocation3], %s6681_s22 }
  0x30   : > { %s260_s14 = sshll.u32 %s252_s11, 4  ;;  %p9024_p11 = pnand %p8694_p6, %p40_p8  ;;  %s9028_s14 = int_to_ptr.vmem [resolvable:$true] %s260_s14 }
  0x31   : > { %s9030_s29 = scalar_lea.sflag [#allocation4], %s248_s20  ;;  %s8770_s10 = scalar_lea.hbm %s9022_s16, 8192 }
  0x32   : > { %p8771_p13 = scmp.ne.s32.totalorder %s9022_s16, %s8770_s10  ;;  %p8772_p0 = pneg %p9024_p11 }
  0x33   : > { %s8775_s22 = scalar_lea.hbm %s11280_s0, 16384  ;;  %p8776_p7 = scmp.lt.u32.totalorder %s9022_s16, %s11280_s0 }
  0x34   : > { %p8773_p3 = pnand %p8772_p0, %p8771_p13  ;;  %p8777_p9 = scmp.lt.u32.totalorder %s8775_s22, %s8770_s10 }
  0x35   : > { %p8779_p1 = scmp.lt.u32.totalorder %s8770_s10, %s9022_s16 }
  0x36   : > { %p8774_p5 = pneg %p8773_p3  ;;  %p8778_p2 = por %p8777_p9, %p8776_p7 }
  0x38   : > { %p8780_p4 = por %p8779_p1, %p8778_p2 }
  0x3a   : > { %p8781_p6 = pnand %p8780_p4, %p8774_p5 }
  0x3c   : > { %8784 = shalt.err (!%p8781_p6)
}
  0x3d   : > { %s8785_s20 = scalar_lea.vmem %s9028_s14, 8192  ;;  %s8875_s11 = smov [#allocation3]  }
  0x3e   : > { %p8786_p8 = scmp.ne.s32.totalorder %s9028_s14, %s8785_s20  ;;  %s8790_s17 = sshll.u32 %s8875_s11, 4  ;;  %s8791_s17 = int_to_ptr.vmem [resolvable:$false] %s8790_s17 }
  0x3f   : > { %s8792_s21 = scalar_lea.vmem %s8791_s17, 16384  ;;  %p8793_p3 = scmp.lt.s32.totalorder %s9028_s14, %s8791_s17 }
  0x40   : > { %p8788_p10 = pnand %p8786_p8, %p8772_p0  ;;  %p8794_p7 = scmp.lt.s32.totalorder %s8792_s21, %s8785_s20 }
  0x42   : > { %p8789_p13 = pneg %p8788_p10  ;;  %p8795_p9 = por %p8794_p7, %p8793_p3 }
  0x44   : > { %p8796_p2 = pnand %p8795_p9, %p8789_p13 }
  0x46   : > { %8799 = shalt.err (!%p8796_p2)
}
  0x47   : > { %s8876_s10 = smov 128   ;;  %s8877_s22 = smov 8  }
  0x48   : > { %8688 = dma.hbm_to_vmem [thread:$0]  (!%p9024_p11), %s9022_s16, 8192, %s9028_s14, %s9030_s29, %s8876_s10, %s8876_s10, %s8877_s22  }
  0x49   : > { %p11308_p0 = scmp.ne.s32.totalorder %s11303_s9, 0 }
  0x4b   : > { %272 = sbr.rel (%p11308_p0) target bundleno = 1565 (0x61d), region = 48 }
  0x52   : > { %s9061_s12 = sand.u32 1, %s8862_s25   ;;  %p11309_p5 = scmp.ne.s32.totalorder %s11301_s30, 0 }
  0x53   : > { %s6686_s23 = sshll.u32 %s9061_s12, 9  ;;  %s275_s20 = scalar_lea.sflag [#allocation4], %s9061_s12 }
  0x54   : > { %s9067_s11 = scalar_lea.vmem [#allocation3], %s6686_s23 }
  0x55   : > { %8845 = dma.done.wait (%p11309_p5), %s275_s20, 8192  }
  0x56   : > { %8847 = vsyncadd (%p11309_p5), %s275_s20, 4294959104  ;;  %p11310_p11 = scmp.eq.s32.totalorder %s8943_s28, 0 }
  0x58   : > { %8849 = dma.done.wait (%p11310_p11), [#allocation7], 576   ;;  %p11311_p1 = pmov %p11310_p11 }
  0x59   : > { %v8737_v0 = vld [vmem:[%s11281_s1] sm:$0xff]   ;;  %v8738_v1 = vld [vmem:[%s11281_s1 + $0x8] sm:$0xff]   ;;  %vm435_vm0 = vcmask 261120   ;;  %v318_v5 = vld [vmem:[%s9067_s11 + $0x10] sm:$0xff]  ;;  %vm1394_vm1 = vcmask 64512   ;;  %vm1674_vm2 = vcmask 1043456  }
  0x5a   : > { %8851 = vsyncadd (%p11311_p1), [#allocation7], 4294966720  ;;  %7420 = vmatprep.subr.bf16.mxu0 %v8737_v0  ;;  %v316_v2 = vld [vmem:[%s9067_s11] sm:$0xff]  ;;  %v317_v3 = vld [vmem:[%s9067_s11 + $0x8] sm:$0xff]  ;;  %s10979_s15 = scalar_lea.vmem [#allocation8], %s6686_s23  ;;  %s7055_s23 = sshll.u32 %s8943_s28, 13 }
  0x5b   : > { %7421 = vmatpush3.bf16.msra.mxu0 %v8737_v0  ;;  %v380_v4 = vpack.c.bf16 %v317_v3, %v316_v2  ;;  %v319_v6 = vld [vmem:[%s9067_s11 + $0x18] sm:$0xff]  ;;  %v320_v7 = vld [vmem:[%s9067_s11 + $0x20] sm:$0xff]  ;;  %v321_v8 = vld [vmem:[%s9067_s11 + $0x28] sm:$0xff]  ;;  %s6594_s30 = sshll.u32 %s10979_s15, 4  ;;  %s11228_s21 = scalar_lea.hbm %s11287_s7, %s7055_s23  ;;  %s11230_s30 = int_to_ptr.vmem [resolvable:$true] %s6594_s30 }
  0x5c   : > { %7422 = vmatprep.subr.bf16.mxu0 %v8738_v1  ;;  %v381_v9 = vpack.c.bf16 %v319_v6, %v318_v5  ;;  %v382_v10 = vpack.c.bf16 %v321_v8, %v320_v7  ;;  %v322_v11 = vld [vmem:[%s9067_s11 + $0x30] sm:$0xff]  ;;  %v323_v12 = vld [vmem:[%s9067_s11 + $0x38] sm:$0xff]  ;;  %v324_v13 = vld [vmem:[%s9067_s11 + $0x40] sm:$0xff]  ;;  %s6580_s28 = scalar_lea.sflag [#allocation5], %s9061_s12  ;;  %s8879_s10 = smov [#allocation8]  }
  0x5d   : > { %7424 = vmatprep.mubr.msk.bf16.mxu0 %vm435_vm0, %v380_v4  ;;  %v325_v14 = vld [vmem:[%s9067_s11 + $0x48] sm:$0xff]  ;;  %v383_v15 = vpack.c.bf16 %v323_v12, %v322_v11  ;;  %v326_v17 = vld [vmem:[%s9067_s11 + $0x50] sm:$0xff]  ;;  %v327_v18 = vld [vmem:[%s9067_s11 + $0x58] sm:$0xff]  ;;  %s8804_s22 = sshll.u32 %s8879_s10, 4  ;;  %s8805_s22 = int_to_ptr.vmem [resolvable:$false] %s8804_s22 }
  0x5e   : > { %v384_v16 = vpack.c.bf16 %v325_v14, %v324_v13  ;;  %v328_v19 = vld [vmem:[%s9067_s11 + $0x60] sm:$0xff]  ;;  %v329_v20 = vld [vmem:[%s9067_s11 + $0x68] sm:$0xff]  ;;  %v385_v21 = vpack.c.bf16 %v327_v18, %v326_v17  ;;  %v330_v23 = vld [vmem:[%s9067_s11 + $0x70] sm:$0xff]  ;;  %s8806_s20 = scalar_lea.vmem %s8805_s22, 16384  ;;  %p8807_p10 = scmp.lt.s32.totalorder %s11230_s30, %s8805_s22 }
  0x5f   : > { %7423 = vmatpush3.bf16.msra.mxu0 %v8738_v1  ;;  %v386_v22 = vpack.c.bf16 %v329_v20, %v328_v19  ;;  %v331_v24 = vld [vmem:[%s9067_s11 + $0x78] sm:$0xff]  ;;  %v332_v25 = vld [vmem:[%s9067_s11 + $0x80] sm:$0xff]  ;;  %v333_v26 = vld [vmem:[%s9067_s11 + $0x88] sm:$0xff]  ;;  %v8878_v19 = vmov 0  }
  0x60   : > { %v387_v27 = vpack.c.bf16 %v331_v24, %v330_v23  ;;  %v388_v28 = vpack.c.bf16 %v333_v26, %v332_v25  ;;  %v334_v29 = vld [vmem:[%s9067_s11 + $0x90] sm:$0xff]  ;;  %v335_v30 = vld [vmem:[%s9067_s11 + $0x98] sm:$0xff]  ;;  %v336_v31 = vld [vmem:[%s9067_s11 + $0xa0] sm:$0xff]  ;;  %1434 = vst.msk [vmem:[#allocation2 + $0x120] sm:$0xff] %vm1394_vm1, %v8878_v19 }
  0x61   : > { %v337_v32 = vld [vmem:[%s9067_s11 + $0xa8] sm:$0xff]  ;;  %v389_v33 = vpack.c.bf16 %v335_v30, %v334_v29  ;;  %v338_v35 = vld [vmem:[%s9067_s11 + $0xb0] sm:$0xff]  ;;  %v339_v36 = vld [vmem:[%s9067_s11 + $0xb8] sm:$0xff]  ;;  %1395 = vst.msk [vmem:[#allocation2] sm:$0xff] %vm1394_vm1, %v8878_v19 }
  0x62   : > { %7425 = vmatmul.mubr.msk.bf16.vlgmr.msra.gmra.mrb[0].mxu0 %vm435_vm0, %v381_v9  ;;  %v390_v34 = vpack.c.bf16 %v337_v32, %v336_v31  ;;  %v340_v37 = vld [vmem:[%s9067_s11 + $0xc0] sm:$0xff]  ;;  %v341_v38 = vld [vmem:[%s9067_s11 + $0xc8] sm:$0xff]  ;;  %v391_v39 = vpack.c.bf16 %v339_v36, %v338_v35  ;;  %v342_v41 = vld [vmem:[%s9067_s11 + $0xd0] sm:$0xff]  ;;  %1396 = vst.msk [vmem:[#allocation2 + $0x90] sm:$0xff] %vm1394_vm1, %v8878_v19 }
  0x63   : > { %7428 = vmatprep.mubr.msk.bf16.mxu0 %vm435_vm0, %v382_v10  ;;  %v392_v40 = vpack.c.bf16 %v341_v38, %v340_v37  ;;  %v343_v42 = vld [vmem:[%s9067_s11 + $0xd8] sm:$0xff]  ;;  %v344_v43 = vld [vmem:[%s9067_s11 + $0xe0] sm:$0xff]  ;;  %v345_v44 = vld [vmem:[%s9067_s11 + $0xe8] sm:$0xff]  ;;  %1398 = vst.msk [vmem:[#allocation2 + $0x88] sm:$0xff] %vm1394_vm1, %v8878_v19 }
  0x64   : > { %v393_v45 = vpack.c.bf16 %v343_v42, %v342_v41  ;;  %v394_v46 = vpack.c.bf16 %v345_v44, %v344_v43  ;;  %v346_v47 = vld [vmem:[%s9067_s11 + $0xf0] sm:$0xff]  ;;  %v347_v48 = vld [vmem:[%s9067_s11 + $0xf8] sm:$0xff]  ;;  %v348_v49 = vld [vmem:[%s9067_s11 + $0x100] sm:$0xff]  ;;  %1399 = vst.msk [vmem:[#allocation2 + $0x118] sm:$0xff] %vm1394_vm1, %v8878_v19  ;;  %v885_v41 = vlaneseq }
  0x65   : > { %v349_v50 = vld [vmem:[%s9067_s11 + $0x108] sm:$0xff]  ;;  %v395_v51 = vpack.c.bf16 %v347_v48, %v346_v47  ;;  %v350_v53 = vld [vmem:[%s9067_s11 + $0x110] sm:$0xff]  ;;  %v351_v54 = vld [vmem:[%s9067_s11 + $0x118] sm:$0xff]  ;;  %1435 = vst.msk [vmem:[#allocation2 + $0x1b0] sm:$0xff] %vm1394_vm1, %v8878_v19 }
  0x66   : > { %v396_v52 = vpack.c.bf16 %v349_v50, %v348_v49  ;;  %v352_v55 = vld [vmem:[%s9067_s11 + $0x120] sm:$0xff]  ;;  %v353_v56 = vld [vmem:[%s9067_s11 + $0x128] sm:$0xff]  ;;  %v397_v57 = vpack.c.bf16 %v351_v54, %v350_v53  ;;  %v354_v59 = vld [vmem:[%s9067_s11 + $0x130] sm:$0xff]  ;;  %1437 = vst.msk [vmem:[#allocation2 + $0x1a8] sm:$0xff] %vm1394_vm1, %v8878_v19  ;;  %v9203_v42 = vshrl.u32 %v885_v41, 7 }
  0x67   : > { %v398_v58 = vpack.c.bf16 %v353_v56, %v352_v55  ;;  %v355_v60 = vld [vmem:[%s9067_s11 + $0x138] sm:$0xff]  ;;  %v356_v61 = vld [vmem:[%s9067_s11 + $0x140] sm:$0xff]  ;;  %v357_v62 = vld [vmem:[%s9067_s11 + $0x148] sm:$0xff]  ;;  %1438 = vst.msk [vmem:[#allocation2 + $0x238] sm:$0xff] %vm1394_vm1, %v8878_v19 }
  0x68   : > { %v399_v63 = vpack.c.bf16 %v355_v60, %v354_v59  ;;  %v400_v0 = vpack.c.bf16 %v357_v62, %v356_v61  ;;  %v358_v1 = vld [vmem:[%s9067_s11 + $0x150] sm:$0xff]  ;;  %v359_v2 = vld [vmem:[%s9067_s11 + $0x158] sm:$0xff]  ;;  %v360_v3 = vld [vmem:[%s9067_s11 + $0x160] sm:$0xff]  ;;  %1473 = vst.msk [vmem:[#allocation2 + $0x240] sm:$0xff] %vm1394_vm1, %v8878_v19  ;;  %v887_v44 = vadd.s32 8, %v9203_v42  ;;  %v9213_v48 = vadd.s32 4294967295, %v9203_v42 }
  0x69   : > { %v361_v4 = vld [vmem:[%s9067_s11 + $0x168] sm:$0xff]  ;;  %v401_v5 = vpack.c.bf16 %v359_v2, %v358_v1  ;;  %v362_v7 = vld [vmem:[%s9067_s11 + $0x170] sm:$0xff]  ;;  %v363_v8 = vld [vmem:[%s9067_s11 + $0x178] sm:$0xff]  ;;  %1474 = vst.msk [vmem:[#allocation2 + $0x2d0] sm:$0xff] %vm1394_vm1, %v8878_v19  ;;  %vm952_vm3 = vcmp.lt.s32.totalorder %v9203_v42, 1  ;;  %vm1221_vm4 = vcmp.lt.s32.totalorder %v9203_v42, 7 }
  0x6a   : > { %7429 = vmatmul.mubr.msk.bf16.gmra.mrb[4].mxu0 %vm435_vm0, %v383_v15  ;;  %v402_v6 = vpack.c.bf16 %v361_v4, %v360_v3  ;;  %v364_v9 = vld [vmem:[%s9067_s11 + $0x180] sm:$0xff]  ;;  %v365_v10 = vld [vmem:[%s9067_s11 + $0x188] sm:$0xff]  ;;  %v403_v11 = vpack.c.bf16 %v363_v8, %v362_v7  ;;  %v366_v13 = vld [vmem:[%s9067_s11 + $0x190] sm:$0xff]  ;;  %1476 = vst.msk [vmem:[#allocation2 + $0x2c8] sm:$0xff] %vm1394_vm1, %v8878_v19  ;;  %vm1019_vm5 = vcmp.ge.s32.totalorder %v9213_v48, 0 }
  0x6b   : > { %7432 = vmatprep.mubr.msk.bf16.mxu0 %vm435_vm0, %v384_v16  ;;  %v404_v12 = vpack.c.bf16 %v365_v10, %v364_v9  ;;  %v367_v14 = vld [vmem:[%s9067_s11 + $0x198] sm:$0xff]  ;;  %v368_v15 = vld [vmem:[%s9067_s11 + $0x1a0] sm:$0xff]  ;;  %v369_v16 = vld [vmem:[%s9067_s11 + $0x1a8] sm:$0xff]  ;;  %1477 = vst.msk [vmem:[#allocation2 + $0x358] sm:$0xff] %vm1394_vm1, %v8878_v19 }
  0x6c   : > { %v405_v17 = vpack.c.bf16 %v367_v14, %v366_v13  ;;  %v406_v18 = vpack.c.bf16 %v369_v16, %v368_v15  ;;  %v370_v20 = vld [vmem:[%s9067_s11 + $0x1b0] sm:$0xff]  ;;  %v373_v23 = vld [vmem:[%s9067_s11 + $0x1c8] sm:$0xff]  ;;  %v1577_v24 = vld [vmem:[#allocation6 + $0x4] sm:$0xf] }
  0x6d   : > { %8662 = vmatprep.subr.msk.bf16.mxu0 %vm1674_vm2, %v1577_v24  ;;  %v1676_v25 = vsel %vm1674_vm2, %v1577_v24, 0  ;;  %v375_v29 = vld [vmem:[%s9067_s11 + $0x1d8] sm:$0xff]  ;;  %v376_v30 = vld [vmem:[%s9067_s11 + $0x1e0] sm:$0xff]  ;;  %v377_v31 = vld [vmem:[%s9067_s11 + $0x1e8] sm:$0xff] }
  0x6e   : > { %7489 = vmatpush3.bf16.msra.mxu0 %v1676_v25  ;;  %v379_v35 = vld [vmem:[%s9067_s11 + $0x1f8] sm:$0xff]  ;;  %v1544_v37 = vld [vmem:[#allocation2 + $0x120] sm:$0xff]  ;;  %v2874_v38 = vld [vmem:[#allocation6 + $0xc] sm:$0xf] }
  0x6f   : > { %8666 = vmatprep.subr.msk.bf16.mxu1 %vm1674_vm2, %v2874_v38  ;;  %v9208_v43 = vld [vmem:[%s11284_s4] ss:$0 sm:$0xff] }
  0x70   : > { %v1511_v42 = vld [vmem:[#allocation2] sm:$0xff] }
  0x72   : > { %7433 = vmatmul.mubr.msk.bf16.gmra.mrb[8].mxu0 %vm435_vm0, %v385_v21  ;;  %v371_v21 = vld [vmem:[%s9067_s11 + $0x1b8] sm:$0xff] }
  0x73   : > { %7436 = vmatprep.mubr.msk.bf16.mxu0 %vm435_vm0, %v386_v22  ;;  %v372_v22 = vld [vmem:[%s9067_s11 + $0x1c0] sm:$0xff]  ;;  %v407_v26 = vpack.c.bf16 %v371_v21, %v370_v20 }
  0x7a   : > { %7437 = vmatmul.mubr.msk.bf16.gmra.mrb[12].mxu0 %vm435_vm0, %v387_v27  ;;  %v408_v27 = vpack.c.bf16 %v373_v23, %v372_v22 }
  0x7b   : > { %7440 = vmatprep.mubr.msk.bf16.mxu0 %vm435_vm0, %v388_v28  ;;  %v374_v28 = vld [vmem:[%s9067_s11 + $0x1d0] sm:$0xff] }
  0x7c   : > { %v409_v32 = vpack.c.bf16 %v375_v29, %v374_v28 }
  0x82   : > { %7441 = vmatmul.mubr.msk.bf16.gmra.mrb[16].mxu0 %vm435_vm0, %v389_v33  ;;  %v410_v33 = vpack.c.bf16 %v377_v31, %v376_v30 }
  0x83   : > { %7444 = vmatprep.mubr.msk.bf16.mxu0 %vm435_vm0, %v390_v34  ;;  %v378_v34 = vld [vmem:[%s9067_s11 + $0x1f0] sm:$0xff] }
  0x84   : > { %v411_v36 = vpack.c.bf16 %v379_v35, %v378_v34 }
  0x8a   : > { %7445 = vmatmul.mubr.msk.bf16.gmra.mrb[20].mxu0 %vm435_vm0, %v391_v39  ;;  %v9196_v39 = vsel %vm1674_vm2, %v2874_v38, 0 }
  0x8b   : > { %7448 = vmatprep.mubr.msk.bf16.mxu0 %vm435_vm0, %v392_v40  ;;  %8149 = vmatpush3.bf16.msra.mxu1 %v9196_v39  ;;  %v9199_v40 = vld [vmem:[#allocation6 + $0x10] sm:$0xf] }
  0x8c   : > { %8667 = vmatprep.subr.msk.bf16.mxu1 %vm1674_vm2, %v9199_v40 }
  0x92   : > { %7449 = vmatmul.mubr.msk.bf16.gmra.mrb[24].mxu0 %vm435_vm0, %v393_v45 }
  0x93   : > { %7452 = vmatprep.mubr.msk.bf16.mxu0 %vm435_vm0, %v394_v46 }
  0x9a   : > { %7453 = vmatmul.mubr.msk.bf16.gmra.mrb[28].mxu0 %vm435_vm0, %v395_v51  ;;  %v9216_v51 = vadd.s32 1, %v887_v44 }
  0x9b   : > { %7456 = vmatprep.mubr.msk.bf16.mxu0 %vm435_vm0, %v396_v52 }
  0x9c   : > { %vm1291_vm6 = vcmp.lt.s32.totalorder %v9216_v51, 16  ;;  %v2388_v51 = vld [vmem:[#allocation6 + $0x8] sm:$0xf] }
  0xa2   : > { %7457 = vmatmul.mubr.msk.bf16.gmra.mrb[32].mxu0 %vm435_vm0, %v397_v57 }
  0xa3   : > { %7460 = vmatprep.mubr.msk.bf16.mxu0 %vm435_vm0, %v398_v58 }
  0xaa   : > { %7461 = vmatmul.mubr.msk.bf16.gmra.mrb[36].mxu0 %vm435_vm0, %v399_v63 }
  0xab   : > { %7464 = vmatprep.mubr.msk.bf16.mxu0 %vm435_vm0, %v400_v0 }
  0xb2   : > { %7465 = vmatmul.mubr.msk.bf16.gmra.mrb[40].mxu0 %vm435_vm0, %v401_v5 }
  0xb3   : > { %7468 = vmatprep.mubr.msk.bf16.mxu0 %vm435_vm0, %v402_v6 }
  0xba   : > { %7469 = vmatmul.mubr.msk.bf16.gmra.mrb[44].mxu0 %vm435_vm0, %v403_v11 }
  0xbb   : > { %7472 = vmatprep.mubr.msk.bf16.mxu0 %vm435_vm0, %v404_v12 }
  0xc2   : > { %7473 = vmatmul.mubr.msk.bf16.gmra.mrb[48].mxu0 %vm435_vm0, %v405_v17 }
  0xc3   : > { %7476 = vmatprep.mubr.msk.bf16.mxu0 %vm435_vm0, %v406_v18 }
  0xca   : > { %7477 = vmatmul.mubr.msk.bf16.gmra.mrb[52].mxu0 %vm435_vm0, %v407_v26 }
  0xcb   : > { %7480 = vmatprep.mubr.msk.bf16.mxu0 %vm435_vm0, %v408_v27 }
  0xd2   : > { %7481 = vmatmul.mubr.msk.bf16.gmra.mrb[56].mxu0 %vm435_vm0, %v409_v32 }
  0xd3   : > { %7484 = vmatprep.mubr.msk.bf16.mxu0 %vm435_vm0, %v410_v33 }
  0xda   : > { %7485 = vmatmul.mubr.msk.bf16.gmra.mrb[60].mxu0 %vm435_vm0, %v411_v36 }
  0xdb   : > { %7490 = vmatprep.mubr.msk.bf16.mxu0 %vm1394_vm1, %v1544_v37 }
 0x135   : > { %v7426_v45 = vpop.f32.mrb[0].mxu0 }
 0x136   : > { %v575_v46 = vadd.f32 %v7426_v45, %v9208_v43  ;;  %v566_v47 = vpop.f32.mrb[1].mxu0 }
 0x137   : > { %v567_v49 = vadd.f32 %v9208_v43, %v566_v47  ;;  %v7427_v50 = vpop.f32.mrb[2].mxu0 }
 0x138   : > { %v823_v52 = vmax.f32 %v575_v46, 0.0  ;;  %v578_v53 = vadd.f32 %v7427_v50, %v9208_v43  ;;  %v569_v54 = vpop.f32.mrb[3].mxu0 }
 0x139   : > { %v9219_v55 = vmax.f32 %v567_v49, 0.0  ;;  %v570_v56 = vadd.f32 %v9208_v43, %v569_v54 }
 0x13a   : > { %v824_v57 = vmax.f32 %v578_v53, 0.0  ;;  %v890_v58 = vrot.slane %v823_v52, 7  ;;  %v1159_v59 = vrot.slane %v823_v52, 1 }
 0x13b   : > { %v822_v60 = vmax.f32 %v570_v56, 0.0  ;;  %v888_v61 = vrot.slane %v9219_v55, 7  ;;  %v1157_v1 = vrot.slane %v9219_v55, 1 }
 0x13c   : > { %v891_v62 = vrot.slane %v824_v57, 7  ;;  %v1126_v63 = vpack.c.bf16 %v824_v57, %v823_v52  ;;  %v1160_v0 = vrot.slane %v824_v57, 1 }
 0x13d   : > { %v889_v2 = vrot.slane %v822_v60, 7  ;;  %v1125_v3 = vpack.c.bf16 %v822_v60, %v9219_v55  ;;  %v1158_v4 = vrot.slane %v822_v60, 1  ;;  %v7430_v5 = vpop.f32.mrb[4].mxu0 }
 0x13e   : > { %v1013_v6 = vsel %vm952_vm3, %v890_v58, %v891_v62  ;;  %v1282_v7 = vsel %vm1221_vm4, %v1159_v59, %v1160_v0  ;;  %1441 = vst.msk [vmem:[#allocation2 + $0x130] sm:$0xff] %vm1394_vm1, %v1126_v63  ;;  %v591_v8 = vadd.f32 %v7430_v5, %v9208_v43  ;;  %v582_v9 = vpop.f32.mrb[5].mxu0 }
 0x13f   : > { %v1014_v10 = vsel %vm952_vm3, %v889_v2, %v890_v58  ;;  %v9241_v11 = vsel %vm952_vm3, %v888_v61, %v889_v2  ;;  %v1283_v12 = vsel %vm1221_vm4, %v1158_v4, %v1159_v59  ;;  %v1284_v13 = vsel %vm1221_vm4, %v1157_v1, %v1158_v4  ;;  %1440 = vst.msk [vmem:[#allocation2 + $0x128] sm:$0xff] %vm1394_vm1, %v1125_v3  ;;  %v7431_v14 = vpop.f32.mrb[6].mxu0 }
 0x140   : > { %v1031_v15 = vsel %vm1019_vm5, %v1014_v10, 0.0  ;;  %v1299_v16 = vsel %vm1291_vm6, %v1283_v12, 0.0  ;;  %v827_v17 = vmax.f32 %v591_v8, 0.0  ;;  %v583_v18 = vadd.f32 %v9208_v43, %v582_v9  ;;  %v585_v19 = vpop.f32.mrb[7].mxu0 }
 0x141   : > { %v1094_v20 = vpack.c.bf16 %v1013_v6, %v1031_v15  ;;  %v1362_v21 = vpack.c.bf16 %v1299_v16, %v1284_v13  ;;  %v594_v22 = vadd.f32 %v7431_v14, %v9208_v43  ;;  %v586_v23 = vadd.f32 %v9208_v43, %v585_v19 }
 0x142   : > { %v825_v24 = vmax.f32 %v583_v18, 0.0  ;;  %v894_v27 = vrot.slane %v827_v17, 7  ;;  %v1163_v28 = vrot.slane %v827_v17, 1 }
 0x143   : > { %1402 = vst.msk [vmem:[#allocation2 + $0x10] sm:$0xff] %vm1394_vm1, %v1094_v20  ;;  %1479 = vst.msk [vmem:[#allocation2 + $0x248] sm:$0xff] %vm1394_vm1, %v1362_v21  ;;  %v9259_v25 = vmax.f32 %v594_v22, 0.0  ;;  %v826_v26 = vmax.f32 %v586_v23, 0.0 }
 0x144   : > { %v892_v29 = vrot.slane %v825_v24, 7  ;;  %v1161_v30 = vrot.slane %v825_v24, 1 }
 0x145   : > { %v895_v31 = vrot.slane %v9259_v25, 7  ;;  %v1128_v32 = vpack.c.bf16 %v9259_v25, %v827_v17  ;;  %v1164_v33 = vrot.slane %v9259_v25, 1  ;;  %v893_v34 = vrot.slane %v826_v26, 7  ;;  %v7434_v35 = vpop.f32.mrb[8].mxu0  ;;  %v1546_v53 = vld [vmem:[#allocation2 + $0x130] sm:$0xff] }
 0x146   : > { %v1012_v36 = vsel %vm952_vm3, %v891_v62, %v892_v29  ;;  %v1281_v37 = vsel %vm1221_vm4, %v1160_v0, %v1161_v30  ;;  %v1127_v38 = vpack.c.bf16 %v826_v26, %v825_v24  ;;  %v1162_v41 = vrot.slane %v826_v26, 1  ;;  %v598_v44 = vpop.f32.mrb[9].mxu0  ;;  %v1545_v45 = vld [vmem:[#allocation2 + $0x128] sm:$0xff] }
 0x147   : > { %v1033_v46 = vsel %vm1019_vm5, %v1012_v36, 0.0  ;;  %v1301_v47 = vsel %vm1291_vm6, %v1281_v37, 0.0  ;;  %v1009_v49 = vsel %vm952_vm3, %v894_v27, %v895_v31  ;;  %v9276_v50 = vsel %vm1221_vm4, %v1163_v28, %v1164_v33  ;;  %1443 = vst.msk [vmem:[#allocation2 + $0x140] sm:$0xff] %vm1394_vm1, %v1128_v32  ;;  %v7435_v52 = vpop.f32.mrb[10].mxu0  ;;  %7491 = vmatmul.mubr.msk.bf16.vlgmr.msra.gmra.mrb[64].mxu0 %vm1394_vm1, %v1545_v45  ;;  %v1543_v32 = vld [vmem:[#allocation6] sm:$0xf] }
 0x148   : > { %v1363_v54 = vpack.c.bf16 %v1301_v47, %v1282_v7  ;;  %v1010_v56 = vsel %vm952_vm3, %v893_v34, %v894_v27  ;;  %v1011_v57 = vsel %vm952_vm3, %v892_v29, %v893_v34  ;;  %v1279_v58 = vsel %vm1221_vm4, %v1162_v41, %v1163_v28  ;;  %1442 = vst.msk [vmem:[#allocation2 + $0x138] sm:$0xff] %vm1394_vm1, %v1127_v38  ;;  %v601_v59 = vpop.f32.mrb[11].mxu0 }
 0x149   : > { %7494 = vmatprep.mubr.msk.bf16.mxu0 %vm1394_vm1, %v1546_v53  ;;  %v1035_v60 = vsel %vm1019_vm5, %v1010_v56, 0.0  ;;  %v1095_v62 = vpack.c.bf16 %v1011_v57, %v1033_v46  ;;  %v1280_v63 = vsel %vm1221_vm4, %v1161_v30, %v1162_v41  ;;  %v1303_v0 = vsel %vm1291_vm6, %v1279_v58, 0.0  ;;  %8663 = vmatprep.subr.msk.bf16.mxu0 %vm1674_vm2, %v1543_v32 }
 0x14a   : > { %1480 = vst.msk [vmem:[#allocation2 + $0x250] sm:$0xff] %vm1394_vm1, %v1363_v54  ;;  %v1096_v2 = vpack.c.bf16 %v1009_v49, %v1035_v60  ;;  %v1364_v3 = vpack.c.bf16 %v1303_v0, %v1280_v63  ;;  %v607_v4 = vadd.f32 %v7434_v35, %v9208_v43  ;;  %v599_v5 = vadd.f32 %v9208_v43, %v598_v44 }
 0x14b   : > { %1403 = vst.msk [vmem:[#allocation2 + $0x18] sm:$0xff] %vm1394_vm1, %v1095_v62  ;;  %v610_v6 = vadd.f32 %v7435_v52, %v9208_v43  ;;  %v602_v7 = vadd.f32 %v9208_v43, %v601_v59  ;;  %v2064_v58 = vsel %vm1674_vm2, %v1543_v32, 0  ;;  %v9352_v63 = vsel %vm1674_vm2, %v9199_v40, 0 }
 0x14c   : > { %1404 = vst.msk [vmem:[#allocation2 + $0x20] sm:$0xff] %vm1394_vm1, %v1096_v2  ;;  %1481 = vst.msk [vmem:[#allocation2 + $0x258] sm:$0xff] %vm1394_vm1, %v1364_v3  ;;  %v831_v8 = vmax.f32 %v607_v4, 0.0  ;;  %v829_v9 = vmax.f32 %v599_v5, 0.0  ;;  %7555 = vmatpush3.bf16.msra.mxu0 %v2064_v58 }
 0x14d   : > { %v9302_v10 = vmax.f32 %v610_v6, 0.0  ;;  %v830_v12 = vmax.f32 %v602_v7, 0.0  ;;  %v7438_v13 = vpop.f32.mrb[12].mxu0  ;;  %8664 = vmatprep.subr.msk.bf16.mxu0 %vm1674_vm2, %v2388_v51 }
 0x14e   : > { %v898_v14 = vrot.slane %v831_v8, 7  ;;  %v1167_v15 = vrot.slane %v831_v8, 1  ;;  %v896_v16 = vrot.slane %v829_v9, 7  ;;  %v1165_v17 = vrot.slane %v829_v9, 1  ;;  %v614_v18 = vpop.f32.mrb[13].mxu0  ;;  %v1548_v30 = vld [vmem:[#allocation2 + $0x140] sm:$0xff] }
 0x14f   : > { %v899_v19 = vrot.slane %v9302_v10, 7  ;;  %v1130_v20 = vpack.c.bf16 %v9302_v10, %v831_v8  ;;  %v1168_v21 = vrot.slane %v9302_v10, 1  ;;  %v897_v22 = vrot.slane %v830_v12, 7  ;;  %v7439_v23 = vpop.f32.mrb[14].mxu0  ;;  %v1547_v24 = vld [vmem:[#allocation2 + $0x138] sm:$0xff] }
 0x150   : > { %v1008_v25 = vsel %vm952_vm3, %v895_v31, %v896_v16  ;;  %v1277_v26 = vsel %vm1221_vm4, %v1164_v33, %v1165_v17  ;;  %v1129_v27 = vpack.c.bf16 %v830_v12, %v829_v9  ;;  %v1166_v28 = vrot.slane %v830_v12, 1  ;;  %7495 = vmatmul.mubr.msk.bf16.gmra.mrb[68].mxu0 %vm1394_vm1, %v1547_v24  ;;  %v617_v29 = vpop.f32.mrb[15].mxu0 }
 0x151   : > { %v1037_v34 = vsel %vm1019_vm5, %v1008_v25, 0.0  ;;  %v1305_v35 = vsel %vm1291_vm6, %v1277_v26, 0.0  ;;  %v1005_v31 = vsel %vm952_vm3, %v898_v14, %v899_v19  ;;  %v9322_v33 = vsel %vm1221_vm4, %v1167_v15, %v1168_v21  ;;  %1445 = vst.msk [vmem:[#allocation2 + $0x150] sm:$0xff] %vm1394_vm1, %v1130_v20  ;;  %7498 = vmatprep.mubr.msk.bf16.mxu0 %vm1394_vm1, %v1548_v30 }
 0x152   : > { %v1365_v36 = vpack.c.bf16 %v1305_v35, %v9276_v50  ;;  %v1006_v37 = vsel %vm952_vm3, %v897_v22, %v898_v14  ;;  %v1007_v38 = vsel %vm952_vm3, %v896_v16, %v897_v22  ;;  %v1275_v41 = vsel %vm1221_vm4, %v1166_v28, %v1167_v15  ;;  %1444 = vst.msk [vmem:[#allocation2 + $0x148] sm:$0xff] %vm1394_vm1, %v1129_v27 }
 0x153   : > { %v1039_v44 = vsel %vm1019_vm5, %v1006_v37, 0.0  ;;  %v1097_v45 = vpack.c.bf16 %v1007_v38, %v1037_v34  ;;  %v1276_v46 = vsel %vm1221_vm4, %v1165_v17, %v1166_v28  ;;  %v1307_v47 = vsel %vm1291_vm6, %v1275_v41, 0.0 }
 0x154   : > { %1482 = vst.msk [vmem:[#allocation2 + $0x260] sm:$0xff] %vm1394_vm1, %v1365_v36  ;;  %v1098_v49 = vpack.c.bf16 %v1005_v31, %v1039_v44  ;;  %v1366_v50 = vpack.c.bf16 %v1307_v47, %v1276_v46  ;;  %v623_v52 = vadd.f32 %v7438_v13, %v9208_v43  ;;  %v615_v53 = vadd.f32 %v9208_v43, %v614_v18 }
 0x155   : > { %1405 = vst.msk [vmem:[#allocation2 + $0x28] sm:$0xff] %vm1394_vm1, %v1097_v45  ;;  %v626_v54 = vadd.f32 %v7439_v23, %v9208_v43  ;;  %v618_v56 = vadd.f32 %v9208_v43, %v617_v29  ;;  %v7442_v57 = vpop.f32.mrb[16].mxu0 }
 0x156   : > { %1406 = vst.msk [vmem:[#allocation2 + $0x30] sm:$0xff] %vm1394_vm1, %v1098_v49  ;;  %1483 = vst.msk [vmem:[#allocation2 + $0x268] sm:$0xff] %vm1394_vm1, %v1366_v50  ;;  %v835_v59 = vmax.f32 %v623_v52, 0.0  ;;  %v833_v60 = vmax.f32 %v615_v53, 0.0  ;;  %v630_v62 = vpop.f32.mrb[17].mxu0  ;;  %v639_v3 = vadd.f32 %v7442_v57, %v9208_v43 }
 0x157   : > { %v9354_v0 = vmax.f32 %v626_v54, 0.0  ;;  %v834_v2 = vmax.f32 %v618_v56, 0.0  ;;  %v631_v4 = vadd.f32 %v9208_v43, %v630_v62  ;;  %v7443_v5 = vpop.f32.mrb[18].mxu0 }
 0x158   : > { %v902_v6 = vrot.slane %v835_v59, 7  ;;  %v1171_v7 = vrot.slane %v835_v59, 1  ;;  %v900_v8 = vrot.slane %v833_v60, 7  ;;  %v1169_v9 = vrot.slane %v833_v60, 1  ;;  %v633_v12 = vpop.f32.mrb[19].mxu0  ;;  %v1550_v23 = vld [vmem:[#allocation2 + $0x150] sm:$0xff] }
 0x159   : > { %v903_v13 = vrot.slane %v9354_v0, 7  ;;  %v1132_v14 = vpack.c.bf16 %v9354_v0, %v835_v59  ;;  %v1172_v40 = vrot.slane %v9354_v0, 1  ;;  %v901_v15 = vrot.slane %v834_v2, 7  ;;  %v1549_v16 = vld [vmem:[#allocation2 + $0x148] sm:$0xff] }
 0x15a   : > { %v1004_v17 = vsel %vm952_vm3, %v899_v19, %v900_v8  ;;  %v1273_v18 = vsel %vm1221_vm4, %v1168_v21, %v1169_v9  ;;  %v1131_v20 = vpack.c.bf16 %v834_v2, %v833_v60  ;;  %v1170_v22 = vrot.slane %v834_v2, 1  ;;  %7499 = vmatmul.mubr.msk.bf16.gmra.mrb[72].mxu0 %vm1394_vm1, %v1549_v16 }
 0x15b   : > { %v1041_v24 = vsel %vm1019_vm5, %v1004_v17, 0.0  ;;  %v1309_v25 = vsel %vm1291_vm6, %v1273_v18, 0.0  ;;  %v1001_v10 = vsel %vm952_vm3, %v902_v6, %v903_v13  ;;  %v1270_v19 = vsel %vm1221_vm4, %v1171_v7, %v1172_v40  ;;  %1447 = vst.msk [vmem:[#allocation2 + $0x160] sm:$0xff] %vm1394_vm1, %v1132_v14  ;;  %7502 = vmatprep.mubr.msk.bf16.mxu0 %vm1394_vm1, %v1550_v23 }
 0x15c   : > { %v1367_v21 = vpack.c.bf16 %v1309_v25, %v9322_v33  ;;  %v1002_v26 = vsel %vm952_vm3, %v901_v15, %v902_v6  ;;  %v1003_v27 = vsel %vm952_vm3, %v900_v8, %v901_v15  ;;  %v1271_v28 = vsel %vm1221_vm4, %v1170_v22, %v1171_v7  ;;  %1446 = vst.msk [vmem:[#allocation2 + $0x158] sm:$0xff] %vm1394_vm1, %v1131_v20 }
 0x15d   : > { %v1043_v29 = vsel %vm1019_vm5, %v1002_v26, 0.0  ;;  %v1099_v30 = vpack.c.bf16 %v1003_v27, %v1041_v24  ;;  %v1272_v32 = vsel %vm1221_vm4, %v1169_v9, %v1170_v22  ;;  %v1311_v34 = vsel %vm1291_vm6, %v1271_v28, 0.0  ;;  %v7446_v35 = vpop.f32.mrb[20].mxu0 }
 0x15e   : > { %1484 = vst.msk [vmem:[#allocation2 + $0x270] sm:$0xff] %vm1394_vm1, %v1367_v21  ;;  %v1100_v31 = vpack.c.bf16 %v1001_v10, %v1043_v29  ;;  %v1368_v33 = vpack.c.bf16 %v1311_v34, %v1272_v32  ;;  %v839_v36 = vmax.f32 %v639_v3, 0.0  ;;  %v837_v37 = vmax.f32 %v631_v4, 0.0  ;;  %v646_v38 = vpop.f32.mrb[21].mxu0 }
 0x15f   : > { %1407 = vst.msk [vmem:[#allocation2 + $0x38] sm:$0xff] %vm1394_vm1, %v1099_v30  ;;  %v642_v41 = vadd.f32 %v7443_v5, %v9208_v43  ;;  %v634_v44 = vadd.f32 %v9208_v43, %v633_v12  ;;  %v655_v45 = vadd.f32 %v7446_v35, %v9208_v43  ;;  %v647_v46 = vadd.f32 %v9208_v43, %v646_v38  ;;  %v7447_v47 = vpop.f32.mrb[22].mxu0 }
 0x160   : > { %1408 = vst.msk [vmem:[#allocation2 + $0x40] sm:$0xff] %vm1394_vm1, %v1100_v31  ;;  %1485 = vst.msk [vmem:[#allocation2 + $0x278] sm:$0xff] %vm1394_vm1, %v1368_v33  ;;  %v906_v49 = vrot.slane %v839_v36, 7  ;;  %v1175_v50 = vrot.slane %v839_v36, 1  ;;  %v904_v52 = vrot.slane %v837_v37, 7  ;;  %v1173_v53 = vrot.slane %v837_v37, 1 }
 0x161   : > { %v649_v54 = vpop.f32.mrb[23].mxu0  ;;  %v840_v56 = vmax.f32 %v642_v41, 0.0  ;;  %v838_v57 = vmax.f32 %v634_v44, 0.0  ;;  %v9400_v58 = vmax.f32 %v655_v45, 0.0  ;;  %v9402_v59 = vmax.f32 %v647_v46, 0.0 }
 0x162   : > { %v1000_v60 = vsel %vm952_vm3, %v903_v13, %v904_v52  ;;  %v1269_v62 = vsel %vm1221_vm4, %v1172_v40, %v1173_v53  ;;  %v658_v0 = vadd.f32 %v7447_v47, %v9208_v43  ;;  %v650_v2 = vadd.f32 %v9208_v43, %v649_v54  ;;  %v1552_v14 = vld [vmem:[#allocation2 + $0x160] sm:$0xff] }
 0x163   : > { %v1045_v3 = vsel %vm1019_vm5, %v1000_v60, 0.0  ;;  %v1313_v4 = vsel %vm1291_vm6, %v1269_v62, 0.0  ;;  %v907_v5 = vrot.slane %v840_v56, 7  ;;  %v1134_v6 = vpack.c.bf16 %v840_v56, %v839_v36  ;;  %v1551_v7 = vld [vmem:[#allocation2 + $0x158] sm:$0xff] }
 0x164   : > { %v1369_v8 = vpack.c.bf16 %v1313_v4, %v1270_v19  ;;  %v1176_v9 = vrot.slane %v840_v56, 1  ;;  %v905_v12 = vrot.slane %v838_v57, 7  ;;  %v1133_v13 = vpack.c.bf16 %v838_v57, %v837_v37  ;;  %7503 = vmatmul.mubr.msk.bf16.gmra.mrb[76].mxu0 %vm1394_vm1, %v1551_v7 }
 0x165   : > { %v997_v40 = vsel %vm952_vm3, %v906_v49, %v907_v5  ;;  %1449 = vst.msk [vmem:[#allocation2 + $0x170] sm:$0xff] %vm1394_vm1, %v1134_v6  ;;  %v1174_v15 = vrot.slane %v838_v57, 1  ;;  %v910_v16 = vrot.slane %v9400_v58, 7  ;;  %v1179_v17 = vrot.slane %v9400_v58, 1  ;;  %7506 = vmatprep.mubr.msk.bf16.mxu0 %vm1394_vm1, %v1552_v14  ;;  %v7450_v18 = vpop.f32.mrb[24].mxu0 }
 0x166   : > { %1486 = vst.msk [vmem:[#allocation2 + $0x280] sm:$0xff] %vm1394_vm1, %v1369_v8  ;;  %v1266_v20 = vsel %vm1221_vm4, %v1175_v50, %v1176_v9  ;;  %v998_v22 = vsel %vm952_vm3, %v905_v12, %v906_v49  ;;  %v999_v23 = vsel %vm952_vm3, %v904_v52, %v905_v12  ;;  %1448 = vst.msk [vmem:[#allocation2 + $0x168] sm:$0xff] %vm1394_vm1, %v1133_v13  ;;  %v908_v24 = vrot.slane %v9402_v59, 7  ;;  %v662_v25 = vpop.f32.mrb[25].mxu0 }
 0x167   : > { %v1047_v10 = vsel %vm1019_vm5, %v998_v22, 0.0  ;;  %v1101_v19 = vpack.c.bf16 %v999_v23, %v1045_v3  ;;  %v1267_v21 = vsel %vm1221_vm4, %v1174_v15, %v1175_v50  ;;  %v1268_v26 = vsel %vm1221_vm4, %v1173_v53, %v1174_v15  ;;  %v7451_v27 = vpop.f32.mrb[26].mxu0 }
 0x168   : > { %v1102_v28 = vpack.c.bf16 %v997_v40, %v1047_v10  ;;  %v1315_v29 = vsel %vm1291_vm6, %v1267_v21, 0.0  ;;  %v996_v30 = vsel %vm952_vm3, %v907_v5, %v908_v24  ;;  %v1177_v32 = vrot.slane %v9402_v59, 1  ;;  %v665_v34 = vpop.f32.mrb[27].mxu0 }
 0x169   : > { %v1370_v35 = vpack.c.bf16 %v1315_v29, %v1268_v26  ;;  %1409 = vst.msk [vmem:[#allocation2 + $0x48] sm:$0xff] %vm1394_vm1, %v1101_v19  ;;  %v1049_v31 = vsel %vm1019_vm5, %v996_v30, 0.0  ;;  %v844_v33 = vmax.f32 %v658_v0, 0.0  ;;  %v842_v36 = vmax.f32 %v650_v2, 0.0 }
 0x16a   : > { %1410 = vst.msk [vmem:[#allocation2 + $0x50] sm:$0xff] %vm1394_vm1, %v1102_v28  ;;  %v1265_v37 = vsel %vm1221_vm4, %v1176_v9, %v1177_v32  ;;  %v671_v38 = vadd.f32 %v7450_v18, %v9208_v43  ;;  %v663_v41 = vadd.f32 %v9208_v43, %v662_v25  ;;  %v674_v44 = vadd.f32 %v7451_v27, %v9208_v43 }
 0x16b   : > { %1487 = vst.msk [vmem:[#allocation2 + $0x288] sm:$0xff] %vm1394_vm1, %v1370_v35  ;;  %v1317_v45 = vsel %vm1291_vm6, %v1265_v37, 0.0  ;;  %v911_v46 = vrot.slane %v844_v33, 7  ;;  %v1136_v47 = vpack.c.bf16 %v844_v33, %v9400_v58  ;;  %v1180_v49 = vrot.slane %v844_v33, 1 }
 0x16c   : > { %v1371_v50 = vpack.c.bf16 %v1317_v45, %v1266_v20  ;;  %v909_v52 = vrot.slane %v842_v36, 7  ;;  %v1135_v53 = vpack.c.bf16 %v842_v36, %v9402_v59  ;;  %v1178_v54 = vrot.slane %v842_v36, 1  ;;  %v1554_v5 = vld [vmem:[#allocation2 + $0x170] sm:$0xff] }
 0x16d   : > { %v993_v56 = vsel %vm952_vm3, %v910_v16, %v911_v46  ;;  %v1262_v57 = vsel %vm1221_vm4, %v1179_v17, %v1180_v49  ;;  %1451 = vst.msk [vmem:[#allocation2 + $0x180] sm:$0xff] %vm1394_vm1, %v1136_v47  ;;  %v9460_v60 = vmax.f32 %v671_v38, 0.0  ;;  %v9462_v62 = vmax.f32 %v663_v41, 0.0  ;;  %v1553_v0 = vld [vmem:[#allocation2 + $0x168] sm:$0xff]  ;;  %v7454_v58 = vpop.f32.mrb[28].mxu0 }
 0x16e   : > { %1488 = vst.msk [vmem:[#allocation2 + $0x290] sm:$0xff] %vm1394_vm1, %v1371_v50  ;;  %v994_v59 = vsel %vm952_vm3, %v909_v52, %v910_v16  ;;  %v995_v2 = vsel %vm952_vm3, %v908_v24, %v909_v52  ;;  %v1263_v3 = vsel %vm1221_vm4, %v1178_v54, %v1179_v17  ;;  %v1264_v4 = vsel %vm1221_vm4, %v1177_v32, %v1178_v54  ;;  %v678_v6 = vpop.f32.mrb[29].mxu0 }
 0x16f   : > { %1450 = vst.msk [vmem:[#allocation2 + $0x178] sm:$0xff] %vm1394_vm1, %v1135_v53  ;;  %7507 = vmatmul.mubr.msk.bf16.gmra.mrb[80].mxu0 %vm1394_vm1, %v1553_v0  ;;  %v1051_v7 = vsel %vm1019_vm5, %v994_v59, 0.0  ;;  %v1103_v8 = vpack.c.bf16 %v995_v2, %v1049_v31  ;;  %v1319_v9 = vsel %vm1291_vm6, %v1263_v3, 0.0  ;;  %v914_v12 = vrot.slane %v9460_v60, 7  ;;  %v7455_v13 = vpop.f32.mrb[30].mxu0 }
 0x170   : > { %7510 = vmatprep.mubr.msk.bf16.mxu0 %vm1394_vm1, %v1554_v5  ;;  %v1104_v14 = vpack.c.bf16 %v993_v56, %v1051_v7  ;;  %v1372_v40 = vpack.c.bf16 %v1319_v9, %v1264_v4  ;;  %v1183_v15 = vrot.slane %v9460_v60, 1  ;;  %v912_v16 = vrot.slane %v9462_v62, 7  ;;  %v681_v17 = vpop.f32.mrb[31].mxu0 }
 0x171   : > { %1411 = vst.msk [vmem:[#allocation2 + $0x58] sm:$0xff] %vm1394_vm1, %v1103_v8  ;;  %v1181_v18 = vrot.slane %v9462_v62, 1  ;;  %v848_v20 = vmax.f32 %v674_v44, 0.0  ;;  %v666_v22 = vadd.f32 %v9208_v43, %v665_v34  ;;  %v687_v23 = vadd.f32 %v7454_v58, %v9208_v43 }
 0x172   : > { %1412 = vst.msk [vmem:[#allocation2 + $0x60] sm:$0xff] %vm1394_vm1, %v1104_v14  ;;  %1489 = vst.msk [vmem:[#allocation2 + $0x298] sm:$0xff] %vm1394_vm1, %v1372_v40  ;;  %v992_v24 = vsel %vm952_vm3, %v911_v46, %v912_v16  ;;  %v679_v25 = vadd.f32 %v9208_v43, %v678_v6  ;;  %v690_v10 = vadd.f32 %v7455_v13, %v9208_v43 }
 0x173   : > { %v682_v19 = vadd.f32 %v9208_v43, %v681_v17  ;;  %v1053_v21 = vsel %vm1019_vm5, %v992_v24, 0.0  ;;  %v1261_v26 = vsel %vm1221_vm4, %v1180_v49, %v1181_v18  ;;  %v915_v27 = vrot.slane %v848_v20, 7 }
 0x174   : > { %v1138_v28 = vpack.c.bf16 %v848_v20, %v9460_v60  ;;  %v1321_v29 = vsel %vm1291_vm6, %v1261_v26, 0.0  ;;  %v1184_v30 = vrot.slane %v848_v20, 1  ;;  %v846_v32 = vmax.f32 %v666_v22, 0.0  ;;  %v1556_v47 = vld [vmem:[#allocation2 + $0x180] sm:$0xff] }
 0x175   : > { %v9501_v34 = vmax.f32 %v687_v23, 0.0  ;;  %v1373_v35 = vpack.c.bf16 %v1321_v29, %v1262_v57  ;;  %v989_v31 = vsel %vm952_vm3, %v914_v12, %v915_v27  ;;  %v9506_v33 = vmax.f32 %v679_v25, 0.0  ;;  %v7458_v38 = vpop.f32.mrb[32].mxu0 }
 0x176   : > { %1453 = vst.msk [vmem:[#allocation2 + $0x190] sm:$0xff] %vm1394_vm1, %v1138_v28  ;;  %v9508_v36 = vmax.f32 %v690_v10, 0.0  ;;  %v1555_v37 = vld [vmem:[#allocation2 + $0x178] sm:$0xff]  ;;  %v1258_v41 = vsel %vm1221_vm4, %v1183_v15, %v1184_v30  ;;  %v913_v44 = vrot.slane %v846_v32, 7  ;;  %v1137_v45 = vpack.c.bf16 %v846_v32, %v9462_v62  ;;  %v694_v49 = vpop.f32.mrb[33].mxu0 }
 0x177   : > { %v1182_v46 = vrot.slane %v846_v32, 1  ;;  %7511 = vmatmul.mubr.msk.bf16.gmra.mrb[84].mxu0 %vm1394_vm1, %v1555_v37  ;;  %1490 = vst.msk [vmem:[#allocation2 + $0x2a0] sm:$0xff] %vm1394_vm1, %v1373_v35  ;;  %v918_v50 = vrot.slane %v9501_v34, 7  ;;  %v1187_v52 = vrot.slane %v9501_v34, 1  ;;  %v916_v53 = vrot.slane %v9506_v33, 7  ;;  %v7459_v56 = vpop.f32.mrb[34].mxu0 }
 0x178   : > { %v1185_v54 = vrot.slane %v9506_v33, 1  ;;  %7514 = vmatprep.mubr.msk.bf16.mxu0 %vm1394_vm1, %v1556_v47  ;;  %v990_v57 = vsel %vm952_vm3, %v913_v44, %v914_v12  ;;  %v991_v60 = vsel %vm952_vm3, %v912_v16, %v913_v44  ;;  %1452 = vst.msk [vmem:[#allocation2 + $0x188] sm:$0xff] %vm1394_vm1, %v1137_v45  ;;  %v697_v58 = vpop.f32.mrb[35].mxu0  ;;  %v919_v12 = vrot.slane %v9508_v36, 7 }
 0x179   : > { %v1259_v62 = vsel %vm1221_vm4, %v1182_v46, %v1183_v15  ;;  %v1260_v0 = vsel %vm1221_vm4, %v1181_v18, %v1182_v46  ;;  %v1055_v59 = vsel %vm1019_vm5, %v990_v57, 0.0  ;;  %v1105_v2 = vpack.c.bf16 %v991_v60, %v1053_v21 }
 0x17a   : > { %v1323_v3 = vsel %vm1291_vm6, %v1259_v62, 0.0  ;;  %v988_v4 = vsel %vm952_vm3, %v915_v27, %v916_v53  ;;  %v1106_v5 = vpack.c.bf16 %v989_v31, %v1055_v59  ;;  %v1257_v8 = vsel %vm1221_vm4, %v1184_v30, %v1185_v54 }
 0x17b   : > { %v1374_v6 = vpack.c.bf16 %v1323_v3, %v1260_v0  ;;  %v1057_v7 = vsel %vm1019_vm5, %v988_v4, 0.0  ;;  %1413 = vst.msk [vmem:[#allocation2 + $0x68] sm:$0xff] %vm1394_vm1, %v1105_v2  ;;  %v1325_v9 = vsel %vm1291_vm6, %v1257_v8, 0.0  ;;  %v1140_v13 = vpack.c.bf16 %v9508_v36, %v9501_v34 }
 0x17c   : > { %v1188_v14 = vrot.slane %v9508_v36, 1  ;;  %1414 = vst.msk [vmem:[#allocation2 + $0x70] sm:$0xff] %vm1394_vm1, %v1106_v5  ;;  %v1375_v40 = vpack.c.bf16 %v1325_v9, %v1258_v41  ;;  %v850_v15 = vmax.f32 %v682_v19, 0.0  ;;  %v703_v16 = vadd.f32 %v7458_v38, %v9208_v43 }
 0x17d   : > { %1491 = vst.msk [vmem:[#allocation2 + $0x2a8] sm:$0xff] %vm1394_vm1, %v1374_v6  ;;  %v695_v17 = vadd.f32 %v9208_v43, %v694_v49  ;;  %v985_v18 = vsel %vm952_vm3, %v918_v50, %v919_v12  ;;  %1455 = vst.msk [vmem:[#allocation2 + $0x1a0] sm:$0xff] %vm1394_vm1, %v1140_v13  ;;  %v706_v22 = vadd.f32 %v7459_v56, %v9208_v43  ;;  %v7462_v24 = vpop.f32.mrb[36].mxu0  ;;  %v9577_v37 = vld [vmem:[#allocation2 + $0x190] sm:$0xff] }
 0x17e   : > { %v9554_v20 = vsel %vm1221_vm4, %v1187_v52, %v1188_v14  ;;  %v698_v23 = vadd.f32 %v9208_v43, %v697_v58  ;;  %1492 = vst.msk [vmem:[#allocation2 + $0x2b0] sm:$0xff] %vm1394_vm1, %v1375_v40  ;;  %v917_v25 = vrot.slane %v850_v15, 7  ;;  %v1139_v10 = vpack.c.bf16 %v850_v15, %v9506_v33  ;;  %v710_v26 = vpop.f32.mrb[37].mxu0  ;;  %v1560_v13 = vld [vmem:[#allocation2 + $0x1b0] sm:$0xff] }
 0x17f   : > { %v1186_v19 = vrot.slane %v850_v15, 1  ;;  %v855_v21 = vmax.f32 %v703_v16, 0.0  ;;  %v853_v27 = vmax.f32 %v695_v17, 0.0  ;;  %v9561_v28 = vmax.f32 %v706_v22, 0.0  ;;  %v9563_v29 = vld [vmem:[#allocation2 + $0x188] sm:$0xff]  ;;  %v7463_v34 = vpop.f32.mrb[38].mxu0 }
 0x180   : > { %v854_v30 = vmax.f32 %v698_v23, 0.0  ;;  %v719_v32 = vadd.f32 %v7462_v24, %v9208_v43  ;;  %v986_v35 = vsel %vm952_vm3, %v917_v25, %v918_v50  ;;  %v987_v31 = vsel %vm952_vm3, %v916_v53, %v917_v25  ;;  %1454 = vst.msk [vmem:[#allocation2 + $0x198] sm:$0xff] %vm1394_vm1, %v1139_v10  ;;  %7515 = vmatmul.mubr.msk.bf16.gmra.mrb[88].mxu0 %vm1394_vm1, %v9563_v29  ;;  %v713_v38 = vpop.f32.mrb[39].mxu0 }
 0x181   : > { %v1255_v33 = vsel %vm1221_vm4, %v1186_v19, %v1187_v52  ;;  %v1256_v36 = vsel %vm1221_vm4, %v1185_v54, %v1186_v19  ;;  %v1059_v41 = vsel %vm1019_vm5, %v986_v35, 0.0  ;;  %v1107_v44 = vpack.c.bf16 %v987_v31, %v1057_v7  ;;  %7518 = vmatprep.mubr.msk.bf16.mxu0 %vm1394_vm1, %v9577_v37 }
 0x182   : > { %v1327_v45 = vsel %vm1291_vm6, %v1255_v33, 0.0  ;;  %v922_v46 = vrot.slane %v855_v21, 7  ;;  %v1108_v47 = vpack.c.bf16 %v985_v18, %v1059_v41  ;;  %v1191_v50 = vrot.slane %v855_v21, 1 }
 0x183   : > { %v1376_v49 = vpack.c.bf16 %v1327_v45, %v1256_v36  ;;  %v920_v52 = vrot.slane %v853_v27, 7  ;;  %1415 = vst.msk [vmem:[#allocation2 + $0x78] sm:$0xff] %vm1394_vm1, %v1107_v44  ;;  %v1189_v53 = vrot.slane %v853_v27, 1  ;;  %v923_v54 = vrot.slane %v9561_v28, 7  ;;  %v9647_v44 = vld [vmem:[#allocation6 + $0x14] sm:$0xf] }
 0x184   : > { %v1142_v56 = vpack.c.bf16 %v9561_v28, %v855_v21  ;;  %v1192_v57 = vrot.slane %v9561_v28, 1  ;;  %1416 = vst.msk [vmem:[#allocation2 + $0x80] sm:$0xff] %vm1394_vm1, %v1108_v47  ;;  %v921_v62 = vrot.slane %v854_v30, 7  ;;  %v1141_v0 = vpack.c.bf16 %v854_v30, %v853_v27 }
 0x185   : > { %1493 = vst.msk [vmem:[#allocation2 + $0x2b8] sm:$0xff] %vm1394_vm1, %v1376_v49  ;;  %v984_v60 = vsel %vm952_vm3, %v919_v12, %v920_v52  ;;  %v1190_v58 = vrot.slane %v854_v30, 1  ;;  %v1253_v2 = vsel %vm1221_vm4, %v1188_v14, %v1189_v53  ;;  %v981_v3 = vsel %vm952_vm3, %v922_v46, %v923_v54  ;;  %v7466_v5 = vpop.f32.mrb[40].mxu0 }
 0x186   : > { %v1061_v59 = vsel %vm1019_vm5, %v984_v60, 0.0  ;;  %v9605_v4 = vsel %vm1221_vm4, %v1191_v50, %v1192_v57  ;;  %1457 = vst.msk [vmem:[#allocation2 + $0x1c0] sm:$0xff] %vm1394_vm1, %v1142_v56  ;;  %v1329_v6 = vsel %vm1291_vm6, %v1253_v2, 0.0  ;;  %v982_v7 = vsel %vm952_vm3, %v921_v62, %v922_v46  ;;  %1456 = vst.msk [vmem:[#allocation2 + $0x1b8] sm:$0xff] %vm1394_vm1, %v1141_v0  ;;  %v726_v12 = vpop.f32.mrb[41].mxu0 }
 0x187   : > { %v983_v8 = vsel %vm952_vm3, %v920_v52, %v921_v62  ;;  %v1251_v9 = vsel %vm1221_vm4, %v1190_v58, %v1191_v50  ;;  %v1377_v14 = vpack.c.bf16 %v1329_v6, %v9554_v20  ;;  %v1063_v40 = vsel %vm1019_vm5, %v982_v7, 0.0  ;;  %v9622_v17 = vld [vmem:[#allocation2 + $0x198] sm:$0xff]  ;;  %v7467_v18 = vpop.f32.mrb[42].mxu0 }
 0x188   : > { %v1109_v15 = vpack.c.bf16 %v983_v8, %v1061_v59  ;;  %v1252_v16 = vsel %vm1221_vm4, %v1189_v53, %v1190_v58  ;;  %v1110_v22 = vpack.c.bf16 %v981_v3, %v1063_v40  ;;  %v1331_v23 = vsel %vm1291_vm6, %v1251_v9, 0.0  ;;  %7519 = vmatmul.mubr.msk.bf16.gmra.mrb[92].mxu0 %vm1394_vm1, %v9622_v17  ;;  %v729_v20 = vpop.f32.mrb[43].mxu0 }
 0x189   : > { %v859_v24 = vmax.f32 %v719_v32, 0.0  ;;  %v711_v25 = vadd.f32 %v9208_v43, %v710_v26  ;;  %1494 = vst.msk [vmem:[#allocation2 + $0x2c0] sm:$0xff] %vm1394_vm1, %v1377_v14  ;;  %v1378_v10 = vpack.c.bf16 %v1331_v23, %v1252_v16  ;;  %v722_v19 = vadd.f32 %v7463_v34, %v9208_v43  ;;  %7522 = vmatprep.mubr.msk.bf16.mxu0 %vm1394_vm1, %v1560_v13 }
 0x18a   : > { %1417 = vst.msk [vmem:[#allocation2 + $0x98] sm:$0xff] %vm1394_vm1, %v1109_v15  ;;  %v714_v21 = vadd.f32 %v9208_v43, %v713_v38  ;;  %v735_v27 = vadd.f32 %v7466_v5, %v9208_v43  ;;  %1418 = vst.msk [vmem:[#allocation2 + $0xa0] sm:$0xff] %vm1394_vm1, %v1110_v22  ;;  %v9636_v35 = vld [vmem:[#allocation2 + $0x78] sm:$0xff]  ;;  %v727_v31 = vadd.f32 %v9208_v43, %v726_v12 }
 0x18b   : > { %v926_v26 = vrot.slane %v859_v24, 7  ;;  %v1195_v30 = vrot.slane %v859_v24, 1  ;;  %v857_v32 = vmax.f32 %v711_v25, 0.0  ;;  %1495 = vst.msk [vmem:[#allocation2 + $0x2d8] sm:$0xff] %vm1394_vm1, %v1378_v10  ;;  %v9640_v33 = vmax.f32 %v722_v19, 0.0  ;;  %7716 = vmatprep.mubr.msk.bf16.mxu1 %vm1394_vm1, %v9636_v35  ;;  %v2856_v36 = vld [vmem:[#allocation2 + $0x80] sm:$0xff] }
 0x18c   : > { %v858_v34 = vmax.f32 %v714_v21, 0.0  ;;  %v9644_v38 = vmax.f32 %v735_v27, 0.0  ;;  %v738_v41 = vadd.f32 %v7467_v18, %v9208_v43  ;;  %7717 = vmatmul.mubr.msk.bf16.vlgmr.msra.gmra.mrb[0].mxu1 %vm1394_vm1, %v2856_v36  ;;  %v9650_v47 = vmax.f32 %v727_v31, 0.0  ;;  %v9719_v21 = vld [vmem:[%s11284_s4] ss:$0 sm:$0xff] }
 0x18d   : > { %v924_v45 = vrot.slane %v857_v32, 7  ;;  %v1193_v46 = vrot.slane %v857_v32, 1  ;;  %v730_v49 = vadd.f32 %v9208_v43, %v729_v20  ;;  %v927_v50 = vrot.slane %v9640_v33, 7  ;;  %7753 = vmatpush3.bf16.msra.mxu1 %v9352_v63  ;;  %v9657_v60 = vld [vmem:[#allocation2 + $0x1b8] sm:$0xff]  ;;  %v7470_v62 = vpop.f32.mrb[44].mxu0  ;;  %v9688_v9 = vld [vmem:[#allocation2 + $0x1c0] sm:$0xff] }
 0x18e   : > { %v1144_v52 = vpack.c.bf16 %v9640_v33, %v859_v24  ;;  %v1196_v53 = vrot.slane %v9640_v33, 1  ;;  %v925_v56 = vrot.slane %v858_v34, 7  ;;  %v1143_v58 = vpack.c.bf16 %v858_v34, %v857_v32  ;;  %v742_v2 = vpop.f32.mrb[45].mxu0  ;;  %8668 = vmatprep.subr.msk.bf16.mxu1 %vm1674_vm2, %v9647_v44 }
 0x18f   : > { %v980_v0 = vsel %vm952_vm3, %v923_v54, %v924_v45  ;;  %v1249_v43 = vsel %vm1221_vm4, %v1192_v57, %v1193_v46  ;;  %v1194_v59 = vrot.slane %v858_v34, 1  ;;  %v977_v54 = vsel %vm952_vm3, %v926_v26, %v927_v50  ;;  %v7471_v57 = vpop.f32.mrb[46].mxu0 }
 0x190   : > { %v1065_v63 = vsel %vm1019_vm5, %v980_v0, 0.0  ;;  %v1333_v3 = vsel %vm1291_vm6, %v1249_v43, 0.0  ;;  %v1246_v28 = vsel %vm1221_vm4, %v1195_v30, %v1196_v53  ;;  %1459 = vst.msk [vmem:[#allocation2 + $0x1d0] sm:$0xff] %vm1394_vm1, %v1144_v52  ;;  %v978_v6 = vsel %vm952_vm3, %v925_v56, %v926_v26  ;;  %1458 = vst.msk [vmem:[#allocation2 + $0x1c8] sm:$0xff] %vm1394_vm1, %v1143_v58  ;;  %7523 = vmatmul.mubr.msk.bf16.gmra.mrb[96].mxu0 %vm1394_vm1, %v9657_v60  ;;  %v745_v13 = vpop.f32.mrb[47].mxu0 }
 0x191   : > { %v1379_v5 = vpack.c.bf16 %v1333_v3, %v9605_v4  ;;  %v979_v7 = vsel %vm952_vm3, %v924_v45, %v925_v56  ;;  %v1247_v8 = vsel %vm1221_vm4, %v1194_v59, %v1195_v30  ;;  %v9690_v12 = vld [vmem:[#allocation2 + $0x98] sm:$0xff]  ;;  %v1067_v4 = vsel %vm1019_vm5, %v978_v6, 0.0  ;;  %7526 = vmatprep.mubr.msk.bf16.mxu0 %vm1394_vm1, %v9688_v9  ;;  %v9702_v16 = vld [vmem:[#allocation2 + $0xa0] sm:$0xff] }
 0x192   : > { %v1111_v14 = vpack.c.bf16 %v979_v7, %v1065_v63  ;;  %v1248_v40 = vsel %vm1221_vm4, %v1193_v46, %v1194_v59  ;;  %v1335_v15 = vsel %vm1291_vm6, %v1247_v8, 0.0  ;;  %7720 = vmatprep.mubr.msk.bf16.mxu1 %vm1394_vm1, %v9690_v12  ;;  %v1112_v18 = vpack.c.bf16 %v977_v54, %v1067_v4 }
 0x193   : > { %1496 = vst.msk [vmem:[#allocation2 + $0x2e0] sm:$0xff] %vm1394_vm1, %v1379_v5  ;;  %v1380_v22 = vpack.c.bf16 %v1335_v15, %v1248_v40  ;;  %v930_v23 = vrot.slane %v9644_v38, 7  ;;  %v1199_v24 = vrot.slane %v9644_v38, 1  ;;  %v928_v25 = vrot.slane %v9650_v47, 7 }
 0x194   : > { %1419 = vst.msk [vmem:[#allocation2 + $0xa8] sm:$0xff] %vm1394_vm1, %v1111_v14  ;;  %v1197_v20 = vrot.slane %v9650_v47, 1  ;;  %v9710_v10 = vmax.f32 %v738_v41, 0.0  ;;  %v862_v19 = vmax.f32 %v730_v49, 0.0  ;;  %1420 = vst.msk [vmem:[#allocation2 + $0xb0] sm:$0xff] %vm1394_vm1, %v1112_v18  ;;  %7721 = vmatmul.mubr.msk.bf16.gmra.mrb[4].mxu1 %vm1394_vm1, %v9702_v16  ;;  %v751_v27 = vadd.f32 %v9719_v21, %v7470_v62 }
 0x195   : > { %1497 = vst.msk [vmem:[#allocation2 + $0x2e8] sm:$0xff] %vm1394_vm1, %v1380_v22  ;;  %v743_v26 = vadd.f32 %v9719_v21, %v742_v2  ;;  %v754_v30 = vadd.f32 %v9719_v21, %v7471_v57  ;;  %v746_v32 = vadd.f32 %v9719_v21, %v745_v13  ;;  %v976_v31 = vsel %vm952_vm3, %v927_v50, %v928_v25  ;;  %v7474_v41 = vpop.f32.mrb[48].mxu0 }
 0x196   : > { %v1245_v33 = vsel %vm1221_vm4, %v1196_v53, %v1197_v20  ;;  %v931_v34 = vrot.slane %v9710_v10, 7  ;;  %v1146_v36 = vpack.c.bf16 %v9710_v10, %v9644_v38  ;;  %v1069_v45 = vsel %vm1019_vm5, %v976_v31, 0.0  ;;  %v758_v56 = vpop.f32.mrb[49].mxu0 }
 0x197   : > { %v1337_v46 = vsel %vm1291_vm6, %v1245_v33, 0.0  ;;  %v1200_v49 = vrot.slane %v9710_v10, 1  ;;  %v929_v52 = vrot.slane %v862_v19, 7  ;;  %v1145_v62 = vpack.c.bf16 %v862_v19, %v9650_v47  ;;  %v9741_v0 = vld [vmem:[#allocation2 + $0x1c8] sm:$0xff]  ;;  %v7475_v43 = vpop.f32.mrb[50].mxu0  ;;  %v9753_v3 = vld [vmem:[#allocation2 + $0x1d0] sm:$0xff] }
 0x198   : > { %v1381_v50 = vpack.c.bf16 %v1337_v46, %v1246_v28  ;;  %v973_v53 = vsel %vm952_vm3, %v930_v23, %v931_v34  ;;  %1461 = vst.msk [vmem:[#allocation2 + $0x1e0] sm:$0xff] %vm1394_vm1, %v1146_v36  ;;  %v1198_v38 = vrot.slane %v862_v19, 1  ;;  %v867_v63 = vmax.f32 %v751_v27, 0.0  ;;  %7527 = vmatmul.mubr.msk.bf16.gmra.mrb[100].mxu0 %vm1394_vm1, %v9741_v0  ;;  %v761_v47 = vpop.f32.mrb[51].mxu0 }
 0x199   : > { %v9745_v58 = vsel %vm1221_vm4, %v1199_v24, %v1200_v49  ;;  %v974_v59 = vsel %vm952_vm3, %v929_v52, %v930_v23  ;;  %v975_v2 = vsel %vm952_vm3, %v928_v25, %v929_v52  ;;  %1460 = vst.msk [vmem:[#allocation2 + $0x1d8] sm:$0xff] %vm1394_vm1, %v1145_v62  ;;  %7530 = vmatprep.mubr.msk.bf16.mxu0 %vm1394_vm1, %v9753_v3  ;;  %v865_v40 = vmax.f32 %v743_v26, 0.0 }
 0x19a   : > { %1498 = vst.msk [vmem:[#allocation2 + $0x2f0] sm:$0xff] %vm1394_vm1, %v1381_v50  ;;  %v1071_v54 = vsel %vm1019_vm5, %v974_v59, 0.0  ;;  %v1113_v28 = vpack.c.bf16 %v975_v2, %v1069_v45  ;;  %v1243_v57 = vsel %vm1221_vm4, %v1198_v38, %v1199_v24  ;;  %v1244_v5 = vsel %vm1221_vm4, %v1197_v20, %v1198_v38 }
 0x19b   : > { %v1114_v6 = vpack.c.bf16 %v973_v53, %v1071_v54  ;;  %v1339_v7 = vsel %vm1291_vm6, %v1243_v57, 0.0  ;;  %v934_v8 = vrot.slane %v867_v63, 7  ;;  %v1203_v13 = vrot.slane %v867_v63, 1  ;;  %v9767_v4 = vld [vmem:[#allocation2 + $0xa8] sm:$0xff]  ;;  %v9774_v22 = vld [vmem:[#allocation2 + $0xb0] sm:$0xff] }
 0x19c   : > { %v1382_v14 = vpack.c.bf16 %v1339_v7, %v1244_v5  ;;  %1421 = vst.msk [vmem:[#allocation2 + $0xb8] sm:$0xff] %vm1394_vm1, %v1113_v28  ;;  %v9770_v15 = vmax.f32 %v754_v30, 0.0  ;;  %v866_v18 = vmax.f32 %v746_v32, 0.0  ;;  %7724 = vmatprep.mubr.msk.bf16.mxu1 %vm1394_vm1, %v9767_v4  ;;  %v767_v23 = vadd.f32 %v9719_v21, %v7474_v41 }
 0x19d   : > { %1422 = vst.msk [vmem:[#allocation2 + $0xc0] sm:$0xff] %vm1394_vm1, %v1114_v6  ;;  %7725 = vmatmul.mubr.msk.bf16.gmra.mrb[8].mxu1 %vm1394_vm1, %v9774_v22  ;;  %v759_v24 = vadd.f32 %v9719_v21, %v758_v56  ;;  %v770_v25 = vadd.f32 %v9719_v21, %v7475_v43  ;;  %v762_v20 = vadd.f32 %v9719_v21, %v761_v47  ;;  %v932_v10 = vrot.slane %v865_v40, 7  ;;  %v7478_v30 = vpop.f32.mrb[52].mxu0 }
 0x19e   : > { %1499 = vst.msk [vmem:[#allocation2 + $0x2f8] sm:$0xff] %vm1394_vm1, %v1382_v14  ;;  %v1201_v19 = vrot.slane %v865_v40, 1  ;;  %v935_v27 = vrot.slane %v9770_v15, 7  ;;  %v1148_v26 = vpack.c.bf16 %v9770_v15, %v867_v63  ;;  %v1204_v32 = vrot.slane %v9770_v15, 1  ;;  %v774_v41 = vpop.f32.mrb[53].mxu0 }
 0x19f   : > { %v933_v31 = vrot.slane %v866_v18, 7  ;;  %v1147_v33 = vpack.c.bf16 %v866_v18, %v865_v40  ;;  %v1202_v36 = vrot.slane %v866_v18, 1  ;;  %v972_v45 = vsel %vm952_vm3, %v931_v34, %v932_v10  ;;  %v7479_v50 = vpop.f32.mrb[54].mxu0  ;;  %v9818_v54 = vld [vmem:[#allocation2 + $0x1e0] sm:$0xff] }
 0x1a0   : > { %v1241_v46 = vsel %vm1221_vm4, %v1200_v49, %v1201_v19  ;;  %v969_v52 = vsel %vm952_vm3, %v934_v8, %v935_v27  ;;  %1463 = vst.msk [vmem:[#allocation2 + $0x1f0] sm:$0xff] %vm1394_vm1, %v1148_v26  ;;  %v9794_v56 = vmax.f32 %v767_v23, 0.0  ;;  %v1073_v53 = vsel %vm1019_vm5, %v972_v45, 0.0  ;;  %v9807_v38 = vld [vmem:[#allocation2 + $0x1d8] sm:$0xff]  ;;  %v777_v43 = vpop.f32.mrb[55].mxu0 }
 0x1a1   : > { %v1341_v62 = vsel %vm1291_vm6, %v1241_v46, 0.0  ;;  %v9802_v34 = vsel %vm1221_vm4, %v1203_v13, %v1204_v32  ;;  %v970_v49 = vsel %vm952_vm3, %v933_v31, %v934_v8  ;;  %1462 = vst.msk [vmem:[#allocation2 + $0x1e8] sm:$0xff] %vm1394_vm1, %v1147_v33  ;;  %v971_v2 = vsel %vm952_vm3, %v932_v10, %v933_v31  ;;  %7531 = vmatmul.mubr.msk.bf16.gmra.mrb[104].mxu0 %vm1394_vm1, %v9807_v38 }
 0x1a2   : > { %v1383_v59 = vpack.c.bf16 %v1341_v62, %v9745_v58  ;;  %v1075_v63 = vsel %vm1019_vm5, %v970_v49, 0.0  ;;  %v1239_v47 = vsel %vm1221_vm4, %v1202_v36, %v1203_v13  ;;  %v1115_v28 = vpack.c.bf16 %v971_v2, %v1073_v53  ;;  %7534 = vmatprep.mubr.msk.bf16.mxu0 %vm1394_vm1, %v9818_v54 }
 0x1a3   : > { %v1116_v57 = vpack.c.bf16 %v969_v52, %v1075_v63  ;;  %v1240_v5 = vsel %vm1221_vm4, %v1201_v19, %v1202_v36  ;;  %v1343_v58 = vsel %vm1291_vm6, %v1239_v47, 0.0  ;;  %v9826_v6 = vld [vmem:[#allocation2 + $0xb8] sm:$0xff]  ;;  %v938_v8 = vrot.slane %v9794_v56, 7 }
 0x1a4   : > { %1500 = vst.msk [vmem:[#allocation2 + $0x300] sm:$0xff] %vm1394_vm1, %v1383_v59  ;;  %v1384_v7 = vpack.c.bf16 %v1343_v58, %v1240_v5  ;;  %v1207_v13 = vrot.slane %v9794_v56, 1  ;;  %v869_v14 = vmax.f32 %v759_v24, 0.0  ;;  %7728 = vmatprep.mubr.msk.bf16.mxu1 %vm1394_vm1, %v9826_v6  ;;  %v9833_v40 = vld [vmem:[#allocation2 + $0xc0] sm:$0xff]  ;;  %1423 = vst.msk [vmem:[#allocation2 + $0xc8] sm:$0xff] %vm1394_vm1, %v1115_v28  ;;  %v9837_v15 = vmax.f32 %v770_v25, 0.0 }
 0x1a5   : > { %1424 = vst.msk [vmem:[#allocation2 + $0xd0] sm:$0xff] %vm1394_vm1, %v1116_v57  ;;  %v870_v18 = vmax.f32 %v762_v20, 0.0  ;;  %7729 = vmatmul.mubr.msk.bf16.gmra.mrb[12].mxu1 %vm1394_vm1, %v9833_v40  ;;  %v783_v23 = vadd.f32 %v9719_v21, %v7478_v30  ;;  %v775_v10 = vadd.f32 %v9719_v21, %v774_v41  ;;  %v786_v26 = vadd.f32 %v9719_v21, %v7479_v50  ;;  %v7482_v33 = vpop.f32.mrb[56].mxu0 }
 0x1a6   : > { %1501 = vst.msk [vmem:[#allocation2 + $0x308] sm:$0xff] %vm1394_vm1, %v1384_v7  ;;  %v936_v24 = vrot.slane %v869_v14, 7  ;;  %v1205_v19 = vrot.slane %v869_v14, 1  ;;  %v778_v31 = vadd.f32 %v9719_v21, %v777_v43  ;;  %v939_v25 = vrot.slane %v9837_v15, 7  ;;  %v790_v30 = vpop.f32.mrb[57].mxu0 }
 0x1a7   : > { %v1150_v20 = vpack.c.bf16 %v9837_v15, %v9794_v56  ;;  %v1208_v36 = vrot.slane %v9837_v15, 1  ;;  %v937_v45 = vrot.slane %v870_v18, 7  ;;  %v1149_v52 = vpack.c.bf16 %v870_v18, %v869_v14  ;;  %v9856_v62 = vpop.f32.mrb[58].mxu0  ;;  %v9881_v28 = vld [vmem:[#allocation2 + $0x1f0] sm:$0xff] }
 0x1a8   : > { %v968_v41 = vsel %vm952_vm3, %v935_v27, %v936_v24  ;;  %v1237_v46 = vsel %vm1221_vm4, %v1204_v32, %v1205_v19  ;;  %v1206_v50 = vrot.slane %v870_v18, 1  ;;  %v9854_v53 = vld [vmem:[#allocation2 + $0x1e8] sm:$0xff]  ;;  %v965_v43 = vsel %vm952_vm3, %v938_v8, %v939_v25  ;;  %v9869_v32 = vpop.f32.mrb[59].mxu0 }
 0x1a9   : > { %v1077_v49 = vsel %vm1019_vm5, %v968_v41, 0.0  ;;  %v1345_v56 = vsel %vm1291_vm6, %v1237_v46, 0.0  ;;  %v9866_v27 = vsel %vm1221_vm4, %v1207_v13, %v1208_v36  ;;  %1465 = vst.msk [vmem:[#allocation2 + $0x200] sm:$0xff] %vm1394_vm1, %v1150_v20  ;;  %v966_v2 = vsel %vm952_vm3, %v937_v45, %v938_v8  ;;  %1464 = vst.msk [vmem:[#allocation2 + $0x1f8] sm:$0xff] %vm1394_vm1, %v1149_v52  ;;  %7535 = vmatmul.mubr.msk.bf16.gmra.mrb[108].mxu0 %vm1394_vm1, %v9854_v53 }
 0x1aa   : > { %v1385_v59 = vpack.c.bf16 %v1345_v56, %v9802_v34  ;;  %v967_v63 = vsel %vm952_vm3, %v936_v24, %v937_v45  ;;  %v1235_v47 = vsel %vm1221_vm4, %v1206_v50, %v1207_v13  ;;  %v1079_v57 = vsel %vm1019_vm5, %v966_v2, 0.0  ;;  %7538 = vmatprep.mubr.msk.bf16.mxu0 %vm1394_vm1, %v9881_v28 }
 0x1ab   : > { %v1117_v34 = vpack.c.bf16 %v967_v63, %v1077_v49  ;;  %v1236_v5 = vsel %vm1221_vm4, %v1205_v19, %v1206_v50  ;;  %v1347_v58 = vsel %vm1291_vm6, %v1235_v47, 0.0  ;;  %v1118_v7 = vpack.c.bf16 %v965_v43, %v1079_v57  ;;  %v9892_v15 = vld [vmem:[#allocation2 + $0xc8] sm:$0xff] }
 0x1ac   : > { %1502 = vst.msk [vmem:[#allocation2 + $0x310] sm:$0xff] %vm1394_vm1, %v1385_v59  ;;  %v1386_v8 = vpack.c.bf16 %v1347_v58, %v1236_v5  ;;  %v875_v13 = vmax.f32 %v783_v23, 0.0  ;;  %v873_v14 = vmax.f32 %v775_v10, 0.0  ;;  %v9894_v18 = vld [vmem:[#allocation2 + $0xd0] sm:$0xff]  ;;  %v9897_v24 = vmax.f32 %v786_v26, 0.0  ;;  %7732 = vmatprep.mubr.msk.bf16.mxu1 %vm1394_vm1, %v9892_v15 }
 0x1ad   : > { %1425 = vst.msk [vmem:[#allocation2 + $0xd8] sm:$0xff] %vm1394_vm1, %v1117_v34  ;;  %v874_v19 = vmax.f32 %v778_v31, 0.0  ;;  %v799_v20 = vadd.f32 %v9719_v21, %v7482_v33  ;;  %v791_v45 = vadd.f32 %v9719_v21, %v790_v30  ;;  %1426 = vst.msk [vmem:[#allocation2 + $0xe0] sm:$0xff] %vm1394_vm1, %v1118_v7  ;;  %7733 = vmatmul.mubr.msk.bf16.gmra.mrb[16].mxu1 %vm1394_vm1, %v9894_v18  ;;  %v7486_v26 = vpop.f32.mrb[60].mxu0 }
 0x1ae   : > { %1503 = vst.msk [vmem:[#allocation2 + $0x318] sm:$0xff] %vm1394_vm1, %v1386_v8  ;;  %v942_v23 = vrot.slane %v875_v13, 7  ;;  %v1211_v10 = vrot.slane %v875_v13, 1  ;;  %v940_v41 = vrot.slane %v873_v14, 7  ;;  %v1209_v46 = vrot.slane %v873_v14, 1  ;;  %v806_v30 = vpop.f32.mrb[61].mxu0 }
 0x1af   : > { %v943_v31 = vrot.slane %v9897_v24, 7  ;;  %v1152_v52 = vpack.c.bf16 %v9897_v24, %v875_v13  ;;  %v1212_v33 = vrot.slane %v9897_v24, 1  ;;  %v941_v50 = vrot.slane %v874_v19, 7  ;;  %v7487_v2 = vpop.f32.mrb[62].mxu0 }
 0x1b0   : > { %v964_v49 = vsel %vm952_vm3, %v939_v25, %v940_v41  ;;  %v1233_v56 = vsel %vm1221_vm4, %v1208_v36, %v1209_v46  ;;  %v1151_v43 = vpack.c.bf16 %v874_v19, %v873_v14  ;;  %v1210_v59 = vrot.slane %v874_v19, 1  ;;  %v9923_v25 = vld [vmem:[#allocation2 + $0x1f8] sm:$0xff]  ;;  %v809_v36 = vpop.f32.mrb[63].mxu0  ;;  %v9935_v13 = vld [vmem:[#allocation2 + $0x200] sm:$0xff] }
 0x1b1   : > { %v1081_v63 = vsel %vm1019_vm5, %v964_v49, 0.0  ;;  %v1349_v47 = vsel %vm1291_vm6, %v1233_v56, 0.0  ;;  %v961_v57 = vsel %vm952_vm3, %v942_v23, %v943_v31  ;;  %v1230_v34 = vsel %vm1221_vm4, %v1211_v10, %v1212_v33  ;;  %1467 = vst.msk [vmem:[#allocation2 + $0x210] sm:$0xff] %vm1394_vm1, %v1152_v52  ;;  %7539 = vmatmul.mubr.msk.bf16.gmra.mrb[112].mxu0 %vm1394_vm1, %v9923_v25 }
 0x1b2   : > { %v1387_v5 = vpack.c.bf16 %v1349_v47, %v9866_v27  ;;  %v962_v58 = vsel %vm952_vm3, %v941_v50, %v942_v23  ;;  %v963_v7 = vsel %vm952_vm3, %v940_v41, %v941_v50  ;;  %v1231_v8 = vsel %vm1221_vm4, %v1210_v59, %v1211_v10  ;;  %1466 = vst.msk [vmem:[#allocation2 + $0x208] sm:$0xff] %vm1394_vm1, %v1151_v43 }
 0x1b3   : > { %v1083_v14 = vsel %vm1019_vm5, %v962_v58, 0.0  ;;  %v1119_v27 = vpack.c.bf16 %v963_v7, %v1081_v63  ;;  %v1232_v24 = vsel %vm1221_vm4, %v1209_v46, %v1210_v59  ;;  %v1351_v19 = vsel %vm1291_vm6, %v1231_v8, 0.0  ;;  %7542 = vmatprep.mubr.msk.bf16.mxu0 %vm1394_vm1, %v9935_v13 }
 0x1b4   : > { %1504 = vst.msk [vmem:[#allocation2 + $0x320] sm:$0xff] %vm1394_vm1, %v1387_v5  ;;  %v1120_v23 = vpack.c.bf16 %v961_v57, %v1083_v14  ;;  %v1388_v10 = vpack.c.bf16 %v1351_v19, %v1232_v24  ;;  %v879_v41 = vmax.f32 %v799_v20, 0.0  ;;  %v877_v52 = vmax.f32 %v791_v45, 0.0  ;;  %v9946_v50 = vld [vmem:[#allocation2 + $0xd8] sm:$0xff]  ;;  %v9955_v56 = vld [vmem:[#allocation2 + $0xe0] sm:$0xff] }
 0x1b5   : > { %1427 = vst.msk [vmem:[#allocation2 + $0xe8] sm:$0xff] %vm1394_vm1, %v1119_v27  ;;  %v802_v49 = vadd.f32 %v9719_v21, %v9856_v62  ;;  %v794_v46 = vadd.f32 %v9719_v21, %v9869_v32  ;;  %7736 = vmatprep.mubr.msk.bf16.mxu1 %vm1394_vm1, %v9946_v50  ;;  %v815_v43 = vadd.f32 %v9719_v21, %v7486_v26 }
 0x1b6   : > { %v807_v20 = vadd.f32 %v9719_v21, %v806_v30  ;;  %1428 = vst.msk [vmem:[#allocation2 + $0xf0] sm:$0xff] %vm1394_vm1, %v1120_v23  ;;  %1505 = vst.msk [vmem:[#allocation2 + $0x328] sm:$0xff] %vm1394_vm1, %v1388_v10  ;;  %v944_v45 = vrot.slane %v877_v52, 7  ;;  %v1213_v59 = vrot.slane %v877_v52, 1  ;;  %7737 = vmatmul.mubr.msk.bf16.gmra.mrb[20].mxu1 %vm1394_vm1, %v9955_v56  ;;  %v946_v62 = vrot.slane %v879_v41, 7 }
 0x1b7   : > { %v1215_v32 = vrot.slane %v879_v41, 1  ;;  %v880_v63 = vmax.f32 %v802_v49, 0.0  ;;  %v878_v47 = vmax.f32 %v794_v46, 0.0  ;;  %v9967_v30 = vmax.f32 %v815_v43, 0.0 }
 0x1b8   : > { %v960_v57 = vsel %vm952_vm3, %v943_v31, %v944_v45  ;;  %v1229_v26 = vsel %vm1221_vm4, %v1212_v33, %v1213_v59  ;;  %v9969_v5 = vmax.f32 %v807_v20, 0.0  ;;  %v9979_v33 = vld [vmem:[#allocation2 + $0x210] sm:$0xff]  ;;  %v818_v46 = vadd.f32 %v9719_v21, %v7487_v2 }
 0x1b9   : > { %v1085_v58 = vsel %vm1019_vm5, %v960_v57, 0.0  ;;  %v1353_v7 = vsel %vm1291_vm6, %v1229_v26, 0.0  ;;  %v947_v8 = vrot.slane %v880_v63, 7  ;;  %v1154_v14 = vpack.c.bf16 %v880_v63, %v879_v41  ;;  %v9975_v27 = vld [vmem:[#allocation2 + $0x208] sm:$0xff] }
 0x1ba   : > { %v1389_v24 = vpack.c.bf16 %v1353_v7, %v1230_v34  ;;  %v1216_v19 = vrot.slane %v880_v63, 1  ;;  %v945_v31 = vrot.slane %v878_v47, 7  ;;  %v1153_v23 = vpack.c.bf16 %v878_v47, %v877_v52  ;;  %7543 = vmatmul.mubr.msk.bf16.gmra.mrb[116].mxu0 %vm1394_vm1, %v9975_v27 }
 0x1bb   : > { %v957_v10 = vsel %vm952_vm3, %v946_v62, %v947_v8  ;;  %1469 = vst.msk [vmem:[#allocation2 + $0x220] sm:$0xff] %vm1394_vm1, %v1154_v14  ;;  %v1214_v49 = vrot.slane %v878_v47, 1  ;;  %v810_v41 = vadd.f32 %v9719_v21, %v809_v36  ;;  %7546 = vmatprep.mubr.msk.bf16.mxu0 %vm1394_vm1, %v9979_v33  ;;  %v948_v2 = vrot.slane %v9969_v5, 7 }
 0x1bc   : > { %1506 = vst.msk [vmem:[#allocation2 + $0x330] sm:$0xff] %vm1394_vm1, %v1389_v24  ;;  %v1226_v34 = vsel %vm1221_vm4, %v1215_v32, %v1216_v19  ;;  %v958_v52 = vsel %vm952_vm3, %v945_v31, %v946_v62  ;;  %v959_v43 = vsel %vm952_vm3, %v944_v45, %v945_v31  ;;  %1468 = vst.msk [vmem:[#allocation2 + $0x218] sm:$0xff] %vm1394_vm1, %v1153_v23  ;;  %v9997_v20 = vld [vmem:[#allocation2 + $0xe8] sm:$0xff]  ;;  %v950_v14 = vrot.slane %v9967_v30, 7 }
 0x1bd   : > { %v1087_v21 = vsel %vm1019_vm5, %v958_v52, 0.0  ;;  %v1121_v36 = vpack.c.bf16 %v959_v43, %v1085_v58  ;;  %v1227_v63 = vsel %vm1221_vm4, %v1214_v49, %v1215_v32  ;;  %v1228_v47 = vsel %vm1221_vm4, %v1213_v59, %v1214_v49  ;;  %7740 = vmatprep.mubr.msk.bf16.mxu1 %vm1394_vm1, %v9997_v20  ;;  %v10007_v45 = vld [vmem:[#allocation2 + $0xf0] sm:$0xff] }
 0x1be   : > { %v1122_v62 = vpack.c.bf16 %v957_v10, %v1087_v21  ;;  %v1355_v57 = vsel %vm1291_vm6, %v1227_v63, 0.0  ;;  %v956_v26 = vsel %vm952_vm3, %v947_v8, %v948_v2  ;;  %v1217_v58 = vrot.slane %v9969_v5, 1  ;;  %7741 = vmatmul.mubr.msk.bf16.gmra.mrb[24].mxu1 %vm1394_vm1, %v10007_v45 }
 0x1bf   : > { %v1390_v32 = vpack.c.bf16 %v1355_v57, %v1228_v47  ;;  %1429 = vst.msk [vmem:[#allocation2 + $0xf8] sm:$0xff] %vm1394_vm1, %v1121_v36  ;;  %v884_v59 = vmax.f32 %v818_v46, 0.0  ;;  %v882_v7 = vmax.f32 %v810_v41, 0.0  ;;  %v1219_v24 = vrot.slane %v9967_v30, 1 }
 0x1c0   : > { %1430 = vst.msk [vmem:[#allocation2 + $0x100] sm:$0xff] %vm1394_vm1, %v1122_v62  ;;  %v1089_v31 = vsel %vm1019_vm5, %v956_v26, 0.0  ;;  %v1225_v8 = vsel %vm1221_vm4, %v1216_v19, %v1217_v58 }
 0x1c1   : > { %1507 = vst.msk [vmem:[#allocation2 + $0x338] sm:$0xff] %vm1394_vm1, %v1390_v32  ;;  %v1357_v23 = vsel %vm1291_vm6, %v1225_v8, 0.0  ;;  %v951_v10 = vrot.slane %v884_v59, 7  ;;  %v1156_v49 = vpack.c.bf16 %v884_v59, %v9967_v30  ;;  %v1220_v46 = vrot.slane %v884_v59, 1 }
 0x1c2   : > { %v1391_v41 = vpack.c.bf16 %v1357_v23, %v1226_v34  ;;  %v949_v52 = vrot.slane %v882_v7, 7  ;;  %v1155_v43 = vpack.c.bf16 %v882_v7, %v9969_v5  ;;  %v1218_v21 = vrot.slane %v882_v7, 1  ;;  %v3327_v23 = vld [vmem:[#allocation2 + $0x128] sm:$0xff] }
 0x1c3   : > { %v953_v36 = vsel %vm952_vm3, %v950_v14, %v951_v10  ;;  %v1016_v19 = vsel %vm952_vm3, %v951_v10, %v888_v61  ;;  %v1222_v63 = vsel %vm1221_vm4, %v1219_v24, %v1220_v46  ;;  %v1285_v30 = vsel %vm1221_vm4, %v1220_v46, %v1157_v1  ;;  %1471 = vst.msk [vmem:[#allocation2 + $0x230] sm:$0xff] %vm1394_vm1, %v1156_v49  ;;  %v10042_v5 = vld [vmem:[#allocation2 + $0x218] sm:$0xff]  ;;  %v10056_v1 = vld [vmem:[#allocation2 + $0x220] sm:$0xff]  ;;  %v10102_v46 = vld [vmem:[#allocation2 + $0x10] sm:$0xff] }
 0x1c4   : > { %1508 = vst.msk [vmem:[#allocation2 + $0x340] sm:$0xff] %vm1394_vm1, %v1391_v41  ;;  %v1029_v34 = vsel %vm1019_vm5, %v1016_v19, 0.0  ;;  %v1361_v61 = vsel %vm1291_vm6, %v1285_v30, 0.0  ;;  %v954_v47 = vsel %vm952_vm3, %v949_v52, %v950_v14  ;;  %v955_v55 = vsel %vm952_vm3, %v948_v2, %v949_v52  ;;  %1470 = vst.msk [vmem:[#allocation2 + $0x228] sm:$0xff] %vm1394_vm1, %v1155_v43  ;;  %7547 = vmatmul.mubr.msk.bf16.gmra.mrb[120].mxu0 %vm1394_vm1, %v10042_v5  ;;  %v8740_v52 = vld [vmem:[#allocation6 + $0xc] sm:$0xf] }
 0x1c5   : > { %v1093_v62 = vpack.c.bf16 %v9241_v11, %v1029_v34  ;;  %v1393_v57 = vpack.c.bf16 %v1361_v61, %v1222_v63  ;;  %v1091_v26 = vsel %vm1019_vm5, %v954_v47, 0.0  ;;  %v1123_v32 = vpack.c.bf16 %v955_v55, %v1089_v31  ;;  %7550 = vmatprep.mubr.msk.bf16.mxu0 %vm1394_vm1, %v10056_v1  ;;  %v10109_v43 = vld [vmem:[#allocation2 + $0x130] sm:$0xff]  ;;  %v10125_v19 = vld [vmem:[#allocation2 + $0x20] sm:$0xff]  ;;  %v10133_v30 = vld [vmem:[#allocation2 + $0x148] sm:$0xff] }
 0x1c6   : > { %v1124_v59 = vpack.c.bf16 %v953_v36, %v1091_v26  ;;  %v1223_v2 = vsel %vm1221_vm4, %v1218_v21, %v1219_v24  ;;  %v1224_v7 = vsel %vm1221_vm4, %v1217_v58, %v1218_v21  ;;  %v10067_v14 = vld [vmem:[#allocation2 + $0xf8] sm:$0xff]  ;;  %v2486_v10 = vsel %vm1674_vm2, %v2388_v51, 0  ;;  %v10129_v63 = vld [vmem:[#allocation2 + $0x140] sm:$0xff]  ;;  %v10137_v34 = vld [vmem:[#allocation2 + $0x28] sm:$0xff] }
 0x1c7   : > { %1401 = vst.msk [vmem:[#allocation2 + $0x8] sm:$0xff] %vm1394_vm1, %v1093_v62  ;;  %1510 = vst.msk [vmem:[#allocation2 + $0x350] sm:$0xff] %vm1394_vm1, %v1393_v57  ;;  %v1359_v48 = vsel %vm1291_vm6, %v1223_v2, 0.0  ;;  %7744 = vmatprep.mubr.msk.bf16.mxu1 %vm1394_vm1, %v10067_v14  ;;  %v10076_v11 = vld [vmem:[#allocation2 + $0x100] sm:$0xff]  ;;  %v3944_v41 = vsel %vm1674_vm2, %v9647_v44, 0  ;;  %v10115_v36 = vld [vmem:[#allocation2 + $0x138] sm:$0xff] }
 0x1c8   : > { %1431 = vst.msk [vmem:[#allocation2 + $0x108] sm:$0xff] %vm1394_vm1, %v1123_v32  ;;  %v1392_v24 = vpack.c.bf16 %v1359_v48, %v1224_v7  ;;  %1432 = vst.msk [vmem:[#allocation2 + $0x110] sm:$0xff] %vm1394_vm1, %v1124_v59  ;;  %7745 = vmatmul.mubr.msk.bf16.gmra.mrb[28].mxu1 %vm1394_vm1, %v10076_v11  ;;  %v10111_v21 = vld [vmem:[#allocation6 + $0x18] sm:$0xf]  ;;  %v10141_v61 = vld [vmem:[#allocation2 + $0x30] sm:$0xff] }
 0x1c9   : > { %v10121_v44 = vld [vmem:[#allocation2 + $0x18] sm:$0xff]  ;;  %v10145_v47 = vld [vmem:[#allocation2 + $0x150] sm:$0xff]  ;;  %v10157_v57 = vld [vmem:[#allocation2 + $0x40] sm:$0xff] }
 0x1ca   : > { %1509 = vst.msk [vmem:[#allocation2 + $0x348] sm:$0xff] %vm1394_vm1, %v1392_v24  ;;  %v10149_v55 = vld [vmem:[#allocation2 + $0x158] sm:$0xff]  ;;  %v10161_v26 = vld [vmem:[#allocation2 + $0x160] sm:$0xff]  ;;  %v10165_v32 = vld [vmem:[#allocation2 + $0x168] sm:$0xff] }
 0x1cb   : > { %v10082_v58 = vld [vmem:[#allocation2 + $0x228] sm:$0xff]  ;;  %v10153_v62 = vld [vmem:[#allocation2 + $0x38] sm:$0xff]  ;;  %v10173_v2 = vld [vmem:[#allocation2 + $0x50] sm:$0xff] }
 0x1cc   : > { %7551 = vmatmul.mubr.msk.bf16.gmra.mrb[124].mxu0 %vm1394_vm1, %v10082_v58  ;;  %v10169_v59 = vld [vmem:[#allocation2 + $0x48] sm:$0xff]  ;;  %v10177_v7 = vld [vmem:[#allocation2 + $0x170] sm:$0xff]  ;;  %v10181_v48 = vld [vmem:[#allocation2 + $0x178] sm:$0xff] }
 0x1cd   : > { %7556 = vmatprep.mubr.msk.bf16.mxu0 %vm1394_vm1, %v1511_v42  ;;  %v10185_v24 = vld [vmem:[#allocation2 + $0x58] sm:$0xff]  ;;  %v10189_v42 = vld [vmem:[#allocation2 + $0x60] sm:$0xff] }
 0x1ce   : > { %v10098_v49 = vld [vmem:[#allocation2 + $0x8] sm:$0xff]  ;;  %v8741_v51 = vld [vmem:[#allocation2 + $0x180] sm:$0xff] }
 0x1cf   : > { %v10088_v31 = vld [vmem:[#allocation2 + $0x108] sm:$0xff]  ;;  %v10092_v8 = vld [vmem:[#allocation2 + $0x110] sm:$0xff] }
 0x1d0   : > { %7748 = vmatprep.mubr.msk.bf16.mxu1 %vm1394_vm1, %v10088_v31 }
 0x1d1   : > { %7749 = vmatmul.mubr.msk.bf16.gmra.mrb[32].mxu1 %vm1394_vm1, %v10092_v8 }
 0x1d2   : > { %7754 = vmatprep.mubr.msk.bf16.mxu1 %vm1394_vm1, %v3327_v23  ;;  %v10196_v23 = vld [vmem:[#allocation2 + $0x68] sm:$0xff] }
 0x1d4   : > { %7557 = vmatmul.mubr.msk.bf16.vlgmr.msra.gmra.mrb[64].mxu0 %vm1394_vm1, %v10098_v49 }
 0x1d5   : > { %7560 = vmatprep.mubr.msk.bf16.mxu0 %vm1394_vm1, %v10102_v46  ;;  %7621 = vmatpush3.bf16.msra.mxu0 %v2486_v10  ;;  %v10200_v10 = vld [vmem:[#allocation2 + $0x70] sm:$0xff] }
 0x1d6   : > { %8665 = vmatprep.subr.msk.bf16.mxu0 %vm1674_vm2, %v8740_v52  ;;  %v10374_v52 = vld [vmem:[#allocation2 + $0x2c0] sm:$0xff] }
 0x1d9   : > { %7755 = vmatmul.mubr.msk.bf16.vlgmr.msra.gmra.mrb[36].mxu1 %vm1394_vm1, %v10109_v43 }
 0x1da   : > { %7819 = vmatpush3.bf16.msra.mxu1 %v3944_v41  ;;  %7758 = vmatprep.mubr.msk.bf16.mxu1 %vm1394_vm1, %v10115_v36  ;;  %v1527_v41 = vld [vmem:[#allocation2 + $0x90] sm:$0xff] }
 0x1db   : > { %8669 = vmatprep.subr.msk.bf16.mxu1 %vm1674_vm2, %v10111_v21 }
 0x1dc   : > { %7561 = vmatmul.mubr.msk.bf16.gmra.mrb[68].mxu0 %vm1394_vm1, %v10121_v44 }
 0x1dd   : > { %7564 = vmatprep.mubr.msk.bf16.mxu0 %vm1394_vm1, %v10125_v19 }
 0x1e1   : > { %7759 = vmatmul.mubr.msk.bf16.gmra.mrb[40].mxu1 %vm1394_vm1, %v10129_v63 }
 0x1e2   : > { %7762 = vmatprep.mubr.msk.bf16.mxu1 %vm1394_vm1, %v10133_v30 }
 0x1e4   : > { %7565 = vmatmul.mubr.msk.bf16.gmra.mrb[72].mxu0 %vm1394_vm1, %v10137_v34 }
 0x1e5   : > { %7568 = vmatprep.mubr.msk.bf16.mxu0 %vm1394_vm1, %v10141_v61 }
 0x1e9   : > { %7763 = vmatmul.mubr.msk.bf16.gmra.mrb[44].mxu1 %vm1394_vm1, %v10145_v47 }
 0x1ea   : > { %7766 = vmatprep.mubr.msk.bf16.mxu1 %vm1394_vm1, %v10149_v55 }
 0x1ec   : > { %7569 = vmatmul.mubr.msk.bf16.gmra.mrb[76].mxu0 %vm1394_vm1, %v10153_v62 }
 0x1ed   : > { %7572 = vmatprep.mubr.msk.bf16.mxu0 %vm1394_vm1, %v10157_v57 }
 0x1f1   : > { %7767 = vmatmul.mubr.msk.bf16.gmra.mrb[48].mxu1 %vm1394_vm1, %v10161_v26 }
 0x1f2   : > { %7770 = vmatprep.mubr.msk.bf16.mxu1 %vm1394_vm1, %v10165_v32 }
 0x1f4   : > { %7573 = vmatmul.mubr.msk.bf16.gmra.mrb[80].mxu0 %vm1394_vm1, %v10169_v59 }
 0x1f5   : > { %7576 = vmatprep.mubr.msk.bf16.mxu0 %vm1394_vm1, %v10173_v2 }
 0x1f9   : > { %7771 = vmatmul.mubr.msk.bf16.gmra.mrb[52].mxu1 %vm1394_vm1, %v10177_v7 }
 0x1fa   : > { %7774 = vmatprep.mubr.msk.bf16.mxu1 %vm1394_vm1, %v10181_v48 }
 0x1fc   : > { %7577 = vmatmul.mubr.msk.bf16.gmra.mrb[84].mxu0 %vm1394_vm1, %v10185_v24 }
 0x1fd   : > { %7580 = vmatprep.mubr.msk.bf16.mxu0 %vm1394_vm1, %v10189_v42 }
 0x201   : > { %7775 = vmatmul.mubr.msk.bf16.gmra.mrb[56].mxu1 %vm1394_vm1, %v8741_v51  ;;  %v10380_v51 = vld [vmem:[#allocation2 + $0x2e0] sm:$0xff] }
 0x202   : > { %7778 = vmatprep.mubr.msk.bf16.mxu1 %vm1394_vm1, %v9563_v29  ;;  %v10211_v29 = vld [vmem:[#allocation2 + $0x1a0] sm:$0xff] }
 0x204   : > { %7581 = vmatmul.mubr.msk.bf16.gmra.mrb[88].mxu0 %vm1394_vm1, %v10196_v23 }
 0x205   : > { %7584 = vmatprep.mubr.msk.bf16.mxu0 %vm1394_vm1, %v10200_v10 }
 0x209   : > { %7779 = vmatmul.mubr.msk.bf16.gmra.mrb[60].mxu1 %vm1394_vm1, %v9577_v37  ;;  %v2355_v37 = vld [vmem:[#allocation2 + $0x240] sm:$0xff] }
 0x20a   : > { %7782 = vmatprep.mubr.msk.bf16.mxu1 %vm1394_vm1, %v9622_v17  ;;  %v10276_v17 = vld [vmem:[#allocation2 + $0x230] sm:$0xff] }
 0x20c   : > { %7585 = vmatmul.mubr.msk.bf16.gmra.mrb[92].mxu0 %vm1394_vm1, %v9636_v35  ;;  %v3813_v35 = vld [vmem:[#allocation2 + $0x248] sm:$0xff] }
 0x20d   : > { %7588 = vmatprep.mubr.msk.bf16.mxu0 %vm1394_vm1, %v1527_v41  ;;  %v10386_v41 = vld [vmem:[#allocation2 + $0x2e8] sm:$0xff] }
 0x211   : > { %7783 = vmatmul.mubr.msk.bf16.gmra.mrb[0].mxu1 %vm1394_vm1, %v10211_v29 }
 0x212   : > { %7786 = vmatprep.mubr.msk.bf16.mxu1 %vm1394_vm1, %v9657_v60  ;;  %v10282_v60 = vld [vmem:[#allocation2 + $0x250] sm:$0xff] }
 0x214   : > { %7589 = vmatmul.mubr.msk.bf16.gmra.mrb[96].mxu0 %vm1394_vm1, %v9690_v12  ;;  %v10289_v12 = vld [vmem:[#allocation6 + $0x1c] sm:$0xf] }
 0x215   : > { %7592 = vmatprep.mubr.msk.bf16.mxu0 %vm1394_vm1, %v9702_v16  ;;  %v10293_v16 = vld [vmem:[#allocation2 + $0x258] sm:$0xff] }
 0x219   : > { %7787 = vmatmul.mubr.msk.bf16.gmra.mrb[4].mxu1 %vm1394_vm1, %v9688_v9  ;;  %v4431_v9 = vsel %vm1674_vm2, %v10111_v21, 0  ;;  %v3829_v21 = vld [vmem:[#allocation2 + $0x2d8] sm:$0xff] }
 0x21a   : > { %7790 = vmatprep.mubr.msk.bf16.mxu1 %vm1394_vm1, %v9741_v0  ;;  %v10307_v0 = vld [vmem:[#allocation2 + $0x268] sm:$0xff] }
 0x21c   : > { %7593 = vmatmul.mubr.msk.bf16.gmra.mrb[100].mxu0 %vm1394_vm1, %v9767_v4  ;;  %v10319_v4 = vld [vmem:[#allocation2 + $0x278] sm:$0xff] }
 0x21d   : > { %7596 = vmatprep.mubr.msk.bf16.mxu0 %vm1394_vm1, %v9774_v22  ;;  %v10325_v22 = vld [vmem:[#allocation2 + $0x280] sm:$0xff] }
 0x221   : > { %7791 = vmatmul.mubr.msk.bf16.gmra.mrb[8].mxu1 %vm1394_vm1, %v9753_v3  ;;  %v10313_v3 = vld [vmem:[#allocation2 + $0x270] sm:$0xff] }
 0x222   : > { %7794 = vmatprep.mubr.msk.bf16.mxu1 %vm1394_vm1, %v9807_v38  ;;  %v10331_v38 = vld [vmem:[#allocation2 + $0x288] sm:$0xff] }
 0x224   : > { %7597 = vmatmul.mubr.msk.bf16.gmra.mrb[104].mxu0 %vm1394_vm1, %v9826_v6  ;;  %v10343_v6 = vld [vmem:[#allocation2 + $0x298] sm:$0xff] }
 0x225   : > { %7600 = vmatprep.mubr.msk.bf16.mxu0 %vm1394_vm1, %v9833_v40  ;;  %v10349_v40 = vld [vmem:[#allocation2 + $0x2a0] sm:$0xff] }
 0x229   : > { %7795 = vmatmul.mubr.msk.bf16.gmra.mrb[12].mxu1 %vm1394_vm1, %v9818_v54  ;;  %v10337_v54 = vld [vmem:[#allocation2 + $0x290] sm:$0xff] }
 0x22a   : > { %7798 = vmatprep.mubr.msk.bf16.mxu1 %vm1394_vm1, %v9854_v53  ;;  %v10355_v53 = vld [vmem:[#allocation2 + $0x2a8] sm:$0xff] }
 0x22c   : > { %7601 = vmatmul.mubr.msk.bf16.gmra.mrb[108].mxu0 %vm1394_vm1, %v9892_v15 }
 0x22d   : > { %7604 = vmatprep.mubr.msk.bf16.mxu0 %vm1394_vm1, %v9894_v18 }
 0x231   : > { %7799 = vmatmul.mubr.msk.bf16.gmra.mrb[16].mxu1 %vm1394_vm1, %v9881_v28  ;;  %v10361_v28 = vld [vmem:[#allocation2 + $0x2b0] sm:$0xff] }
 0x232   : > { %7802 = vmatprep.mubr.msk.bf16.mxu1 %vm1394_vm1, %v9923_v25  ;;  %v10367_v25 = vld [vmem:[#allocation2 + $0x2b8] sm:$0xff] }
 0x234   : > { %7605 = vmatmul.mubr.msk.bf16.gmra.mrb[112].mxu0 %vm1394_vm1, %v9946_v50 }
 0x235   : > { %7608 = vmatprep.mubr.msk.bf16.mxu0 %vm1394_vm1, %v9955_v56 }
 0x239   : > { %7803 = vmatmul.mubr.msk.bf16.gmra.mrb[20].mxu1 %vm1394_vm1, %v9935_v13  ;;  %v2371_v13 = vld [vmem:[#allocation2 + $0x2d0] sm:$0xff] }
 0x23a   : > { %7806 = vmatprep.mubr.msk.bf16.mxu1 %vm1394_vm1, %v9975_v27 }
 0x23c   : > { %7609 = vmatmul.mubr.msk.bf16.gmra.mrb[116].mxu0 %vm1394_vm1, %v9997_v20 }
 0x23d   : > { %7612 = vmatprep.mubr.msk.bf16.mxu0 %vm1394_vm1, %v10007_v45 }
 0x241   : > { %7807 = vmatmul.mubr.msk.bf16.gmra.mrb[24].mxu1 %vm1394_vm1, %v9979_v33 }
 0x242   : > { %7810 = vmatprep.mubr.msk.bf16.mxu1 %vm1394_vm1, %v10042_v5 }
 0x244   : > { %7613 = vmatmul.mubr.msk.bf16.gmra.mrb[120].mxu0 %vm1394_vm1, %v10067_v14 }
 0x245   : > { %7616 = vmatprep.mubr.msk.bf16.mxu0 %vm1394_vm1, %v10076_v11 }
 0x249   : > { %7811 = vmatmul.mubr.msk.bf16.gmra.mrb[28].mxu1 %vm1394_vm1, %v10056_v1 }
 0x24a   : > { %7814 = vmatprep.mubr.msk.bf16.mxu1 %vm1394_vm1, %v10082_v58 }
 0x24c   : > { %7617 = vmatmul.mubr.msk.bf16.gmra.mrb[124].mxu0 %vm1394_vm1, %v10088_v31 }
 0x24d   : > { %7622 = vmatprep.mubr.msk.bf16.mxu0 %vm1394_vm1, %v2355_v37  ;;  %v10392_v37 = vld [vmem:[#allocation2 + $0x2f0] sm:$0xff] }
 0x251   : > { %7815 = vmatmul.mubr.msk.bf16.gmra.mrb[32].mxu1 %vm1394_vm1, %v10276_v17 }
 0x252   : > { %7820 = vmatprep.mubr.msk.bf16.mxu1 %vm1394_vm1, %v3813_v35 }
 0x254   : > { %7623 = vmatmul.mubr.msk.bf16.vlgmr.msra.gmra.mrb[64].mxu0 %vm1394_vm1, %v3813_v35  ;;  %v10398_v35 = vld [vmem:[#allocation2 + $0x2f8] sm:$0xff] }
 0x255   : > { %7626 = vmatprep.mubr.msk.bf16.mxu0 %vm1394_vm1, %v10282_v60  ;;  %7687 = vmatpush3.bf16.msra.mxu0 %v9196_v39  ;;  %v10301_v39 = vld [vmem:[#allocation2 + $0x260] sm:$0xff]  ;;  %11312 = vst [vmem:[#allocation12_spill] sm:$0xff] %v10398_v35 }
 0x259   : > { %7821 = vmatmul.mubr.msk.bf16.vlgmr.msra.gmra.mrb[36].mxu1 %vm1394_vm1, %v10282_v60 }
 0x25a   : > { %7885 = vmatpush3.bf16.msra.mxu1 %v4431_v9  ;;  %7824 = vmatprep.mubr.msk.bf16.mxu1 %vm1394_vm1, %v10293_v16  ;;  %v10404_v9 = vld [vmem:[#allocation2 + $0x300] sm:$0xff] }
 0x25b   : > { %8670 = vmatprep.subr.msk.bf16.mxu1 %vm1674_vm2, %v10289_v12  ;;  %11313 = vst [vmem:[#allocation13_spill] sm:$0xff] %v10404_v9 }
 0x25c   : > { %7627 = vmatmul.mubr.msk.bf16.gmra.mrb[68].mxu0 %vm1394_vm1, %v10293_v16 }
 0x25d   : > { %7630 = vmatprep.mubr.msk.bf16.mxu0 %vm1394_vm1, %v10301_v39 }
 0x261   : > { %7825 = vmatmul.mubr.msk.bf16.gmra.mrb[40].mxu1 %vm1394_vm1, %v10301_v39 }
 0x262   : > { %7828 = vmatprep.mubr.msk.bf16.mxu1 %vm1394_vm1, %v10307_v0 }
 0x264   : > { %7631 = vmatmul.mubr.msk.bf16.gmra.mrb[72].mxu0 %vm1394_vm1, %v10307_v0 }
 0x265   : > { %7634 = vmatprep.mubr.msk.bf16.mxu0 %vm1394_vm1, %v10313_v3 }
 0x269   : > { %7829 = vmatmul.mubr.msk.bf16.gmra.mrb[44].mxu1 %vm1394_vm1, %v10313_v3 }
 0x26a   : > { %7832 = vmatprep.mubr.msk.bf16.mxu1 %vm1394_vm1, %v10319_v4 }
 0x26c   : > { %7635 = vmatmul.mubr.msk.bf16.gmra.mrb[76].mxu0 %vm1394_vm1, %v10319_v4 }
 0x26d   : > { %7638 = vmatprep.mubr.msk.bf16.mxu0 %vm1394_vm1, %v10325_v22 }
 0x271   : > { %7833 = vmatmul.mubr.msk.bf16.gmra.mrb[48].mxu1 %vm1394_vm1, %v10325_v22 }
 0x272   : > { %7836 = vmatprep.mubr.msk.bf16.mxu1 %vm1394_vm1, %v10331_v38 }
 0x274   : > { %7639 = vmatmul.mubr.msk.bf16.gmra.mrb[80].mxu0 %vm1394_vm1, %v10331_v38 }
 0x275   : > { %7642 = vmatprep.mubr.msk.bf16.mxu0 %vm1394_vm1, %v10337_v54 }
 0x279   : > { %7837 = vmatmul.mubr.msk.bf16.gmra.mrb[52].mxu1 %vm1394_vm1, %v10337_v54 }
 0x27a   : > { %7840 = vmatprep.mubr.msk.bf16.mxu1 %vm1394_vm1, %v10343_v6 }
 0x27c   : > { %7643 = vmatmul.mubr.msk.bf16.gmra.mrb[84].mxu0 %vm1394_vm1, %v10343_v6 }
 0x27d   : > { %7646 = vmatprep.mubr.msk.bf16.mxu0 %vm1394_vm1, %v10349_v40 }
 0x281   : > { %7841 = vmatmul.mubr.msk.bf16.gmra.mrb[56].mxu1 %vm1394_vm1, %v10349_v40 }
 0x282   : > { %7844 = vmatprep.mubr.msk.bf16.mxu1 %vm1394_vm1, %v10355_v53 }
 0x284   : > { %7647 = vmatmul.mubr.msk.bf16.gmra.mrb[88].mxu0 %vm1394_vm1, %v10355_v53 }
 0x285   : > { %7650 = vmatprep.mubr.msk.bf16.mxu0 %vm1394_vm1, %v10361_v28 }
 0x289   : > { %7845 = vmatmul.mubr.msk.bf16.gmra.mrb[60].mxu1 %vm1394_vm1, %v10361_v28 }
 0x28a   : > { %7848 = vmatprep.mubr.msk.bf16.mxu1 %vm1394_vm1, %v10367_v25 }
 0x28c   : > { %7651 = vmatmul.mubr.msk.bf16.gmra.mrb[92].mxu0 %vm1394_vm1, %v10367_v25 }
 0x28d   : > { %7654 = vmatprep.mubr.msk.bf16.mxu0 %vm1394_vm1, %v2371_v13  ;;  %v10410_v13 = vld [vmem:[#allocation2 + $0x308] sm:$0xff] }
 0x28e   : > { %11314 = vst [vmem:[#allocation14_spill] sm:$0xff] %v10410_v13 }
 0x291   : > { %7849 = vmatmul.mubr.msk.bf16.gmra.mrb[0].mxu1 %vm1394_vm1, %v10374_v52 }
 0x292   : > { %7852 = vmatprep.mubr.msk.bf16.mxu1 %vm1394_vm1, %v3829_v21 }
 0x294   : > { %7655 = vmatmul.mubr.msk.bf16.gmra.mrb[96].mxu0 %vm1394_vm1, %v3829_v21  ;;  %v10416_v21 = vld [vmem:[#allocation2 + $0x310] sm:$0xff] }
 0x295   : > { %7658 = vmatprep.mubr.msk.bf16.mxu0 %vm1394_vm1, %v10380_v51  ;;  %11315 = vst [vmem:[#allocation15_spill] sm:$0xff] %v10416_v21 }
 0x299   : > { %7853 = vmatmul.mubr.msk.bf16.gmra.mrb[4].mxu1 %vm1394_vm1, %v10380_v51 }
 0x29a   : > { %7856 = vmatprep.mubr.msk.bf16.mxu1 %vm1394_vm1, %v10386_v41 }
 0x29c   : > { %7659 = vmatmul.mubr.msk.bf16.gmra.mrb[100].mxu0 %vm1394_vm1, %v10386_v41 }
 0x29d   : > { %7662 = vmatprep.mubr.msk.bf16.mxu0 %vm1394_vm1, %v10392_v37 }
 0x2a1   : > { %7857 = vmatmul.mubr.msk.bf16.gmra.mrb[8].mxu1 %vm1394_vm1, %v10392_v37 }
 0x2a2   : > { %7860 = vmatprep.mubr.msk.bf16.mxu1 %vm1394_vm1, %v10398_v35 }
 0x2a4   : > { %7663 = vmatmul.mubr.msk.bf16.gmra.mrb[104].mxu0 %vm1394_vm1, %v10398_v35  ;;  %v10422_v35 = vld [vmem:[#allocation2 + $0x318] sm:$0xff] }
 0x2a5   : > { %7666 = vmatprep.mubr.msk.bf16.mxu0 %vm1394_vm1, %v10404_v9  ;;  %11316 = vst [vmem:[#allocation16_spill] sm:$0xff] %v10422_v35 }
 0x2a9   : > { %7861 = vmatmul.mubr.msk.bf16.gmra.mrb[12].mxu1 %vm1394_vm1, %v10404_v9  ;;  %v10428_v9 = vld [vmem:[#allocation2 + $0x320] sm:$0xff] }
 0x2aa   : > { %7864 = vmatprep.mubr.msk.bf16.mxu1 %vm1394_vm1, %v10410_v13  ;;  %11317 = vst [vmem:[#allocation17_spill] sm:$0xff] %v10428_v9 }
 0x2ac   : > { %7667 = vmatmul.mubr.msk.bf16.gmra.mrb[108].mxu0 %vm1394_vm1, %v10410_v13  ;;  %v10434_v13 = vld [vmem:[#allocation2 + $0x328] sm:$0xff] }
 0x2ad   : > { %7670 = vmatprep.mubr.msk.bf16.mxu0 %vm1394_vm1, %v10416_v21  ;;  %11318 = vst [vmem:[#allocation18_spill] sm:$0xff] %v10434_v13 }
 0x2b1   : > { %7865 = vmatmul.mubr.msk.bf16.gmra.mrb[16].mxu1 %vm1394_vm1, %v10416_v21  ;;  %v10440_v21 = vld [vmem:[#allocation2 + $0x330] sm:$0xff] }
 0x2b2   : > { %7868 = vmatprep.mubr.msk.bf16.mxu1 %vm1394_vm1, %v10422_v35 }
 0x2b4   : > { %7671 = vmatmul.mubr.msk.bf16.gmra.mrb[112].mxu0 %vm1394_vm1, %v10422_v35  ;;  %v10446_v35 = vld [vmem:[#allocation2 + $0x338] sm:$0xff] }
 0x2b5   : > { %7674 = vmatprep.mubr.msk.bf16.mxu0 %vm1394_vm1, %v10428_v9  ;;  %11319 = vst [vmem:[#allocation19_spill] sm:$0xff] %v10446_v35 }
 0x2b9   : > { %7869 = vmatmul.mubr.msk.bf16.gmra.mrb[20].mxu1 %vm1394_vm1, %v10428_v9  ;;  %v10452_v9 = vld [vmem:[#allocation2 + $0x340] sm:$0xff] }
 0x2ba   : > { %7872 = vmatprep.mubr.msk.bf16.mxu1 %vm1394_vm1, %v10434_v13  ;;  %11320 = vst [vmem:[#allocation20_spill] sm:$0xff] %v10452_v9 }
 0x2bc   : > { %7675 = vmatmul.mubr.msk.bf16.gmra.mrb[116].mxu0 %vm1394_vm1, %v10434_v13  ;;  %v10458_v13 = vld [vmem:[#allocation2 + $0x348] sm:$0xff] }
 0x2bd   : > { %7678 = vmatprep.mubr.msk.bf16.mxu0 %vm1394_vm1, %v10440_v21  ;;  %11321 = vst [vmem:[#allocation21_spill] sm:$0xff] %v10458_v13 }
 0x2c1   : > { %7873 = vmatmul.mubr.msk.bf16.gmra.mrb[24].mxu1 %vm1394_vm1, %v10440_v21 }
 0x2c2   : > { %7876 = vmatprep.mubr.msk.bf16.mxu1 %vm1394_vm1, %v10446_v35 }
 0x2c4   : > { %7679 = vmatmul.mubr.msk.bf16.gmra.mrb[120].mxu0 %vm1394_vm1, %v10446_v35  ;;  %v10466_v35 = vld [vmem:[#allocation2 + $0x350] sm:$0xff] }
 0x2c5   : > { %7682 = vmatprep.mubr.msk.bf16.mxu0 %vm1394_vm1, %v10452_v9 }
 0x2c9   : > { %7877 = vmatmul.mubr.msk.bf16.gmra.mrb[28].mxu1 %vm1394_vm1, %v10452_v9  ;;  %v5307_v9 = vld [vmem:[#allocation6 + $0x20] sm:$0xf] }
 0x2ca   : > { %7880 = vmatprep.mubr.msk.bf16.mxu1 %vm1394_vm1, %v10458_v13 }
 0x2cc   : > { %7683 = vmatmul.mubr.msk.bf16.gmra.mrb[124].mxu0 %vm1394_vm1, %v10458_v13  ;;  %v4918_v13 = vsel %vm1674_vm2, %v10289_v12, 0  ;;  %v4800_v12 = vld [vmem:[#allocation2 + $0x198] sm:$0xff] }
 0x2cd   : > { %7688 = vmatprep.mubr.msk.bf16.mxu0 %vm1394_vm1, %v10098_v49  ;;  %v4313_v49 = vld [vmem:[#allocation2 + $0x78] sm:$0xff] }
 0x2d1   : > { %7881 = vmatmul.mubr.msk.bf16.gmra.mrb[32].mxu1 %vm1394_vm1, %v10466_v35 }
 0x2d2   : > { %7886 = vmatprep.mubr.msk.bf16.mxu1 %vm1394_vm1, %v10102_v46 }
 0x2d4   : > { %7689 = vmatmul.mubr.msk.bf16.vlgmr.msra.gmra.mrb[64].mxu0 %vm1394_vm1, %v10102_v46  ;;  %v4314_v46 = vld [vmem:[#allocation2 + $0x80] sm:$0xff] }
 0x2d5   : > { %7692 = vmatprep.mubr.msk.bf16.mxu0 %vm1394_vm1, %v10121_v44 }
 0x2d9   : > { %7887 = vmatmul.mubr.msk.bf16.vlgmr.msra.gmra.mrb[36].mxu1 %vm1394_vm1, %v10121_v44  ;;  %v4315_v44 = vld [vmem:[#allocation2 + $0x88] sm:$0xff] }
 0x2da   : > { %7951 = vmatpush3.bf16.msra.mxu1 %v4918_v13  ;;  %7890 = vmatprep.mubr.msk.bf16.mxu1 %vm1394_vm1, %v10125_v19 }
 0x2db   : > { %8671 = vmatprep.subr.msk.bf16.mxu1 %vm1674_vm2, %v5307_v9 }
 0x2dc   : > { %7693 = vmatmul.mubr.msk.bf16.gmra.mrb[68].mxu0 %vm1394_vm1, %v10125_v19  ;;  %v4316_v19 = vld [vmem:[#allocation2 + $0xa0] sm:$0xff] }
 0x2dd   : > { %7696 = vmatprep.mubr.msk.bf16.mxu0 %vm1394_vm1, %v10137_v34 }
 0x2e1   : > { %7891 = vmatmul.mubr.msk.bf16.gmra.mrb[40].mxu1 %vm1394_vm1, %v10137_v34  ;;  %v4317_v34 = vld [vmem:[#allocation2 + $0xa8] sm:$0xff] }
 0x2e2   : > { %7894 = vmatprep.mubr.msk.bf16.mxu1 %vm1394_vm1, %v10141_v61 }
 0x2e4   : > { %7697 = vmatmul.mubr.msk.bf16.gmra.mrb[72].mxu0 %vm1394_vm1, %v10141_v61  ;;  %v4318_v61 = vld [vmem:[#allocation2 + $0xb0] sm:$0xff] }
 0x2e5   : > { %7700 = vmatprep.mubr.msk.bf16.mxu0 %vm1394_vm1, %v10153_v62 }
 0x2e9   : > { %7895 = vmatmul.mubr.msk.bf16.gmra.mrb[44].mxu1 %vm1394_vm1, %v10153_v62  ;;  %v4319_v62 = vld [vmem:[#allocation2 + $0xb8] sm:$0xff] }
 0x2ea   : > { %7898 = vmatprep.mubr.msk.bf16.mxu1 %vm1394_vm1, %v10157_v57 }
 0x2ec   : > { %7701 = vmatmul.mubr.msk.bf16.gmra.mrb[76].mxu0 %vm1394_vm1, %v10157_v57  ;;  %v4320_v57 = vld [vmem:[#allocation2 + $0xc0] sm:$0xff] }
 0x2ed   : > { %7704 = vmatprep.mubr.msk.bf16.mxu0 %vm1394_vm1, %v10169_v59 }
 0x2f1   : > { %7899 = vmatmul.mubr.msk.bf16.gmra.mrb[48].mxu1 %vm1394_vm1, %v10169_v59 }
 0x2f2   : > { %7902 = vmatprep.mubr.msk.bf16.mxu1 %vm1394_vm1, %v10173_v2 }
 0x2f4   : > { %7705 = vmatmul.mubr.msk.bf16.gmra.mrb[80].mxu0 %vm1394_vm1, %v10173_v2 }
 0x2f5   : > { %7708 = vmatprep.mubr.msk.bf16.mxu0 %vm1394_vm1, %v10185_v24 }
 0x2f9   : > { %7903 = vmatmul.mubr.msk.bf16.gmra.mrb[52].mxu1 %vm1394_vm1, %v10185_v24  ;;  %v4798_v24 = vld [vmem:[#allocation2 + $0x188] sm:$0xff] }
 0x2fa   : > { %7906 = vmatprep.mubr.msk.bf16.mxu1 %vm1394_vm1, %v10189_v42 }
 0x2fc   : > { %7709 = vmatmul.mubr.msk.bf16.gmra.mrb[84].mxu0 %vm1394_vm1, %v10189_v42  ;;  %v4799_v42 = vld [vmem:[#allocation2 + $0x190] sm:$0xff] }
 0x2fd   : > { %7712 = vmatprep.mubr.msk.bf16.mxu0 %vm1394_vm1, %v10196_v23 }
 0x301   : > { %7907 = vmatmul.mubr.msk.bf16.gmra.mrb[56].mxu1 %vm1394_vm1, %v10196_v23 }
 0x302   : > { %7910 = vmatprep.mubr.msk.bf16.mxu1 %vm1394_vm1, %v10200_v10 }
 0x304   : > { %7713 = vmatmul.mubr.msk.bf16.gmra.mrb[88].mxu0 %vm1394_vm1, %v10200_v10 }
 0x309   : > { %7911 = vmatmul.mubr.msk.bf16.gmra.mrb[60].mxu1 %vm1394_vm1, %v4313_v49 }
 0x30a   : > { %7914 = vmatprep.mubr.msk.bf16.mxu1 %vm1394_vm1, %v4314_v46  ;;  %v4802_v46 = vld [vmem:[#allocation2 + $0x1a8] sm:$0xff] }
 0x311   : > { %7915 = vmatmul.mubr.msk.bf16.gmra.mrb[0].mxu1 %vm1394_vm1, %v4315_v44 }
 0x312   : > { %7918 = vmatprep.mubr.msk.bf16.mxu1 %vm1394_vm1, %v4316_v19 }
 0x319   : > { %7919 = vmatmul.mubr.msk.bf16.gmra.mrb[4].mxu1 %vm1394_vm1, %v4317_v34  ;;  %v4803_v34 = vld [vmem:[#allocation2 + $0x1c0] sm:$0xff] }
 0x31a   : > { %7922 = vmatprep.mubr.msk.bf16.mxu1 %vm1394_vm1, %v4318_v61 }
 0x321   : > { %7923 = vmatmul.mubr.msk.bf16.gmra.mrb[8].mxu1 %vm1394_vm1, %v4319_v62 }
 0x322   : > { %7926 = vmatprep.mubr.msk.bf16.mxu1 %vm1394_vm1, %v4320_v57 }
 0x329   : > { %7927 = vmatmul.mubr.msk.bf16.gmra.mrb[12].mxu1 %vm1394_vm1, %v9892_v15  ;;  %v4331_v15 = vld [vmem:[#allocation2 + $0x118] sm:$0xff] }
 0x32a   : > { %7930 = vmatprep.mubr.msk.bf16.mxu1 %vm1394_vm1, %v9894_v18  ;;  %v5405_v18 = vsel %vm1674_vm2, %v5307_v9, 0 }
 0x331   : > { %7931 = vmatmul.mubr.msk.bf16.gmra.mrb[16].mxu1 %vm1394_vm1, %v9946_v50 }
 0x332   : > { %7934 = vmatprep.mubr.msk.bf16.mxu1 %vm1394_vm1, %v9955_v56 }
 0x339   : > { %7935 = vmatmul.mubr.msk.bf16.gmra.mrb[20].mxu1 %vm1394_vm1, %v9997_v20 }
 0x33a   : > { %7938 = vmatprep.mubr.msk.bf16.mxu1 %vm1394_vm1, %v10007_v45 }
 0x341   : > { %7939 = vmatmul.mubr.msk.bf16.gmra.mrb[24].mxu1 %vm1394_vm1, %v10067_v14 }
 0x342   : > { %7942 = vmatprep.mubr.msk.bf16.mxu1 %vm1394_vm1, %v10076_v11 }
 0x349   : > { %7943 = vmatmul.mubr.msk.bf16.gmra.mrb[28].mxu1 %vm1394_vm1, %v10088_v31 }
 0x34a   : > { %7946 = vmatprep.mubr.msk.bf16.mxu1 %vm1394_vm1, %v10092_v8 }
 0x351   : > { %7947 = vmatmul.mubr.msk.bf16.gmra.mrb[32].mxu1 %vm1394_vm1, %v4331_v15  ;;  %v4804_v15 = vld [vmem:[#allocation2 + $0x1c8] sm:$0xff] }
 0x352   : > { %7952 = vmatprep.mubr.msk.bf16.mxu1 %vm1394_vm1, %v10109_v43 }
 0x359   : > { %7953 = vmatmul.mubr.msk.bf16.vlgmr.msra.gmra.mrb[36].mxu1 %vm1394_vm1, %v10115_v36 }
 0x35a   : > { %8017 = vmatpush3.bf16.msra.mxu1 %v5405_v18  ;;  %7956 = vmatprep.mubr.msk.bf16.mxu1 %vm1394_vm1, %v10129_v63  ;;  %v4805_v18 = vld [vmem:[#allocation2 + $0x1d0] sm:$0xff] }
 0x35f   : > { %v10561_v50 = vpop.f32.mrb[92].mxu0 }
 0x360   : > { %v10563_v56 = vpop.f32.mrb[93].mxu0 }
 0x361   : > { %7957 = vmatmul.mubr.msk.bf16.gmra.mrb[40].mxu1 %vm1394_vm1, %v10133_v30  ;;  %v10567_v20 = vpop.f32.mrb[94].mxu0 }
 0x362   : > { %7960 = vmatprep.mubr.msk.bf16.mxu1 %vm1394_vm1, %v10145_v47  ;;  %v10571_v45 = vpop.f32.mrb[95].mxu0 }
 0x367   : > { %v10573_v14 = vpop.f32.mrb[96].mxu0 }
 0x368   : > { %v10575_v11 = vpop.f32.mrb[97].mxu0 }
 0x369   : > { %7961 = vmatmul.mubr.msk.bf16.gmra.mrb[44].mxu1 %vm1394_vm1, %v10149_v55  ;;  %v10579_v31 = vpop.f32.mrb[98].mxu0 }
 0x36a   : > { %7964 = vmatprep.mubr.msk.bf16.mxu1 %vm1394_vm1, %v10161_v26  ;;  %v10583_v8 = vpop.f32.mrb[99].mxu0  ;;  %v4797_v26 = vld [vmem:[#allocation2 + $0x180] sm:$0xff] }
 0x36f   : > { %v10585_v43 = vpop.f32.mrb[100].mxu0 }
 0x370   : > { %v10587_v36 = vpop.f32.mrb[101].mxu0 }
 0x371   : > { %7965 = vmatmul.mubr.msk.bf16.gmra.mrb[48].mxu1 %vm1394_vm1, %v10165_v32  ;;  %v10591_v63 = vpop.f32.mrb[102].mxu0 }
 0x372   : > { %7968 = vmatprep.mubr.msk.bf16.mxu1 %vm1394_vm1, %v10177_v7  ;;  %v10595_v30 = vpop.f32.mrb[103].mxu0 }
 0x377   : > { %v10597_v47 = vpop.f32.mrb[104].mxu0 }
 0x378   : > { %v10599_v55 = vpop.f32.mrb[105].mxu0 }
 0x379   : > { %7969 = vmatmul.mubr.msk.bf16.gmra.mrb[52].mxu1 %vm1394_vm1, %v10181_v48  ;;  %v10603_v59 = vpop.f32.mrb[106].mxu0 }
 0x37a   : > { %7972 = vmatprep.mubr.msk.bf16.mxu1 %vm1394_vm1, %v4797_v26  ;;  %v10606_v32 = vpop.f32.mrb[107].mxu0 }
 0x37b   : > { %11322 = vst [vmem:[#allocation22_spill] sm:$0xff] %v10606_v32 }
 0x37f   : > { %v10608_v2 = vpop.f32.mrb[108].mxu0 }
 0x380   : > { %11323 = vst [vmem:[#allocation23_spill] sm:$0xff] %v10608_v2  ;;  %v10610_v7 = vpop.f32.mrb[109].mxu0 }
 0x381   : > { %11324 = vst [vmem:[#allocation24_spill] sm:$0xff] %v10610_v7  ;;  %7973 = vmatmul.mubr.msk.bf16.gmra.mrb[56].mxu1 %vm1394_vm1, %v4798_v24  ;;  %v10613_v23 = vpop.f32.mrb[110].mxu0 }
 0x382   : > { %11325 = vst [vmem:[#allocation25_spill] sm:$0xff] %v10613_v23  ;;  %7976 = vmatprep.mubr.msk.bf16.mxu1 %vm1394_vm1, %v4799_v42  ;;  %v10616_v48 = vpop.f32.mrb[111].mxu0  ;;  %v5927_v23 = vld [vmem:[%s11283_s3] sm:$0xf] }
 0x383   : > { %11326 = vst [vmem:[#allocation26_spill] sm:$0xff] %v10616_v48  ;;  %8672 = vmatprep.subr.msk.bf16.mxu0 %vm1674_vm2, %v5927_v23 }
 0x387   : > { %v10618_v10 = vpop.f32.mrb[112].mxu0 }
 0x388   : > { %11327 = vst [vmem:[#allocation27_spill] sm:$0xff] %v10618_v10  ;;  %v10620_v9 = vpop.f32.mrb[113].mxu0  ;;  %v4818_v10 = vld [vmem:[#allocation2 + $0x238] sm:$0xff] }
 0x389   : > { %11328 = vst [vmem:[#allocation28_spill] sm:$0xff] %v10620_v9  ;;  %7977 = vmatmul.mubr.msk.bf16.gmra.mrb[60].mxu1 %vm1394_vm1, %v4800_v12  ;;  %v10623_v13 = vpop.f32.mrb[114].mxu0  ;;  %v4806_v12 = vld [vmem:[#allocation2 + $0x1d8] sm:$0xff] }
 0x38a   : > { %11329 = vst [vmem:[#allocation29_spill] sm:$0xff] %v10623_v13  ;;  %7980 = vmatprep.mubr.msk.bf16.mxu1 %vm1394_vm1, %v10211_v29  ;;  %v10627_v49 = vpop.f32.mrb[115].mxu0 }
 0x38b   : > { %11330 = vst [vmem:[#allocation30_spill] sm:$0xff] %v10627_v49 }
 0x38f   : > { %v10629_v44 = vpop.f32.mrb[116].mxu0 }
 0x390   : > { %11331 = vst [vmem:[#allocation31_spill] sm:$0xff] %v10629_v44  ;;  %v10631_v19 = vpop.f32.mrb[117].mxu0 }
 0x391   : > { %11332 = vst [vmem:[#allocation32_spill] sm:$0xff] %v10631_v19  ;;  %7981 = vmatmul.mubr.msk.bf16.gmra.mrb[0].mxu1 %vm1394_vm1, %v4802_v46  ;;  %v10634_v61 = vpop.f32.mrb[118].mxu0 }
 0x392   : > { %11333 = vst [vmem:[#allocation33_spill] sm:$0xff] %v10634_v61  ;;  %7984 = vmatprep.mubr.msk.bf16.mxu1 %vm1394_vm1, %v4803_v34  ;;  %v10637_v62 = vpop.f32.mrb[119].mxu0  ;;  %v4807_v34 = vld [vmem:[#allocation2 + $0x1e0] sm:$0xff] }
 0x393   : > { %11334 = vst [vmem:[#allocation34_spill] sm:$0xff] %v10637_v62 }
 0x397   : > { %v10639_v57 = vpop.f32.mrb[120].mxu0 }
 0x398   : > { %11335 = vst [vmem:[#allocation35_spill] sm:$0xff] %v10639_v57  ;;  %v10641_v29 = vpop.f32.mrb[121].mxu0 }
 0x399   : > { %11336 = vst [vmem:[#allocation36_spill] sm:$0xff] %v10641_v29  ;;  %7985 = vmatmul.mubr.msk.bf16.gmra.mrb[4].mxu1 %vm1394_vm1, %v4804_v15  ;;  %v10644_v26 = vpop.f32.mrb[122].mxu0 }
 0x39a   : > { %11337 = vst [vmem:[#allocation37_spill] sm:$0xff] %v10644_v26  ;;  %7988 = vmatprep.mubr.msk.bf16.mxu1 %vm1394_vm1, %v4805_v18  ;;  %v10647_v24 = vpop.f32.mrb[123].mxu0  ;;  %v4808_v26 = vld [vmem:[#allocation2 + $0x1e8] sm:$0xff] }
 0x39b   : > { %11338 = vst [vmem:[#allocation38_spill] sm:$0xff] %v10647_v24 }
 0x39f   : > { %v10649_v42 = vpop.f32.mrb[124].mxu0 }
 0x3a0   : > { %11339 = vst [vmem:[#allocation39_spill] sm:$0xff] %v10649_v42  ;;  %v10651_v46 = vpop.f32.mrb[125].mxu0  ;;  %v4809_v42 = vld [vmem:[#allocation2 + $0x1f0] sm:$0xff] }
 0x3a1   : > { %11340 = vst [vmem:[#allocation40_spill] sm:$0xff] %v10651_v46  ;;  %7989 = vmatmul.mubr.msk.bf16.gmra.mrb[8].mxu1 %vm1394_vm1, %v4806_v12  ;;  %v10654_v57 = vpop.f32.mrb[126].mxu0 }
 0x3a2   : > { %11341 = vst [vmem:[#allocation41_spill] sm:$0xff] %v10654_v57  ;;  %7992 = vmatprep.mubr.msk.bf16.mxu1 %vm1394_vm1, %v4807_v34  ;;  %v10657_v15 = vpop.f32.mrb[127].mxu0  ;;  %v4810_v57 = vld [vmem:[#allocation2 + $0x1f8] sm:$0xff] }
 0x3a3   : > { %11342 = vst [vmem:[#allocation42_spill] sm:$0xff] %v10657_v15  ;;  %v4811_v15 = vld [vmem:[#allocation2 + $0x200] sm:$0xff] }
 0x3a7   : > { %v10659_v29 = vpop.f32.mrb[64].mxu0 }
 0x3a8   : > { %v10661_v18 = vpop.f32.mrb[65].mxu0 }
 0x3a9   : > { %7993 = vmatmul.mubr.msk.bf16.gmra.mrb[12].mxu1 %vm1394_vm1, %v4808_v26  ;;  %v10664_v24 = vpop.f32.mrb[66].mxu0 }
 0x3aa   : > { %7996 = vmatprep.mubr.msk.bf16.mxu1 %vm1394_vm1, %v4809_v42  ;;  %v10667_v12 = vpop.f32.mrb[67].mxu0 }
 0x3af   : > { %v10669_v46 = vpop.f32.mrb[68].mxu0 }
 0x3b0   : > { %v10671_v34 = vpop.f32.mrb[69].mxu0 }
 0x3b1   : > { %7997 = vmatmul.mubr.msk.bf16.gmra.mrb[16].mxu1 %vm1394_vm1, %v4810_v57  ;;  %v10674_v62 = vpop.f32.mrb[70].mxu0 }
 0x3b2   : > { %8000 = vmatprep.mubr.msk.bf16.mxu1 %vm1394_vm1, %v4811_v15  ;;  %v10677_v26 = vpop.f32.mrb[71].mxu0 }
 0x3b7   : > { %v10679_v61 = vpop.f32.mrb[72].mxu0 }
 0x3b8   : > { %v10681_v19 = vpop.f32.mrb[73].mxu0 }
 0x3b9   : > { %8001 = vmatmul.mubr.msk.bf16.gmra.mrb[20].mxu1 %vm1394_vm1, %v9975_v27  ;;  %v10685_v42 = vpop.f32.mrb[74].mxu0 }
 0x3ba   : > { %8004 = vmatprep.mubr.msk.bf16.mxu1 %vm1394_vm1, %v9979_v33  ;;  %v10689_v57 = vpop.f32.mrb[75].mxu0 }
 0x3bf   : > { %v10691_v44 = vpop.f32.mrb[76].mxu0 }
 0x3c0   : > { %v10693_v49 = vpop.f32.mrb[77].mxu0 }
 0x3c1   : > { %8005 = vmatmul.mubr.msk.bf16.gmra.mrb[24].mxu1 %vm1394_vm1, %v10042_v5  ;;  %v10697_v15 = vpop.f32.mrb[78].mxu0 }
 0x3c2   : > { %8008 = vmatprep.mubr.msk.bf16.mxu1 %vm1394_vm1, %v10056_v1  ;;  %v10701_v27 = vpop.f32.mrb[79].mxu0 }
 0x3c7   : > { %v10703_v13 = vpop.f32.mrb[80].mxu0 }
 0x3c8   : > { %v10705_v9 = vpop.f32.mrb[81].mxu0 }
 0x3c9   : > { %8009 = vmatmul.mubr.msk.bf16.gmra.mrb[28].mxu1 %vm1394_vm1, %v10082_v58  ;;  %v10709_v33 = vpop.f32.mrb[82].mxu0  ;;  %v6032_v58 = vsel %vm1674_vm2, %v5927_v23, 0 }
 0x3ca   : > { %8012 = vmatprep.mubr.msk.bf16.mxu1 %vm1394_vm1, %v10276_v17  ;;  %v10713_v5 = vpop.f32.mrb[83].mxu0  ;;  %8083 = vmatpush3.bf16.msra.mxu0 %v6032_v58 }
 0x3cf   : > { %v10715_v48 = vpop.f32.mrb[84].mxu0 }
 0x3d0   : > { %v10717_v1 = vpop.f32.mrb[85].mxu0 }
 0x3d1   : > { %8013 = vmatmul.mubr.msk.bf16.gmra.mrb[32].mxu1 %vm1394_vm1, %v4818_v10  ;;  %v10723_v7 = vpop.f32.mrb[86].mxu0 }
 0x3d2   : > { %8018 = vmatprep.mubr.msk.bf16.mxu1 %vm1394_vm1, %v10282_v60  ;;  %v10729_v17 = vpop.f32.mrb[87].mxu0 }
 0x3d7   : > { %v10731_v2 = vpop.f32.mrb[88].mxu0 }
 0x3d8   : > { %v10733_v32 = vpop.f32.mrb[89].mxu0 }
 0x3d9   : > { %8019 = vmatmul.mubr.msk.bf16.vlgmr.msra.gmra.mrb[36].mxu1 %vm1394_vm1, %v10293_v16  ;;  %v10737_v10 = vpop.f32.mrb[90].mxu0  ;;  %v5289_v16 = vld [vmem:[#allocation2 + $0x2c8] sm:$0xff] }
 0x3da   : > { %8022 = vmatprep.mubr.msk.bf16.mxu1 %vm1394_vm1, %v10301_v39  ;;  %v10741_v60 = vpop.f32.mrb[91].mxu0  ;;  %v11343_v39 = vld [vmem:[#allocation12_spill] sm:$0xff] }
 0x3e1   : > { %8023 = vmatmul.mubr.msk.bf16.gmra.mrb[40].mxu1 %vm1394_vm1, %v10307_v0  ;;  %v11344_v0 = vld [vmem:[#allocation13_spill] sm:$0xff] }
 0x3e2   : > { %8026 = vmatprep.mubr.msk.bf16.mxu1 %vm1394_vm1, %v10313_v3  ;;  %v11345_v3 = vld [vmem:[#allocation14_spill] sm:$0xff] }
 0x3e9   : > { %8027 = vmatmul.mubr.msk.bf16.gmra.mrb[44].mxu1 %vm1394_vm1, %v10319_v4  ;;  %v11346_v4 = vld [vmem:[#allocation15_spill] sm:$0xff] }
 0x3ea   : > { %8030 = vmatprep.mubr.msk.bf16.mxu1 %vm1394_vm1, %v10325_v22  ;;  %v11347_v22 = vld [vmem:[#allocation16_spill] sm:$0xff] }
 0x3f1   : > { %8031 = vmatmul.mubr.msk.bf16.gmra.mrb[48].mxu1 %vm1394_vm1, %v10331_v38  ;;  %v11348_v38 = vld [vmem:[#allocation17_spill] sm:$0xff] }
 0x3f2   : > { %8034 = vmatprep.mubr.msk.bf16.mxu1 %vm1394_vm1, %v10337_v54  ;;  %v11349_v54 = vld [vmem:[#allocation18_spill] sm:$0xff] }
 0x3f9   : > { %8035 = vmatmul.mubr.msk.bf16.gmra.mrb[52].mxu1 %vm1394_vm1, %v10343_v6  ;;  %v11350_v6 = vld [vmem:[#allocation19_spill] sm:$0xff] }
 0x3fa   : > { %8038 = vmatprep.mubr.msk.bf16.mxu1 %vm1394_vm1, %v10349_v40  ;;  %v11351_v40 = vld [vmem:[#allocation20_spill] sm:$0xff] }
 0x401   : > { %8039 = vmatmul.mubr.msk.bf16.gmra.mrb[56].mxu1 %vm1394_vm1, %v10355_v53  ;;  %v11352_v53 = vld [vmem:[#allocation21_spill] sm:$0xff] }
 0x402   : > { %8042 = vmatprep.mubr.msk.bf16.mxu1 %vm1394_vm1, %v10361_v28  ;;  %v5305_v28 = vld [vmem:[#allocation2 + $0x358] sm:$0xff] }
 0x409   : > { %8043 = vmatmul.mubr.msk.bf16.gmra.mrb[60].mxu1 %vm1394_vm1, %v10367_v25 }
 0x40a   : > { %8046 = vmatprep.mubr.msk.bf16.mxu1 %vm1394_vm1, %v10374_v52  ;;  %v10802_v52 = vld [vmem:[%s11285_s5] ss:$0 sm:$0xff] }
 0x411   : > { %8047 = vmatmul.mubr.msk.bf16.gmra.mrb[0].mxu1 %vm1394_vm1, %v5289_v16 }
 0x412   : > { %8050 = vmatprep.mubr.msk.bf16.mxu1 %vm1394_vm1, %v10380_v51 }
 0x419   : > { %8051 = vmatmul.mubr.msk.bf16.gmra.mrb[4].mxu1 %vm1394_vm1, %v10386_v41 }
 0x41a   : > { %8054 = vmatprep.mubr.msk.bf16.mxu1 %vm1394_vm1, %v10392_v37 }
 0x421   : > { %8055 = vmatmul.mubr.msk.bf16.gmra.mrb[8].mxu1 %vm1394_vm1, %v11343_v39 }
 0x422   : > { %8058 = vmatprep.mubr.msk.bf16.mxu1 %vm1394_vm1, %v11344_v0 }
 0x429   : > { %8059 = vmatmul.mubr.msk.bf16.gmra.mrb[12].mxu1 %vm1394_vm1, %v11345_v3 }
 0x42a   : > { %8062 = vmatprep.mubr.msk.bf16.mxu1 %vm1394_vm1, %v11346_v4 }
 0x431   : > { %8063 = vmatmul.mubr.msk.bf16.gmra.mrb[16].mxu1 %vm1394_vm1, %v11347_v22 }
 0x432   : > { %8066 = vmatprep.mubr.msk.bf16.mxu1 %vm1394_vm1, %v11348_v38 }
 0x439   : > { %8067 = vmatmul.mubr.msk.bf16.gmra.mrb[20].mxu1 %vm1394_vm1, %v11349_v54 }
 0x43a   : > { %8070 = vmatprep.mubr.msk.bf16.mxu1 %vm1394_vm1, %v10440_v21 }
 0x441   : > { %8071 = vmatmul.mubr.msk.bf16.gmra.mrb[24].mxu1 %vm1394_vm1, %v11350_v6 }
 0x442   : > { %8074 = vmatprep.mubr.msk.bf16.mxu1 %vm1394_vm1, %v11351_v40 }
 0x449   : > { %8075 = vmatmul.mubr.msk.bf16.gmra.mrb[28].mxu1 %vm1394_vm1, %v11352_v53 }
 0x44a   : > { %8078 = vmatprep.mubr.msk.bf16.mxu1 %vm1394_vm1, %v10466_v35 }
 0x451   : > { %8079 = vmatmul.mubr.msk.bf16.gmra.mrb[32].mxu1 %vm1394_vm1, %v5305_v28 }
 0x4ac   : > { %v8020_v25 = vpop.f32.mrb[36].mxu1 }
 0x4ad   : > { %v8150_v51 = vadd.f32 %v8020_v25, %v10659_v29  ;;  %v5441_v41 = vpop.f32.mrb[37].mxu1 }
 0x4ae   : > { %v8151_v37 = vadd.f32 %v5441_v41, %v10661_v18  ;;  %v8021_v21 = vpop.f32.mrb[38].mxu1 }
 0x4af   : > { %v5769_v23 = vadd.f32 %v8150_v51, %v10802_v52  ;;  %v8152_v58 = vadd.f32 %v8021_v21, %v10664_v24  ;;  %v5444_v35 = vpop.f32.mrb[39].mxu1 }
 0x4b0   : > { %v5767_v16 = vadd.f32 %v8151_v37, %v10802_v52  ;;  %v8153_v39 = vadd.f32 %v5444_v35, %v10667_v12 }
 0x4b1   : > { %v5770_v0 = vadd.f32 %v8152_v58, %v10802_v52  ;;  %v5833_v4 = vmax.f32 %v5769_v23, 0.0 }
 0x4b2   : > { %v5768_v3 = vadd.f32 %v8153_v39, %v10802_v52  ;;  %v5831_v29 = vmax.f32 %v5767_v16, 0.0 }
 0x4b3   : > { %v5834_v22 = vmax.f32 %v5770_v0, 0.0 }
 0x4b4   : > { %v5832_v38 = vmax.f32 %v5768_v3, 0.0  ;;  %v8024_v54 = vpop.f32.mrb[40].mxu1 }
 0x4b5   : > { %v5896_v18 = vpack.c.bf16 %v5834_v22, %v5833_v4  ;;  %v8154_v6 = vadd.f32 %v8024_v54, %v10669_v46  ;;  %v5457_v40 = vpop.f32.mrb[41].mxu1 }
 0x4b6   : > { %v5895_v53 = vpack.c.bf16 %v5832_v38, %v5831_v29  ;;  %v8155_v24 = vadd.f32 %v5457_v40, %v10671_v34  ;;  %v8025_v28 = vpop.f32.mrb[42].mxu1 }
 0x4b7   : > { %v5773_v25 = vadd.f32 %v8154_v6, %v10802_v52  ;;  %v8156_v12 = vadd.f32 %v8025_v28, %v10674_v62  ;;  %v5460_v51 = vpop.f32.mrb[43].mxu1 }
 0x4b8   : > { %v5771_v41 = vadd.f32 %v8155_v24, %v10802_v52  ;;  %v8157_v37 = vadd.f32 %v5460_v51, %v10677_v26  ;;  %8084 = vmatprep.mubr.msk.bf16.mxu0 %vm1394_vm1, %v5895_v53 }
 0x4b9   : > { %v5774_v21 = vadd.f32 %v8156_v12, %v10802_v52  ;;  %8085 = vmatmul.mubr.msk.bf16.vlgmr.msra.gmra.mrb[128].mxu0 %vm1394_vm1, %v5896_v18  ;;  %v5837_v23 = vmax.f32 %v5773_v25, 0.0 }
 0x4ba   : > { %v5772_v46 = vadd.f32 %v8157_v37, %v10802_v52  ;;  %v5835_v58 = vmax.f32 %v5771_v41, 0.0 }
 0x4bb   : > { %v5838_v34 = vmax.f32 %v5774_v21, 0.0 }
 0x4bc   : > { %v5836_v35 = vmax.f32 %v5772_v46, 0.0  ;;  %v8028_v16 = vpop.f32.mrb[44].mxu1 }
 0x4bd   : > { %v5898_v39 = vpack.c.bf16 %v5838_v34, %v5837_v23  ;;  %v8158_v62 = vadd.f32 %v8028_v16, %v10679_v61  ;;  %v5473_v0 = vpop.f32.mrb[45].mxu1 }
 0x4be   : > { %v5897_v3 = vpack.c.bf16 %v5836_v35, %v5835_v58  ;;  %v8159_v26 = vadd.f32 %v5473_v0, %v10681_v19  ;;  %v8029_v4 = vpop.f32.mrb[46].mxu1 }
 0x4bf   : > { %v5777_v22 = vadd.f32 %v8158_v62, %v10802_v52  ;;  %v8160_v29 = vadd.f32 %v8029_v4, %v10685_v42  ;;  %v5476_v38 = vpop.f32.mrb[47].mxu1 }
 0x4c0   : > { %v5775_v54 = vadd.f32 %v8159_v26, %v10802_v52  ;;  %v8161_v18 = vadd.f32 %v5476_v38, %v10689_v57  ;;  %8088 = vmatprep.mubr.msk.bf16.mxu0 %vm1394_vm1, %v5897_v3 }
 0x4c1   : > { %v5778_v6 = vadd.f32 %v8160_v29, %v10802_v52  ;;  %8089 = vmatmul.mubr.msk.bf16.gmra.mrb[132].mxu0 %vm1394_vm1, %v5898_v39  ;;  %v5841_v40 = vmax.f32 %v5777_v22, 0.0 }
 0x4c2   : > { %v5776_v61 = vadd.f32 %v8161_v18, %v10802_v52  ;;  %v5839_v53 = vmax.f32 %v5775_v54, 0.0 }
 0x4c3   : > { %v5842_v19 = vmax.f32 %v5778_v6, 0.0 }
 0x4c4   : > { %v5840_v24 = vmax.f32 %v5776_v61, 0.0  ;;  %v8032_v28 = vpop.f32.mrb[48].mxu1 }
 0x4c5   : > { %v5900_v25 = vpack.c.bf16 %v5842_v19, %v5841_v40  ;;  %v8162_v42 = vadd.f32 %v8032_v28, %v10691_v44  ;;  %v5489_v12 = vpop.f32.mrb[49].mxu1 }
 0x4c6   : > { %v5899_v51 = vpack.c.bf16 %v5840_v24, %v5839_v53  ;;  %v8163_v57 = vadd.f32 %v5489_v12, %v10693_v49  ;;  %v8033_v41 = vpop.f32.mrb[50].mxu1 }
 0x4c7   : > { %v5781_v37 = vadd.f32 %v8162_v42, %v10802_v52  ;;  %v8164_v21 = vadd.f32 %v8033_v41, %v10697_v15  ;;  %v5492_v46 = vpop.f32.mrb[51].mxu1 }
 0x4c8   : > { %v5779_v23 = vadd.f32 %v8163_v57, %v10802_v52  ;;  %v8165_v34 = vadd.f32 %v5492_v46, %v10701_v27  ;;  %8092 = vmatprep.mubr.msk.bf16.mxu0 %vm1394_vm1, %v5899_v51 }
 0x4c9   : > { %v5782_v58 = vadd.f32 %v8164_v21, %v10802_v52  ;;  %8093 = vmatmul.mubr.msk.bf16.gmra.mrb[136].mxu0 %vm1394_vm1, %v5900_v25  ;;  %v5845_v35 = vmax.f32 %v5781_v37, 0.0 }
 0x4ca   : > { %v5780_v44 = vadd.f32 %v8165_v34, %v10802_v52  ;;  %v5843_v16 = vmax.f32 %v5779_v23, 0.0 }
 0x4cb   : > { %v5846_v49 = vmax.f32 %v5782_v58, 0.0 }
 0x4cc   : > { %v5844_v39 = vmax.f32 %v5780_v44, 0.0  ;;  %v8036_v62 = vpop.f32.mrb[52].mxu1 }
 0x4cd   : > { %v5902_v0 = vpack.c.bf16 %v5846_v49, %v5845_v35  ;;  %v8166_v15 = vadd.f32 %v8036_v62, %v10703_v13  ;;  %v5505_v3 = vpop.f32.mrb[53].mxu1 }
 0x4ce   : > { %v5901_v26 = vpack.c.bf16 %v5844_v39, %v5843_v16  ;;  %v8167_v27 = vadd.f32 %v5505_v3, %v10705_v9  ;;  %v8037_v4 = vpop.f32.mrb[54].mxu1 }
 0x4cf   : > { %v5785_v22 = vadd.f32 %v8166_v15, %v10802_v52  ;;  %v8168_v29 = vadd.f32 %v8037_v4, %v10709_v33  ;;  %v5508_v38 = vpop.f32.mrb[55].mxu1 }
 0x4d0   : > { %v5783_v54 = vadd.f32 %v8167_v27, %v10802_v52  ;;  %v8169_v18 = vadd.f32 %v5508_v38, %v10713_v5  ;;  %8096 = vmatprep.mubr.msk.bf16.mxu0 %vm1394_vm1, %v5901_v26 }
 0x4d1   : > { %v5786_v6 = vadd.f32 %v8168_v29, %v10802_v52  ;;  %8097 = vmatmul.mubr.msk.bf16.gmra.mrb[140].mxu0 %vm1394_vm1, %v5902_v0  ;;  %v5849_v61 = vmax.f32 %v5785_v22, 0.0 }
 0x4d2   : > { %v5784_v13 = vadd.f32 %v8169_v18, %v10802_v52  ;;  %v5847_v40 = vmax.f32 %v5783_v54, 0.0 }
 0x4d3   : > { %v5850_v9 = vmax.f32 %v5786_v6, 0.0 }
 0x4d4   : > { %v5848_v19 = vmax.f32 %v5784_v13, 0.0  ;;  %v8040_v53 = vpop.f32.mrb[56].mxu1 }
 0x4d5   : > { %v5904_v24 = vpack.c.bf16 %v5850_v9, %v5849_v61  ;;  %v8170_v33 = vadd.f32 %v8040_v53, %v10715_v48  ;;  %v5521_v28 = vpop.f32.mrb[57].mxu1 }
 0x4d6   : > { %v5903_v25 = vpack.c.bf16 %v5848_v19, %v5847_v40  ;;  %v8171_v5 = vadd.f32 %v5521_v28, %v10717_v1  ;;  %v8041_v42 = vpop.f32.mrb[58].mxu1 }
 0x4d7   : > { %v5789_v12 = vadd.f32 %v8170_v33, %v10802_v52  ;;  %v8172_v51 = vadd.f32 %v8041_v42, %v10723_v7  ;;  %v5524_v57 = vpop.f32.mrb[59].mxu1 }
 0x4d8   : > { %v5787_v41 = vadd.f32 %v8171_v5, %v10802_v52  ;;  %v8173_v37 = vadd.f32 %v5524_v57, %v10729_v17  ;;  %8100 = vmatprep.mubr.msk.bf16.mxu0 %vm1394_vm1, %v5903_v25 }
 0x4d9   : > { %v5790_v21 = vadd.f32 %v8172_v51, %v10802_v52  ;;  %8101 = vmatmul.mubr.msk.bf16.gmra.mrb[144].mxu0 %vm1394_vm1, %v5904_v24  ;;  %v5853_v46 = vmax.f32 %v5789_v12, 0.0 }
 0x4da   : > { %v5788_v48 = vadd.f32 %v8173_v37, %v10802_v52  ;;  %v5851_v23 = vmax.f32 %v5787_v41, 0.0 }
 0x4db   : > { %v5854_v1 = vmax.f32 %v5790_v21, 0.0 }
 0x4dc   : > { %v5852_v34 = vmax.f32 %v5788_v48, 0.0  ;;  %v8044_v58 = vpop.f32.mrb[60].mxu1 }
 0x4dd   : > { %v5906_v44 = vpack.c.bf16 %v5854_v1, %v5853_v46  ;;  %v8174_v7 = vadd.f32 %v8044_v58, %v10731_v2  ;;  %v5537_v35 = vpop.f32.mrb[61].mxu1 }
 0x4de   : > { %v5905_v49 = vpack.c.bf16 %v5852_v34, %v5851_v23  ;;  %v8175_v17 = vadd.f32 %v5537_v35, %v10733_v32  ;;  %v8045_v16 = vpop.f32.mrb[62].mxu1 }
 0x4df   : > { %v5793_v39 = vadd.f32 %v8174_v7, %v10802_v52  ;;  %v8176_v62 = vadd.f32 %v8045_v16, %v10737_v10  ;;  %v5540_v0 = vpop.f32.mrb[63].mxu1 }
 0x4e0   : > { %v5791_v15 = vadd.f32 %v8175_v17, %v10802_v52  ;;  %v8177_v3 = vadd.f32 %v5540_v0, %v10741_v60  ;;  %8104 = vmatprep.mubr.msk.bf16.mxu0 %vm1394_vm1, %v5905_v49 }
 0x4e1   : > { %v5794_v26 = vadd.f32 %v8176_v62, %v10802_v52  ;;  %8105 = vmatmul.mubr.msk.bf16.gmra.mrb[148].mxu0 %vm1394_vm1, %v5906_v44  ;;  %v5857_v27 = vmax.f32 %v5793_v39, 0.0 }
 0x4e2   : > { %v5792_v2 = vadd.f32 %v8177_v3, %v10802_v52  ;;  %v5855_v4 = vmax.f32 %v5791_v15, 0.0 }
 0x4e3   : > { %v5858_v32 = vmax.f32 %v5794_v26, 0.0 }
 0x4e4   : > { %v5856_v22 = vmax.f32 %v5792_v2, 0.0  ;;  %v8048_v29 = vpop.f32.mrb[0].mxu1 }
 0x4e5   : > { %v5908_v38 = vpack.c.bf16 %v5858_v32, %v5857_v27  ;;  %v8178_v10 = vadd.f32 %v8048_v29, %v10561_v50  ;;  %v5553_v54 = vpop.f32.mrb[1].mxu1 }
 0x4e6   : > { %v5907_v18 = vpack.c.bf16 %v5856_v22, %v5855_v4  ;;  %v8179_v60 = vadd.f32 %v5553_v54, %v10563_v56  ;;  %v8049_v6 = vpop.f32.mrb[2].mxu1 }
 0x4e7   : > { %v5797_v13 = vadd.f32 %v8178_v10, %v10802_v52  ;;  %v8180_v61 = vadd.f32 %v8049_v6, %v10567_v20  ;;  %v5556_v9 = vpop.f32.mrb[3].mxu1 }
 0x4e8   : > { %v5795_v40 = vadd.f32 %v8179_v60, %v10802_v52  ;;  %v8181_v19 = vadd.f32 %v5556_v9, %v10571_v45  ;;  %8108 = vmatprep.mubr.msk.bf16.mxu0 %vm1394_vm1, %v5907_v18  ;;  %v11353_v60 = vld [vmem:[#allocation22_spill] sm:$0xff] }
 0x4e9   : > { %v5798_v53 = vadd.f32 %v8180_v61, %v10802_v52  ;;  %8109 = vmatmul.mubr.msk.bf16.gmra.mrb[152].mxu0 %vm1394_vm1, %v5908_v38  ;;  %v5861_v24 = vmax.f32 %v5797_v13, 0.0 }
 0x4ea   : > { %v5796_v50 = vadd.f32 %v8181_v19, %v10802_v52  ;;  %v5859_v33 = vmax.f32 %v5795_v40, 0.0 }
 0x4eb   : > { %v5862_v56 = vmax.f32 %v5798_v53, 0.0 }
 0x4ec   : > { %v5860_v28 = vmax.f32 %v5796_v50, 0.0  ;;  %v8052_v25 = vpop.f32.mrb[4].mxu1 }
 0x4ed   : > { %v5910_v5 = vpack.c.bf16 %v5862_v56, %v5861_v24  ;;  %v8182_v20 = vadd.f32 %v8052_v25, %v10573_v14  ;;  %v5569_v42 = vpop.f32.mrb[5].mxu1 }
 0x4ee   : > { %v5909_v12 = vpack.c.bf16 %v5860_v28, %v5859_v33  ;;  %v8183_v45 = vadd.f32 %v5569_v42, %v10575_v11  ;;  %v8053_v51 = vpop.f32.mrb[6].mxu1  ;;  %v11355_v33 = vld [vmem:[#allocation24_spill] sm:$0xff] }
 0x4ef   : > { %v5801_v57 = vadd.f32 %v8182_v20, %v10802_v52  ;;  %v8184_v41 = vadd.f32 %v8053_v51, %v10579_v31  ;;  %v5572_v37 = vpop.f32.mrb[7].mxu1  ;;  %v11356_v20 = vld [vmem:[#allocation25_spill] sm:$0xff]  ;;  %v11357_v51 = vld [vmem:[#allocation26_spill] sm:$0xff] }
 0x4f0   : > { %v5799_v21 = vadd.f32 %v8183_v45, %v10802_v52  ;;  %v8185_v48 = vadd.f32 %v5572_v37, %v10583_v8  ;;  %8112 = vmatprep.mubr.msk.bf16.mxu0 %vm1394_vm1, %v5909_v12 }
 0x4f1   : > { %v5802_v46 = vadd.f32 %v8184_v41, %v10802_v52  ;;  %8113 = vmatmul.mubr.msk.bf16.gmra.mrb[156].mxu0 %vm1394_vm1, %v5910_v5  ;;  %v5865_v1 = vmax.f32 %v5801_v57, 0.0 }
 0x4f2   : > { %v5800_v14 = vadd.f32 %v8185_v48, %v10802_v52  ;;  %v5863_v23 = vmax.f32 %v5799_v21, 0.0 }
 0x4f3   : > { %v5866_v11 = vmax.f32 %v5802_v46, 0.0 }
 0x4f4   : > { %v5864_v34 = vmax.f32 %v5800_v14, 0.0  ;;  %v8056_v58 = vpop.f32.mrb[8].mxu1 }
 0x4f5   : > { %v5912_v44 = vpack.c.bf16 %v5866_v11, %v5865_v1  ;;  %v8186_v31 = vadd.f32 %v8056_v58, %v10585_v43  ;;  %v5585_v7 = vpop.f32.mrb[9].mxu1 }
 0x4f6   : > { %v5911_v35 = vpack.c.bf16 %v5864_v34, %v5863_v23  ;;  %v8187_v8 = vadd.f32 %v5585_v7, %v10587_v36  ;;  %v8057_v49 = vpop.f32.mrb[10].mxu1  ;;  %v11358_v23 = vld [vmem:[#allocation27_spill] sm:$0xff] }
 0x4f7   : > { %v5805_v17 = vadd.f32 %v8186_v31, %v10802_v52  ;;  %v8188_v16 = vadd.f32 %v8057_v49, %v10591_v63  ;;  %v5588_v39 = vpop.f32.mrb[11].mxu1  ;;  %v11359_v31 = vld [vmem:[#allocation28_spill] sm:$0xff]  ;;  %v11360_v49 = vld [vmem:[#allocation29_spill] sm:$0xff] }
 0x4f8   : > { %v5803_v62 = vadd.f32 %v8187_v8, %v10802_v52  ;;  %v8189_v0 = vadd.f32 %v5588_v39, %v10595_v30  ;;  %8116 = vmatprep.mubr.msk.bf16.mxu0 %vm1394_vm1, %v5911_v35 }
 0x4f9   : > { %v5806_v15 = vadd.f32 %v8188_v16, %v10802_v52  ;;  %8117 = vmatmul.mubr.msk.bf16.gmra.mrb[160].mxu0 %vm1394_vm1, %v5912_v44  ;;  %v5869_v3 = vmax.f32 %v5805_v17, 0.0 }
 0x4fa   : > { %v5804_v43 = vadd.f32 %v8189_v0, %v10802_v52  ;;  %v5867_v26 = vmax.f32 %v5803_v62, 0.0  ;;  %v11361_v62 = vld [vmem:[#allocation30_spill] sm:$0xff] }
 0x4fb   : > { %v5870_v36 = vmax.f32 %v5806_v15, 0.0 }
 0x4fc   : > { %v5868_v2 = vmax.f32 %v5804_v43, 0.0  ;;  %v8060_v27 = vpop.f32.mrb[12].mxu1 }
 0x4fd   : > { %v5914_v32 = vpack.c.bf16 %v5870_v36, %v5869_v3  ;;  %v8190_v63 = vadd.f32 %v8060_v27, %v10597_v47  ;;  %v5601_v4 = vpop.f32.mrb[13].mxu1 }
 0x4fe   : > { %v5913_v22 = vpack.c.bf16 %v5868_v2, %v5867_v26  ;;  %v8191_v30 = vadd.f32 %v5601_v4, %v10599_v55  ;;  %v8061_v29 = vpop.f32.mrb[14].mxu1 }
 0x4ff   : > { %v5809_v38 = vadd.f32 %v8190_v63, %v10802_v52  ;;  %v8192_v10 = vadd.f32 %v8061_v29, %v10603_v59  ;;  %v5604_v54 = vpop.f32.mrb[15].mxu1  ;;  %v11354_v59 = vld [vmem:[#allocation23_spill] sm:$0xff]  ;;  %v11363_v29 = vld [vmem:[#allocation32_spill] sm:$0xff] }
 0x500   : > { %v5807_v18 = vadd.f32 %v8191_v30, %v10802_v52  ;;  %v8193_v6 = vadd.f32 %v5604_v54, %v11353_v60  ;;  %8120 = vmatprep.mubr.msk.bf16.mxu0 %vm1394_vm1, %v5913_v22  ;;  %v11362_v63 = vld [vmem:[#allocation31_spill] sm:$0xff] }
 0x501   : > { %v5810_v13 = vadd.f32 %v8192_v10, %v10802_v52  ;;  %8121 = vmatmul.mubr.msk.bf16.gmra.mrb[164].mxu0 %vm1394_vm1, %v5914_v32  ;;  %v5873_v61 = vmax.f32 %v5809_v38, 0.0 }
 0x502   : > { %v5808_v47 = vadd.f32 %v8193_v6, %v10802_v52  ;;  %v5871_v9 = vmax.f32 %v5807_v18, 0.0  ;;  %v11364_v18 = vld [vmem:[#allocation33_spill] sm:$0xff] }
 0x503   : > { %v5874_v55 = vmax.f32 %v5810_v13, 0.0 }
 0x504   : > { %v5872_v40 = vmax.f32 %v5808_v47, 0.0  ;;  %v8064_v19 = vpop.f32.mrb[16].mxu1  ;;  %v11365_v47 = vld [vmem:[#allocation34_spill] sm:$0xff] }
 0x505   : > { %v5916_v53 = vpack.c.bf16 %v5874_v55, %v5873_v61  ;;  %v8194_v50 = vadd.f32 %v8064_v19, %v11354_v59  ;;  %v5617_v24 = vpop.f32.mrb[17].mxu1 }
 0x506   : > { %v5915_v56 = vpack.c.bf16 %v5872_v40, %v5871_v9  ;;  %v8195_v28 = vadd.f32 %v5617_v24, %v11355_v33  ;;  %v8065_v25 = vpop.f32.mrb[18].mxu1 }
 0x507   : > { %v5813_v5 = vadd.f32 %v8194_v50, %v10802_v52  ;;  %v8196_v42 = vadd.f32 %v8065_v25, %v11356_v20  ;;  %v5620_v12 = vpop.f32.mrb[19].mxu1 }
 0x508   : > { %v5811_v45 = vadd.f32 %v8195_v28, %v10802_v52  ;;  %v8197_v57 = vadd.f32 %v5620_v12, %v11357_v51  ;;  %8124 = vmatprep.mubr.msk.bf16.mxu0 %vm1394_vm1, %v5915_v56  ;;  %v11366_v56 = vld [vmem:[#allocation35_spill] sm:$0xff] }
 0x509   : > { %v5814_v41 = vadd.f32 %v8196_v42, %v10802_v52  ;;  %8125 = vmatmul.mubr.msk.bf16.gmra.mrb[168].mxu0 %vm1394_vm1, %v5916_v53  ;;  %v5877_v21 = vmax.f32 %v5813_v5, 0.0  ;;  %v11367_v5 = vld [vmem:[#allocation36_spill] sm:$0xff] }
 0x50a   : > { %v5812_v37 = vadd.f32 %v8197_v57, %v10802_v52  ;;  %v5875_v46 = vmax.f32 %v5811_v45, 0.0  ;;  %v11368_v45 = vld [vmem:[#allocation37_spill] sm:$0xff] }
 0x50b   : > { %v5878_v48 = vmax.f32 %v5814_v41, 0.0 }
 0x50c   : > { %v5876_v14 = vmax.f32 %v5812_v37, 0.0  ;;  %v8068_v1 = vpop.f32.mrb[20].mxu1  ;;  %v11369_v37 = vld [vmem:[#allocation38_spill] sm:$0xff] }
 0x50d   : > { %v5918_v11 = vpack.c.bf16 %v5878_v48, %v5877_v21  ;;  %v8198_v34 = vadd.f32 %v8068_v1, %v11358_v23  ;;  %v5633_v58 = vpop.f32.mrb[21].mxu1 }
 0x50e   : > { %v5917_v44 = vpack.c.bf16 %v5876_v14, %v5875_v46  ;;  %v8199_v7 = vadd.f32 %v5633_v58, %v11359_v31  ;;  %v8069_v35 = vpop.f32.mrb[22].mxu1 }
 0x50f   : > { %v5817_v8 = vadd.f32 %v8198_v34, %v10802_v52  ;;  %v8200_v17 = vadd.f32 %v8069_v35, %v11360_v49  ;;  %v5636_v16 = vpop.f32.mrb[23].mxu1 }
 0x510   : > { %v5815_v39 = vadd.f32 %v8199_v7, %v10802_v52  ;;  %v8201_v0 = vadd.f32 %v5636_v16, %v11361_v62  ;;  %8128 = vmatprep.mubr.msk.bf16.mxu0 %vm1394_vm1, %v5917_v44  ;;  %v11370_v44 = vld [vmem:[#allocation39_spill] sm:$0xff] }
 0x511   : > { %v5818_v15 = vadd.f32 %v8200_v17, %v10802_v52  ;;  %8129 = vmatmul.mubr.msk.bf16.gmra.mrb[172].mxu0 %vm1394_vm1, %v5918_v11  ;;  %v5881_v3 = vmax.f32 %v5817_v8, 0.0  ;;  %v11371_v8 = vld [vmem:[#allocation40_spill] sm:$0xff] }
 0x512   : > { %v5816_v43 = vadd.f32 %v8201_v0, %v10802_v52  ;;  %v5879_v26 = vmax.f32 %v5815_v39, 0.0  ;;  %v11372_v39 = vld [vmem:[#allocation41_spill] sm:$0xff] }
 0x513   : > { %v5882_v36 = vmax.f32 %v5818_v15, 0.0 }
 0x514   : > { %v5880_v2 = vmax.f32 %v5816_v43, 0.0  ;;  %v8072_v27 = vpop.f32.mrb[24].mxu1  ;;  %v11373_v43 = vld [vmem:[#allocation42_spill] sm:$0xff] }
 0x515   : > { %v5920_v32 = vpack.c.bf16 %v5882_v36, %v5881_v3  ;;  %v8202_v4 = vadd.f32 %v8072_v27, %v11362_v63  ;;  %v5649_v22 = vpop.f32.mrb[25].mxu1 }
 0x516   : > { %v5919_v30 = vpack.c.bf16 %v5880_v2, %v5879_v26  ;;  %v8203_v38 = vadd.f32 %v5649_v22, %v11363_v29  ;;  %v8073_v10 = vpop.f32.mrb[26].mxu1 }
 0x517   : > { %v5821_v54 = vadd.f32 %v8202_v4, %v10802_v52  ;;  %v8204_v60 = vadd.f32 %v8073_v10, %v11364_v18  ;;  %v5652_v6 = vpop.f32.mrb[27].mxu1 }
 0x518   : > { %v5819_v13 = vadd.f32 %v8203_v38, %v10802_v52  ;;  %v8205_v61 = vadd.f32 %v5652_v6, %v11365_v47  ;;  %8132 = vmatprep.mubr.msk.bf16.mxu0 %vm1394_vm1, %v5919_v30  ;;  %v10967_v30 = vld [vmem:[%s11286_s6] ss:$0 sm:$0xff]  ;;  %v6325_v38 = vld [vmem:[%s9067_s11 + $0x10] sm:$0xff]  ;;  %v6326_v6 = vld [vmem:[%s9067_s11 + $0x18] sm:$0xff] }
 0x519   : > { %v5822_v55 = vadd.f32 %v8204_v60, %v10802_v52  ;;  %8133 = vmatmul.mubr.msk.bf16.gmra.mrb[176].mxu0 %vm1394_vm1, %v5920_v32  ;;  %v5885_v40 = vmax.f32 %v5821_v54, 0.0  ;;  %v6323_v54 = vld [vmem:[%s9067_s11] sm:$0xff] }
 0x51a   : > { %v5820_v9 = vadd.f32 %v8205_v61, %v10802_v52  ;;  %v5883_v53 = vmax.f32 %v5819_v13, 0.0 }
 0x51b   : > { %v5886_v19 = vmax.f32 %v5822_v55, 0.0  ;;  %v6324_v55 = vld [vmem:[%s9067_s11 + $0x8] sm:$0xff] }
 0x51c   : > { %v5884_v59 = vmax.f32 %v5820_v9, 0.0  ;;  %v8076_v50 = vpop.f32.mrb[28].mxu1 }
 0x51d   : > { %v5922_v24 = vpack.c.bf16 %v5886_v19, %v5885_v40  ;;  %v8206_v33 = vadd.f32 %v8076_v50, %v11366_v56  ;;  %v5665_v28 = vpop.f32.mrb[29].mxu1 }
 0x51e   : > { %v5921_v25 = vpack.c.bf16 %v5884_v59, %v5883_v53  ;;  %v8207_v20 = vadd.f32 %v5665_v28, %v11367_v5  ;;  %v8077_v42 = vpop.f32.mrb[30].mxu1  ;;  %v6329_v28 = vld [vmem:[%s9067_s11 + $0x30] sm:$0xff] }
 0x51f   : > { %v5825_v12 = vadd.f32 %v8206_v33, %v10802_v52  ;;  %v8208_v51 = vadd.f32 %v8077_v42, %v11368_v45  ;;  %v5668_v57 = vpop.f32.mrb[31].mxu1  ;;  %v6330_v45 = vld [vmem:[%s9067_s11 + $0x38] sm:$0xff] }
 0x520   : > { %v5823_v41 = vadd.f32 %v8207_v20, %v10802_v52  ;;  %v8209_v21 = vadd.f32 %v5668_v57, %v11369_v37  ;;  %8136 = vmatprep.mubr.msk.bf16.mxu0 %vm1394_vm1, %v5921_v25  ;;  %v6327_v20 = vld [vmem:[%s9067_s11 + $0x20] sm:$0xff]  ;;  %v6328_v37 = vld [vmem:[%s9067_s11 + $0x28] sm:$0xff] }
 0x521   : > { %v5826_v48 = vadd.f32 %v8208_v51, %v10802_v52  ;;  %8137 = vmatmul.mubr.msk.bf16.gmra.mrb[180].mxu0 %vm1394_vm1, %v5922_v24  ;;  %v5889_v14 = vmax.f32 %v5825_v12, 0.0 }
 0x522   : > { %v5824_v46 = vadd.f32 %v8209_v21, %v10802_v52  ;;  %v5887_v11 = vmax.f32 %v5823_v41, 0.0 }
 0x523   : > { %v5890_v1 = vmax.f32 %v5826_v48, 0.0 }
 0x524   : > { %v5888_v23 = vmax.f32 %v5824_v46, 0.0  ;;  %v8080_v34 = vpop.f32.mrb[32].mxu1 }
 0x525   : > { %v5924_v58 = vpack.c.bf16 %v5890_v1, %v5889_v14  ;;  %v8210_v31 = vadd.f32 %v8080_v34, %v11370_v44  ;;  %v5681_v7 = vpop.f32.mrb[33].mxu1  ;;  %v6333_v44 = vld [vmem:[%s9067_s11 + $0x50] sm:$0xff] }
 0x526   : > { %v5923_v35 = vpack.c.bf16 %v5888_v23, %v5887_v11  ;;  %v8211_v49 = vadd.f32 %v5681_v7, %v11371_v8  ;;  %v8081_v17 = vpop.f32.mrb[34].mxu1 }
 0x527   : > { %v5829_v16 = vadd.f32 %v8210_v31, %v10802_v52  ;;  %v8212_v62 = vadd.f32 %v8081_v17, %v11372_v39  ;;  %v5684_v0 = vpop.f32.mrb[35].mxu1  ;;  %v6334_v17 = vld [vmem:[%s9067_s11 + $0x58] sm:$0xff] }
 0x528   : > { %v5827_v15 = vadd.f32 %v8211_v49, %v10802_v52  ;;  %v8213_v3 = vadd.f32 %v5684_v0, %v11373_v43  ;;  %8140 = vmatprep.mubr.msk.bf16.mxu0 %vm1394_vm1, %v5923_v35  ;;  %v6331_v35 = vld [vmem:[%s9067_s11 + $0x40] sm:$0xff]  ;;  %v6332_v0 = vld [vmem:[%s9067_s11 + $0x48] sm:$0xff] }
 0x529   : > { %v5830_v36 = vadd.f32 %v8212_v62, %v10802_v52  ;;  %8141 = vmatmul.mubr.msk.bf16.gmra.mrb[184].mxu0 %vm1394_vm1, %v5924_v58  ;;  %v5893_v2 = vmax.f32 %v5829_v16, 0.0 }
 0x52a   : > { %v5828_v26 = vadd.f32 %v8213_v3, %v10802_v52  ;;  %v5891_v32 = vmax.f32 %v5827_v15, 0.0 }
 0x52b   : > { %v5894_v27 = vmax.f32 %v5830_v36, 0.0 }
 0x52c   : > { %v5892_v63 = vmax.f32 %v5828_v26, 0.0 }
 0x52d   : > { %v5926_v4 = vpack.c.bf16 %v5894_v27, %v5893_v2 }
 0x52e   : > { %v5925_v22 = vpack.c.bf16 %v5892_v63, %v5891_v32 }
 0x530   : > { %8144 = vmatprep.mubr.msk.bf16.mxu0 %vm1394_vm1, %v5925_v22 }
 0x531   : > { %8145 = vmatmul.mubr.msk.bf16.gmra.mrb[188].mxu0 %vm1394_vm1, %v5926_v4  ;;  %v6337_v4 = vld [vmem:[%s9067_s11 + $0x70] sm:$0xff] }
 0x58c   : > { %v8086_v29 = vpop.f32.mrb[128].mxu0 }
 0x58d   : > { %v6077_v52 = vadd.f32 %v8086_v29, %v10967_v30  ;;  %v6068_v10 = vpop.f32.mrb[129].mxu0 }
 0x58e   : > { %v6069_v18 = vadd.f32 %v10967_v30, %v6068_v10  ;;  %v8087_v60 = vpop.f32.mrb[130].mxu0 }
 0x58f   : > { %v6389_v13 = vadd.f32 %v6325_v38, %v6077_v52  ;;  %v6080_v47 = vadd.f32 %v8087_v60, %v10967_v30  ;;  %v6071_v61 = vpop.f32.mrb[131].mxu0  ;;  %v6335_v38 = vld [vmem:[%s9067_s11 + $0x60] sm:$0xff] }
 0x590   : > { %v6387_v9 = vadd.f32 %v6323_v54, %v6069_v18  ;;  %v6072_v40 = vadd.f32 %v10967_v30, %v6071_v61  ;;  %v6338_v54 = vld [vmem:[%s9067_s11 + $0x78] sm:$0xff] }
 0x591   : > { %v6453_v19 = vmax.f32 %v6389_v13, 0.0  ;;  %v6390_v53 = vadd.f32 %v6326_v6, %v6080_v47  ;;  %v6336_v13 = vld [vmem:[%s9067_s11 + $0x68] sm:$0xff] }
 0x592   : > { %v6451_v59 = vmax.f32 %v6387_v9, 0.0  ;;  %v6388_v50 = vadd.f32 %v6324_v55, %v6072_v40 }
 0x593   : > { %6517 = vst.msk [vmem:[%s10979_s15 + $0x10] sm:$0xff] %vm435_vm0, %v6453_v19  ;;  %v6454_v24 = vmax.f32 %v6390_v53, 0.0 }
 0x594   : > { %6515 = vst.msk [vmem:[%s10979_s15] sm:$0xff] %vm435_vm0, %v6451_v59  ;;  %v6452_v56 = vmax.f32 %v6388_v50, 0.0  ;;  %v8090_v33 = vpop.f32.mrb[132].mxu0 }
 0x595   : > { %6518 = vst.msk [vmem:[%s10979_s15 + $0x18] sm:$0xff] %vm435_vm0, %v6454_v24  ;;  %v6093_v25 = vadd.f32 %v8090_v33, %v10967_v30  ;;  %v6084_v5 = vpop.f32.mrb[133].mxu0  ;;  %v6341_v24 = vld [vmem:[%s9067_s11 + $0x90] sm:$0xff] }
 0x596   : > { %6516 = vst.msk [vmem:[%s10979_s15 + $0x8] sm:$0xff] %vm435_vm0, %v6452_v56  ;;  %v6085_v42 = vadd.f32 %v10967_v30, %v6084_v5  ;;  %v8091_v12 = vpop.f32.mrb[134].mxu0 }
 0x597   : > { %v6393_v51 = vadd.f32 %v6329_v28, %v6093_v25  ;;  %v6096_v57 = vadd.f32 %v8091_v12, %v10967_v30  ;;  %v6087_v41 = vpop.f32.mrb[135].mxu0  ;;  %v6339_v28 = vld [vmem:[%s9067_s11 + $0x80] sm:$0xff] }
 0x598   : > { %v6391_v21 = vadd.f32 %v6327_v20, %v6085_v42  ;;  %v6088_v48 = vadd.f32 %v10967_v30, %v6087_v41  ;;  %v6342_v20 = vld [vmem:[%s9067_s11 + $0x98] sm:$0xff] }
 0x599   : > { %v6457_v46 = vmax.f32 %v6393_v51, 0.0  ;;  %v6394_v14 = vadd.f32 %v6330_v45, %v6096_v57  ;;  %v6340_v51 = vld [vmem:[%s9067_s11 + $0x88] sm:$0xff] }
 0x59a   : > { %v6455_v1 = vmax.f32 %v6391_v21, 0.0  ;;  %v6392_v11 = vadd.f32 %v6328_v37, %v6088_v48 }
 0x59b   : > { %6521 = vst.msk [vmem:[%s10979_s15 + $0x30] sm:$0xff] %vm435_vm0, %v6457_v46  ;;  %v6458_v23 = vmax.f32 %v6394_v14, 0.0 }
 0x59c   : > { %6519 = vst.msk [vmem:[%s10979_s15 + $0x20] sm:$0xff] %vm435_vm0, %v6455_v1  ;;  %v6456_v34 = vmax.f32 %v6392_v11, 0.0  ;;  %v8094_v58 = vpop.f32.mrb[136].mxu0 }
 0x59d   : > { %6522 = vst.msk [vmem:[%s10979_s15 + $0x38] sm:$0xff] %vm435_vm0, %v6458_v23  ;;  %v6109_v31 = vadd.f32 %v8094_v58, %v10967_v30  ;;  %v6100_v7 = vpop.f32.mrb[137].mxu0  ;;  %v6345_v23 = vld [vmem:[%s9067_s11 + $0xb0] sm:$0xff] }
 0x59e   : > { %6520 = vst.msk [vmem:[%s10979_s15 + $0x28] sm:$0xff] %vm435_vm0, %v6456_v34  ;;  %v6101_v8 = vadd.f32 %v10967_v30, %v6100_v7  ;;  %v8095_v49 = vpop.f32.mrb[138].mxu0 }
 0x59f   : > { %v6397_v16 = vadd.f32 %v6333_v44, %v6109_v31  ;;  %v6112_v39 = vadd.f32 %v8095_v49, %v10967_v30  ;;  %v6103_v62 = vpop.f32.mrb[139].mxu0  ;;  %v6343_v44 = vld [vmem:[%s9067_s11 + $0xa0] sm:$0xff] }
 0x5a0   : > { %v6395_v15 = vadd.f32 %v6331_v35, %v6101_v8  ;;  %v6104_v43 = vadd.f32 %v10967_v30, %v6103_v62  ;;  %v6346_v35 = vld [vmem:[%s9067_s11 + $0xb8] sm:$0xff] }
 0x5a1   : > { %v6461_v3 = vmax.f32 %v6397_v16, 0.0  ;;  %v6398_v36 = vadd.f32 %v6334_v17, %v6112_v39  ;;  %v6344_v16 = vld [vmem:[%s9067_s11 + $0xa8] sm:$0xff] }
 0x5a2   : > { %v6459_v26 = vmax.f32 %v6395_v15, 0.0  ;;  %v6396_v2 = vadd.f32 %v6332_v0, %v6104_v43 }
 0x5a3   : > { %6525 = vst.msk [vmem:[%s10979_s15 + $0x50] sm:$0xff] %vm435_vm0, %v6461_v3  ;;  %v6462_v27 = vmax.f32 %v6398_v36, 0.0 }
 0x5a4   : > { %6523 = vst.msk [vmem:[%s10979_s15 + $0x40] sm:$0xff] %vm435_vm0, %v6459_v26  ;;  %v6460_v32 = vmax.f32 %v6396_v2, 0.0  ;;  %v8098_v63 = vpop.f32.mrb[140].mxu0 }
 0x5a5   : > { %6526 = vst.msk [vmem:[%s10979_s15 + $0x58] sm:$0xff] %vm435_vm0, %v6462_v27  ;;  %v6125_v22 = vadd.f32 %v8098_v63, %v10967_v30  ;;  %v6116_v29 = vpop.f32.mrb[141].mxu0  ;;  %v6349_v27 = vld [vmem:[%s9067_s11 + $0xd0] sm:$0xff] }
 0x5a6   : > { %6524 = vst.msk [vmem:[%s10979_s15 + $0x48] sm:$0xff] %vm435_vm0, %v6460_v32  ;;  %v6117_v52 = vadd.f32 %v10967_v30, %v6116_v29  ;;  %v8099_v10 = vpop.f32.mrb[142].mxu0 }
 0x5a7   : > { %v6401_v18 = vadd.f32 %v6337_v4, %v6125_v22  ;;  %v6128_v60 = vadd.f32 %v8099_v10, %v10967_v30  ;;  %v6119_v6 = vpop.f32.mrb[143].mxu0  ;;  %v6347_v4 = vld [vmem:[%s9067_s11 + $0xc0] sm:$0xff] }
 0x5a8   : > { %v6399_v47 = vadd.f32 %v6335_v38, %v6117_v52  ;;  %v6120_v61 = vadd.f32 %v10967_v30, %v6119_v6  ;;  %v6350_v38 = vld [vmem:[%s9067_s11 + $0xd8] sm:$0xff] }
 0x5a9   : > { %v6465_v55 = vmax.f32 %v6401_v18, 0.0  ;;  %v6402_v9 = vadd.f32 %v6338_v54, %v6128_v60  ;;  %v6348_v18 = vld [vmem:[%s9067_s11 + $0xc8] sm:$0xff] }
 0x5aa   : > { %v6463_v40 = vmax.f32 %v6399_v47, 0.0  ;;  %v6400_v19 = vadd.f32 %v6336_v13, %v6120_v61 }
 0x5ab   : > { %6529 = vst.msk [vmem:[%s10979_s15 + $0x70] sm:$0xff] %vm435_vm0, %v6465_v55  ;;  %v6466_v53 = vmax.f32 %v6402_v9, 0.0 }
 0x5ac   : > { %6527 = vst.msk [vmem:[%s10979_s15 + $0x60] sm:$0xff] %vm435_vm0, %v6463_v40  ;;  %v6464_v59 = vmax.f32 %v6400_v19, 0.0  ;;  %v8102_v50 = vpop.f32.mrb[144].mxu0 }
 0x5ad   : > { %6530 = vst.msk [vmem:[%s10979_s15 + $0x78] sm:$0xff] %vm435_vm0, %v6466_v53  ;;  %v6141_v56 = vadd.f32 %v8102_v50, %v10967_v30  ;;  %v6132_v33 = vpop.f32.mrb[145].mxu0  ;;  %v6353_v53 = vld [vmem:[%s9067_s11 + $0xf0] sm:$0xff] }
 0x5ae   : > { %6528 = vst.msk [vmem:[%s10979_s15 + $0x68] sm:$0xff] %vm435_vm0, %v6464_v59  ;;  %v6133_v25 = vadd.f32 %v10967_v30, %v6132_v33  ;;  %v8103_v5 = vpop.f32.mrb[146].mxu0 }
 0x5af   : > { %v6405_v42 = vadd.f32 %v6341_v24, %v6141_v56  ;;  %v6144_v12 = vadd.f32 %v8103_v5, %v10967_v30  ;;  %v6135_v45 = vpop.f32.mrb[147].mxu0  ;;  %v6351_v24 = vld [vmem:[%s9067_s11 + $0xe0] sm:$0xff] }
 0x5b0   : > { %v6403_v57 = vadd.f32 %v6339_v28, %v6133_v25  ;;  %v6136_v41 = vadd.f32 %v10967_v30, %v6135_v45  ;;  %v6354_v28 = vld [vmem:[%s9067_s11 + $0xf8] sm:$0xff] }
 0x5b1   : > { %v6469_v37 = vmax.f32 %v6405_v42, 0.0  ;;  %v6406_v21 = vadd.f32 %v6342_v20, %v6144_v12  ;;  %v6352_v42 = vld [vmem:[%s9067_s11 + $0xe8] sm:$0xff] }
 0x5b2   : > { %v6467_v48 = vmax.f32 %v6403_v57, 0.0  ;;  %v6404_v46 = vadd.f32 %v6340_v51, %v6136_v41 }
 0x5b3   : > { %6533 = vst.msk [vmem:[%s10979_s15 + $0x90] sm:$0xff] %vm435_vm0, %v6469_v37  ;;  %v6470_v14 = vmax.f32 %v6406_v21, 0.0 }
 0x5b4   : > { %6531 = vst.msk [vmem:[%s10979_s15 + $0x80] sm:$0xff] %vm435_vm0, %v6467_v48  ;;  %v6468_v1 = vmax.f32 %v6404_v46, 0.0  ;;  %v8106_v11 = vpop.f32.mrb[148].mxu0 }
 0x5b5   : > { %6534 = vst.msk [vmem:[%s10979_s15 + $0x98] sm:$0xff] %vm435_vm0, %v6470_v14  ;;  %v6157_v34 = vadd.f32 %v8106_v11, %v10967_v30  ;;  %v6148_v58 = vpop.f32.mrb[149].mxu0  ;;  %v6357_v14 = vld [vmem:[%s9067_s11 + $0x110] sm:$0xff] }
 0x5b6   : > { %6532 = vst.msk [vmem:[%s10979_s15 + $0x88] sm:$0xff] %vm435_vm0, %v6468_v1  ;;  %v6149_v31 = vadd.f32 %v10967_v30, %v6148_v58  ;;  %v8107_v7 = vpop.f32.mrb[150].mxu0 }
 0x5b7   : > { %v6409_v8 = vadd.f32 %v6345_v23, %v6157_v34  ;;  %v6160_v49 = vadd.f32 %v8107_v7, %v10967_v30  ;;  %v6151_v17 = vpop.f32.mrb[151].mxu0  ;;  %v6355_v23 = vld [vmem:[%s9067_s11 + $0x100] sm:$0xff] }
 0x5b8   : > { %v6407_v39 = vadd.f32 %v6343_v44, %v6149_v31  ;;  %v6152_v62 = vadd.f32 %v10967_v30, %v6151_v17  ;;  %v6358_v44 = vld [vmem:[%s9067_s11 + $0x118] sm:$0xff] }
 0x5b9   : > { %v6473_v0 = vmax.f32 %v6409_v8, 0.0  ;;  %v6410_v15 = vadd.f32 %v6346_v35, %v6160_v49  ;;  %v6356_v8 = vld [vmem:[%s9067_s11 + $0x108] sm:$0xff] }
 0x5ba   : > { %v6471_v43 = vmax.f32 %v6407_v39, 0.0  ;;  %v6408_v3 = vadd.f32 %v6344_v16, %v6152_v62 }
 0x5bb   : > { %6537 = vst.msk [vmem:[%s10979_s15 + $0xb0] sm:$0xff] %vm435_vm0, %v6473_v0  ;;  %v6474_v36 = vmax.f32 %v6410_v15, 0.0 }
 0x5bc   : > { %6535 = vst.msk [vmem:[%s10979_s15 + $0xa0] sm:$0xff] %vm435_vm0, %v6471_v43  ;;  %v6472_v26 = vmax.f32 %v6408_v3, 0.0  ;;  %v8110_v2 = vpop.f32.mrb[152].mxu0 }
 0x5bd   : > { %6538 = vst.msk [vmem:[%s10979_s15 + $0xb8] sm:$0xff] %vm435_vm0, %v6474_v36  ;;  %v6173_v32 = vadd.f32 %v8110_v2, %v10967_v30  ;;  %v6164_v63 = vpop.f32.mrb[153].mxu0  ;;  %v6361_v36 = vld [vmem:[%s9067_s11 + $0x130] sm:$0xff] }
 0x5be   : > { %6536 = vst.msk [vmem:[%s10979_s15 + $0xa8] sm:$0xff] %vm435_vm0, %v6472_v26  ;;  %v6165_v22 = vadd.f32 %v10967_v30, %v6164_v63  ;;  %v8111_v29 = vpop.f32.mrb[154].mxu0 }
 0x5bf   : > { %v6413_v52 = vadd.f32 %v6349_v27, %v6173_v32  ;;  %v6176_v10 = vadd.f32 %v8111_v29, %v10967_v30  ;;  %v6167_v54 = vpop.f32.mrb[155].mxu0  ;;  %v6359_v27 = vld [vmem:[%s9067_s11 + $0x120] sm:$0xff] }
 0x5c0   : > { %v6411_v60 = vadd.f32 %v6347_v4, %v6165_v22  ;;  %v6168_v6 = vadd.f32 %v10967_v30, %v6167_v54  ;;  %v6362_v4 = vld [vmem:[%s9067_s11 + $0x138] sm:$0xff] }
 0x5c1   : > { %v6477_v13 = vmax.f32 %v6413_v52, 0.0  ;;  %v6414_v47 = vadd.f32 %v6350_v38, %v6176_v10  ;;  %v6360_v52 = vld [vmem:[%s9067_s11 + $0x128] sm:$0xff] }
 0x5c2   : > { %v6475_v61 = vmax.f32 %v6411_v60, 0.0  ;;  %v6412_v55 = vadd.f32 %v6348_v18, %v6168_v6 }
 0x5c3   : > { %6541 = vst.msk [vmem:[%s10979_s15 + $0xd0] sm:$0xff] %vm435_vm0, %v6477_v13  ;;  %v6478_v9 = vmax.f32 %v6414_v47, 0.0 }
 0x5c4   : > { %6539 = vst.msk [vmem:[%s10979_s15 + $0xc0] sm:$0xff] %vm435_vm0, %v6475_v61  ;;  %v6476_v40 = vmax.f32 %v6412_v55, 0.0  ;;  %v8114_v19 = vpop.f32.mrb[156].mxu0 }
 0x5c5   : > { %6542 = vst.msk [vmem:[%s10979_s15 + $0xd8] sm:$0xff] %vm435_vm0, %v6478_v9  ;;  %v6189_v59 = vadd.f32 %v8114_v19, %v10967_v30  ;;  %v6180_v50 = vpop.f32.mrb[157].mxu0  ;;  %v6365_v9 = vld [vmem:[%s9067_s11 + $0x150] sm:$0xff] }
 0x5c6   : > { %6540 = vst.msk [vmem:[%s10979_s15 + $0xc8] sm:$0xff] %vm435_vm0, %v6476_v40  ;;  %v6181_v56 = vadd.f32 %v10967_v30, %v6180_v50  ;;  %v8115_v33 = vpop.f32.mrb[158].mxu0 }
 0x5c7   : > { %v6417_v25 = vadd.f32 %v6353_v53, %v6189_v59  ;;  %v6192_v5 = vadd.f32 %v8115_v33, %v10967_v30  ;;  %v6183_v20 = vpop.f32.mrb[159].mxu0  ;;  %v6363_v53 = vld [vmem:[%s9067_s11 + $0x140] sm:$0xff] }
 0x5c8   : > { %v6415_v12 = vadd.f32 %v6351_v24, %v6181_v56  ;;  %v6184_v45 = vadd.f32 %v10967_v30, %v6183_v20  ;;  %v6366_v24 = vld [vmem:[%s9067_s11 + $0x158] sm:$0xff] }
 0x5c9   : > { %v6481_v51 = vmax.f32 %v6417_v25, 0.0  ;;  %v6418_v57 = vadd.f32 %v6354_v28, %v6192_v5  ;;  %v6364_v25 = vld [vmem:[%s9067_s11 + $0x148] sm:$0xff] }
 0x5ca   : > { %v6479_v41 = vmax.f32 %v6415_v12, 0.0  ;;  %v6416_v37 = vadd.f32 %v6352_v42, %v6184_v45 }
 0x5cb   : > { %6545 = vst.msk [vmem:[%s10979_s15 + $0xf0] sm:$0xff] %vm435_vm0, %v6481_v51  ;;  %v6482_v21 = vmax.f32 %v6418_v57, 0.0 }
 0x5cc   : > { %6543 = vst.msk [vmem:[%s10979_s15 + $0xe0] sm:$0xff] %vm435_vm0, %v6479_v41  ;;  %v6480_v48 = vmax.f32 %v6416_v37, 0.0  ;;  %v8118_v46 = vpop.f32.mrb[160].mxu0 }
 0x5cd   : > { %6546 = vst.msk [vmem:[%s10979_s15 + $0xf8] sm:$0xff] %vm435_vm0, %v6482_v21  ;;  %v6205_v1 = vadd.f32 %v8118_v46, %v10967_v30  ;;  %v6196_v11 = vpop.f32.mrb[161].mxu0  ;;  %v6369_v21 = vld [vmem:[%s9067_s11 + $0x170] sm:$0xff] }
 0x5ce   : > { %6544 = vst.msk [vmem:[%s10979_s15 + $0xe8] sm:$0xff] %vm435_vm0, %v6480_v48  ;;  %v6197_v34 = vadd.f32 %v10967_v30, %v6196_v11  ;;  %v8119_v58 = vpop.f32.mrb[162].mxu0 }
 0x5cf   : > { %v6421_v31 = vadd.f32 %v6357_v14, %v6205_v1  ;;  %v6208_v7 = vadd.f32 %v8119_v58, %v10967_v30  ;;  %v6199_v35 = vpop.f32.mrb[163].mxu0  ;;  %v6367_v14 = vld [vmem:[%s9067_s11 + $0x160] sm:$0xff] }
 0x5d0   : > { %v6419_v49 = vadd.f32 %v6355_v23, %v6197_v34  ;;  %v6200_v17 = vadd.f32 %v10967_v30, %v6199_v35  ;;  %v6370_v23 = vld [vmem:[%s9067_s11 + $0x178] sm:$0xff] }
 0x5d1   : > { %v6485_v16 = vmax.f32 %v6421_v31, 0.0  ;;  %v6422_v39 = vadd.f32 %v6358_v44, %v6208_v7  ;;  %v6368_v31 = vld [vmem:[%s9067_s11 + $0x168] sm:$0xff] }
 0x5d2   : > { %v6483_v62 = vmax.f32 %v6419_v49, 0.0  ;;  %v6420_v0 = vadd.f32 %v6356_v8, %v6200_v17 }
 0x5d3   : > { %6549 = vst.msk [vmem:[%s10979_s15 + $0x110] sm:$0xff] %vm435_vm0, %v6485_v16  ;;  %v6486_v15 = vmax.f32 %v6422_v39, 0.0 }
 0x5d4   : > { %6547 = vst.msk [vmem:[%s10979_s15 + $0x100] sm:$0xff] %vm435_vm0, %v6483_v62  ;;  %v6484_v43 = vmax.f32 %v6420_v0, 0.0  ;;  %v8122_v3 = vpop.f32.mrb[164].mxu0 }
 0x5d5   : > { %6550 = vst.msk [vmem:[%s10979_s15 + $0x118] sm:$0xff] %vm435_vm0, %v6486_v15  ;;  %v6221_v26 = vadd.f32 %v8122_v3, %v10967_v30  ;;  %v6212_v2 = vpop.f32.mrb[165].mxu0  ;;  %v6373_v15 = vld [vmem:[%s9067_s11 + $0x190] sm:$0xff] }
 0x5d6   : > { %6548 = vst.msk [vmem:[%s10979_s15 + $0x108] sm:$0xff] %vm435_vm0, %v6484_v43  ;;  %v6213_v32 = vadd.f32 %v10967_v30, %v6212_v2  ;;  %v8123_v63 = vpop.f32.mrb[166].mxu0 }
 0x5d7   : > { %v6425_v22 = vadd.f32 %v6361_v36, %v6221_v26  ;;  %v6224_v29 = vadd.f32 %v8123_v63, %v10967_v30  ;;  %v6215_v38 = vpop.f32.mrb[167].mxu0  ;;  %v6371_v36 = vld [vmem:[%s9067_s11 + $0x180] sm:$0xff] }
 0x5d8   : > { %v6423_v10 = vadd.f32 %v6359_v27, %v6213_v32  ;;  %v6216_v54 = vadd.f32 %v10967_v30, %v6215_v38  ;;  %v6374_v27 = vld [vmem:[%s9067_s11 + $0x198] sm:$0xff] }
 0x5d9   : > { %v6489_v18 = vmax.f32 %v6425_v22, 0.0  ;;  %v6426_v60 = vadd.f32 %v6362_v4, %v6224_v29  ;;  %v6372_v22 = vld [vmem:[%s9067_s11 + $0x188] sm:$0xff] }
 0x5da   : > { %v6487_v6 = vmax.f32 %v6423_v10, 0.0  ;;  %v6424_v13 = vadd.f32 %v6360_v52, %v6216_v54 }
 0x5db   : > { %6553 = vst.msk [vmem:[%s10979_s15 + $0x130] sm:$0xff] %vm435_vm0, %v6489_v18  ;;  %v6490_v47 = vmax.f32 %v6426_v60, 0.0 }
 0x5dc   : > { %6551 = vst.msk [vmem:[%s10979_s15 + $0x120] sm:$0xff] %vm435_vm0, %v6487_v6  ;;  %v6488_v61 = vmax.f32 %v6424_v13, 0.0  ;;  %v8126_v55 = vpop.f32.mrb[168].mxu0 }
 0x5dd   : > { %6554 = vst.msk [vmem:[%s10979_s15 + $0x138] sm:$0xff] %vm435_vm0, %v6490_v47  ;;  %v6237_v40 = vadd.f32 %v8126_v55, %v10967_v30  ;;  %v6228_v19 = vpop.f32.mrb[169].mxu0  ;;  %v6377_v47 = vld [vmem:[%s9067_s11 + $0x1b0] sm:$0xff] }
 0x5de   : > { %6552 = vst.msk [vmem:[%s10979_s15 + $0x128] sm:$0xff] %vm435_vm0, %v6488_v61  ;;  %v6229_v59 = vadd.f32 %v10967_v30, %v6228_v19  ;;  %v8127_v50 = vpop.f32.mrb[170].mxu0 }
 0x5df   : > { %v6429_v56 = vadd.f32 %v6365_v9, %v6237_v40  ;;  %v6240_v33 = vadd.f32 %v8127_v50, %v10967_v30  ;;  %v6231_v28 = vpop.f32.mrb[171].mxu0  ;;  %v6375_v9 = vld [vmem:[%s9067_s11 + $0x1a0] sm:$0xff] }
 0x5e0   : > { %v6427_v5 = vadd.f32 %v6363_v53, %v6229_v59  ;;  %v6232_v20 = vadd.f32 %v10967_v30, %v6231_v28  ;;  %v6378_v53 = vld [vmem:[%s9067_s11 + $0x1b8] sm:$0xff] }
 0x5e1   : > { %v6493_v42 = vmax.f32 %v6429_v56, 0.0  ;;  %v6430_v12 = vadd.f32 %v6366_v24, %v6240_v33  ;;  %v6376_v56 = vld [vmem:[%s9067_s11 + $0x1a8] sm:$0xff] }
 0x5e2   : > { %v6491_v45 = vmax.f32 %v6427_v5, 0.0  ;;  %v6428_v51 = vadd.f32 %v6364_v25, %v6232_v20 }
 0x5e3   : > { %6557 = vst.msk [vmem:[%s10979_s15 + $0x150] sm:$0xff] %vm435_vm0, %v6493_v42  ;;  %v6494_v57 = vmax.f32 %v6430_v12, 0.0 }
 0x5e4   : > { %6555 = vst.msk [vmem:[%s10979_s15 + $0x140] sm:$0xff] %vm435_vm0, %v6491_v45  ;;  %v6492_v41 = vmax.f32 %v6428_v51, 0.0  ;;  %v8130_v37 = vpop.f32.mrb[172].mxu0 }
 0x5e5   : > { %6558 = vst.msk [vmem:[%s10979_s15 + $0x158] sm:$0xff] %vm435_vm0, %v6494_v57  ;;  %v6253_v48 = vadd.f32 %v8130_v37, %v10967_v30  ;;  %v6244_v46 = vpop.f32.mrb[173].mxu0  ;;  %v6381_v57 = vld [vmem:[%s9067_s11 + $0x1d0] sm:$0xff] }
 0x5e6   : > { %6556 = vst.msk [vmem:[%s10979_s15 + $0x148] sm:$0xff] %vm435_vm0, %v6492_v41  ;;  %v6245_v1 = vadd.f32 %v10967_v30, %v6244_v46  ;;  %v8131_v11 = vpop.f32.mrb[174].mxu0 }
 0x5e7   : > { %v6433_v34 = vadd.f32 %v6369_v21, %v6253_v48  ;;  %v6256_v58 = vadd.f32 %v8131_v11, %v10967_v30  ;;  %v6247_v44 = vpop.f32.mrb[175].mxu0  ;;  %v6379_v21 = vld [vmem:[%s9067_s11 + $0x1c0] sm:$0xff] }
 0x5e8   : > { %v6431_v7 = vadd.f32 %v6367_v14, %v6245_v1  ;;  %v6248_v35 = vadd.f32 %v10967_v30, %v6247_v44  ;;  %v6382_v14 = vld [vmem:[%s9067_s11 + $0x1d8] sm:$0xff] }
 0x5e9   : > { %v6497_v8 = vmax.f32 %v6433_v34, 0.0  ;;  %v6434_v49 = vadd.f32 %v6370_v23, %v6256_v58  ;;  %v6380_v34 = vld [vmem:[%s9067_s11 + $0x1c8] sm:$0xff] }
 0x5ea   : > { %v6495_v17 = vmax.f32 %v6431_v7, 0.0  ;;  %v6432_v16 = vadd.f32 %v6368_v31, %v6248_v35 }
 0x5eb   : > { %6561 = vst.msk [vmem:[%s10979_s15 + $0x170] sm:$0xff] %vm435_vm0, %v6497_v8  ;;  %v6498_v39 = vmax.f32 %v6434_v49, 0.0 }
 0x5ec   : > { %6559 = vst.msk [vmem:[%s10979_s15 + $0x160] sm:$0xff] %vm435_vm0, %v6495_v17  ;;  %v6496_v62 = vmax.f32 %v6432_v16, 0.0  ;;  %v8134_v0 = vpop.f32.mrb[176].mxu0 }
 0x5ed   : > { %6562 = vst.msk [vmem:[%s10979_s15 + $0x178] sm:$0xff] %vm435_vm0, %v6498_v39  ;;  %v6269_v43 = vadd.f32 %v8134_v0, %v10967_v30  ;;  %v6260_v3 = vpop.f32.mrb[177].mxu0  ;;  %v6385_v39 = vld [vmem:[%s9067_s11 + $0x1f0] sm:$0xff] }
 0x5ee   : > { %6560 = vst.msk [vmem:[%s10979_s15 + $0x168] sm:$0xff] %vm435_vm0, %v6496_v62  ;;  %v6261_v26 = vadd.f32 %v10967_v30, %v6260_v3  ;;  %v8135_v2 = vpop.f32.mrb[178].mxu0 }
 0x5ef   : > { %v6437_v32 = vadd.f32 %v6373_v15, %v6269_v43  ;;  %v6272_v63 = vadd.f32 %v8135_v2, %v10967_v30  ;;  %v6263_v4 = vpop.f32.mrb[179].mxu0  ;;  %v6383_v15 = vld [vmem:[%s9067_s11 + $0x1e0] sm:$0xff] }
 0x5f0   : > { %v6435_v29 = vadd.f32 %v6371_v36, %v6261_v26  ;;  %v6264_v38 = vadd.f32 %v10967_v30, %v6263_v4  ;;  %v6386_v36 = vld [vmem:[%s9067_s11 + $0x1f8] sm:$0xff] }
 0x5f1   : > { %v6501_v52 = vmax.f32 %v6437_v32, 0.0  ;;  %v6438_v10 = vadd.f32 %v6374_v27, %v6272_v63  ;;  %v6384_v32 = vld [vmem:[%s9067_s11 + $0x1e8] sm:$0xff]  ;;  %s8800_s11 = scalar_lea.vmem %s11230_s30, 8192 }
 0x5f2   : > { %v6499_v54 = vmax.f32 %v6435_v29, 0.0  ;;  %v6436_v18 = vadd.f32 %v6372_v22, %v6264_v38  ;;  %p8801_p4 = scmp.ne.s32.totalorder %s11230_s30, %s8800_s11  ;;  %p8808_p13 = scmp.lt.s32.totalorder %s8806_s20, %s8800_s11 }
 0x5f3   : > { %6565 = vst.msk [vmem:[%s10979_s15 + $0x190] sm:$0xff] %vm435_vm0, %v6501_v52  ;;  %v6502_v60 = vmax.f32 %v6438_v10, 0.0 }
 0x5f4   : > { %6563 = vst.msk [vmem:[%s10979_s15 + $0x180] sm:$0xff] %vm435_vm0, %v6499_v54  ;;  %v6500_v6 = vmax.f32 %v6436_v18, 0.0  ;;  %v8138_v13 = vpop.f32.mrb[180].mxu0  ;;  %p8802_p6 = pnand %p8801_p4, %p9013_p12  ;;  %p8809_p3 = por %p8808_p13, %p8807_p10 }
 0x5f5   : > { %6566 = vst.msk [vmem:[%s10979_s15 + $0x198] sm:$0xff] %vm435_vm0, %v6502_v60  ;;  %v6285_v61 = vadd.f32 %v8138_v13, %v10967_v30  ;;  %v6276_v55 = vpop.f32.mrb[181].mxu0 }
 0x5f6   : > { %6564 = vst.msk [vmem:[%s10979_s15 + $0x188] sm:$0xff] %vm435_vm0, %v6500_v6  ;;  %v6277_v40 = vadd.f32 %v10967_v30, %v6276_v55  ;;  %v8139_v19 = vpop.f32.mrb[182].mxu0  ;;  %p8803_p8 = pneg %p8802_p6 }
 0x5f7   : > { %v6441_v59 = vadd.f32 %v6377_v47, %v6285_v61  ;;  %v6288_v50 = vadd.f32 %v8139_v19, %v10967_v30  ;;  %v6279_v24 = vpop.f32.mrb[183].mxu0 }
 0x5f8   : > { %v6439_v33 = vadd.f32 %v6375_v9, %v6277_v40  ;;  %v6280_v28 = vadd.f32 %v10967_v30, %v6279_v24  ;;  %p8810_p7 = pnand %p8809_p3, %p8803_p8 }
 0x5f9   : > { %v6505_v25 = vmax.f32 %v6441_v59, 0.0  ;;  %v6442_v5 = vadd.f32 %v6378_v53, %v6288_v50 }
 0x5fa   : > { %v6503_v20 = vmax.f32 %v6439_v33, 0.0  ;;  %v6440_v42 = vadd.f32 %v6376_v56, %v6280_v28 }
 0x5fb   : > { %6569 = vst.msk [vmem:[%s10979_s15 + $0x1b0] sm:$0xff] %vm435_vm0, %v6505_v25  ;;  %v6506_v12 = vmax.f32 %v6442_v5, 0.0 }
 0x5fc   : > { %6567 = vst.msk [vmem:[%s10979_s15 + $0x1a0] sm:$0xff] %vm435_vm0, %v6503_v20  ;;  %v6504_v45 = vmax.f32 %v6440_v42, 0.0  ;;  %v8142_v51 = vpop.f32.mrb[184].mxu0 }
 0x5fd   : > { %6570 = vst.msk [vmem:[%s10979_s15 + $0x1b8] sm:$0xff] %vm435_vm0, %v6506_v12  ;;  %v6301_v41 = vadd.f32 %v8142_v51, %v10967_v30  ;;  %v6292_v37 = vpop.f32.mrb[185].mxu0 }
 0x5fe   : > { %6568 = vst.msk [vmem:[%s10979_s15 + $0x1a8] sm:$0xff] %vm435_vm0, %v6504_v45  ;;  %v6293_v48 = vadd.f32 %v10967_v30, %v6292_v37  ;;  %v8143_v46 = vpop.f32.mrb[186].mxu0 }
 0x5ff   : > { %v6445_v1 = vadd.f32 %v6381_v57, %v6301_v41  ;;  %v6304_v11 = vadd.f32 %v8143_v46, %v10967_v30  ;;  %v6295_v23 = vpop.f32.mrb[187].mxu0 }
 0x600   : > { %v6443_v58 = vadd.f32 %v6379_v21, %v6293_v48  ;;  %v6296_v44 = vadd.f32 %v10967_v30, %v6295_v23 }
 0x601   : > { %v6509_v31 = vmax.f32 %v6445_v1, 0.0  ;;  %v6446_v7 = vadd.f32 %v6382_v14, %v6304_v11 }
 0x602   : > { %v6507_v35 = vmax.f32 %v6443_v58, 0.0  ;;  %v6444_v8 = vadd.f32 %v6380_v34, %v6296_v44 }
 0x603   : > { %6573 = vst.msk [vmem:[%s10979_s15 + $0x1d0] sm:$0xff] %vm435_vm0, %v6509_v31  ;;  %v6510_v49 = vmax.f32 %v6446_v7, 0.0 }
 0x604   : > { %6571 = vst.msk [vmem:[%s10979_s15 + $0x1c0] sm:$0xff] %vm435_vm0, %v6507_v35  ;;  %v6508_v17 = vmax.f32 %v6444_v8, 0.0  ;;  %v8146_v16 = vpop.f32.mrb[188].mxu0 }
 0x605   : > { %6574 = vst.msk [vmem:[%s10979_s15 + $0x1d8] sm:$0xff] %vm435_vm0, %v6510_v49  ;;  %v6317_v62 = vadd.f32 %v8146_v16, %v10967_v30  ;;  %v6308_v0 = vpop.f32.mrb[189].mxu0 }
 0x606   : > { %6572 = vst.msk [vmem:[%s10979_s15 + $0x1c8] sm:$0xff] %vm435_vm0, %v6508_v17  ;;  %v6309_v43 = vadd.f32 %v10967_v30, %v6308_v0  ;;  %v8147_v3 = vpop.f32.mrb[190].mxu0 }
 0x607   : > { %v6449_v26 = vadd.f32 %v6385_v39, %v6317_v62  ;;  %v6320_v2 = vadd.f32 %v8147_v3, %v10967_v30  ;;  %v6311_v27 = vpop.f32.mrb[191].mxu0 }
 0x608   : > { %v6447_v63 = vadd.f32 %v6383_v15, %v6309_v43  ;;  %v6312_v4 = vadd.f32 %v10967_v30, %v6311_v27 }
 0x609   : > { %v6513_v22 = vmax.f32 %v6449_v26, 0.0  ;;  %v6450_v29 = vadd.f32 %v6386_v36, %v6320_v2 }
 0x60a   : > { %v6511_v38 = vmax.f32 %v6447_v63, 0.0  ;;  %v6448_v52 = vadd.f32 %v6384_v32, %v6312_v4 }
 0x60b   : > { %6577 = vst.msk [vmem:[%s10979_s15 + $0x1f0] sm:$0xff] %vm435_vm0, %v6513_v22  ;;  %v6514_v10 = vmax.f32 %v6450_v29, 0.0 }
 0x60c   : > { %6575 = vst.msk [vmem:[%s10979_s15 + $0x1e0] sm:$0xff] %vm435_vm0, %v6511_v38  ;;  %v6512_v30 = vmax.f32 %v6448_v52, 0.0 }
 0x60d   : > { %6578 = vst.msk [vmem:[%s10979_s15 + $0x1f8] sm:$0xff] %vm435_vm0, %v6514_v10 }
 0x60e   : > { %6576 = vst.msk [vmem:[%s10979_s15 + $0x1e8] sm:$0xff] %vm435_vm0, %v6512_v30 }
 0x60f   : > { %8813 = shalt.err (!%p8810_p7)
}
 0x610   : > { %s8814_s9 = scalar_lea.hbm %s11228_s21, 8192  ;;  %s8818_s15 = scalar_lea.hbm %s11287_s7, 16384 }
 0x611   : > { %p8815_p9 = scmp.ne.s32.totalorder %s11228_s21, %s8814_s9  ;;  %p8819_p5 = scmp.lt.u32.totalorder %s11228_s21, %s11287_s7 }
 0x612   : > { %p8820_p11 = scmp.lt.u32.totalorder %s8818_s15, %s8814_s9  ;;  %p8822_p4 = scmp.lt.u32.totalorder %s8814_s9, %s11228_s21 }
 0x613   : > { %p8816_p2 = pnand %p8815_p9, %p9013_p12 }
 0x614   : > { %p8821_p1 = por %p8820_p11, %p8819_p5 }
 0x615   : > { %p8817_p0 = pneg %p8816_p2 }
 0x616   : > { %p8823_p6 = por %p8822_p4, %p8821_p1 }
 0x618   : > { %p8824_p8 = pnand %p8823_p6, %p8817_p0 }
 0x61a   : > { %8827 = shalt.err (!%p8824_p8)
}
 0x61b   : > { %s8880_s17 = smov 128   ;;  %s8881_s11 = smov 8  }
 0x61c   : > { %8679 = dma.vmem_to_hbm [thread:$0]  (%p9013_p12), %s11230_s30, 8192, %s11228_s21, %s6580_s28, %s8880_s17, %s8880_s17, %s8881_s11  }
 0x61d PF: > { %s6609_s10 = sand.u32 1, %s8858_s24   ;;  %p11374_p10 = scmp.ne.s32.totalorder %s11302_s8, 0 }
 0x61e   : > { %p11375_p13 = scmp.ge.s32.totalorder %s8870_s27, 2  ;;  %s6610_s22 = scalar_lea.sflag [#allocation5], %s6609_s10 }
 0x620   : > { %p8690_p3 = pnand %p11375_p13, %p11374_p10 }
 0x622   : > { %8853 = dma.done.wait (!%p8690_p3), %s6610_s22, 8192  }
 0x623   : > { %8855 = vsyncadd (!%p8690_p3), %s6610_s22, 4294959104  ;;  %p21_p7 = scmp.ge.s32.totalorder %s8978_s13, 4   ;;  %s11376_s24 = smov %s8862_s25 }
 0x624   : > { %s11377_s25 = smov %s8866_s26  ;;  %s11378_s26 = smov %s9009_s18 }
 0x625   : > { %s11379_s27 = smov %s8978_s13  ;;  %23 = sbr.rel (!%p21_p7) target bundleno = 6 (0x6), region = 116 }
 0x62c   :  { %6615 = vsyncpa [#allocation4], 1 }
 0x62d   :  { %6617 = vsyncpa [#allocation4 + $0x1], 1 }
 0x62e   :  { %6618 = vsyncpa [#allocation7], 1 }
 0x62f   :  { %6619 = vsyncpa [#allocation5], 1 }
 0x630   :  { %6621 = vsyncpa [#allocation5 + $0x1], 1 }

</bundles_post_ra>
